<compile_context>
chip_gen: v6e
topology: v6e:2x2x1
jax: 0.10.0
libtpu: 0.0.40
codegen_flags: <defaults>
</compile_context>

<pallas_src>
import jax
import jax.numpy as jnp
from jax.experimental import pallas as pl
from jax.experimental.pallas import tpu as pltpu

# ---------------- scaled-down configuration ----------------
B = 2               # batch
IN_CH = 3           # RGB
IMG = 16            # input spatial (stand-in for 224)
CONV_K = 3          # conv kernel of the CNN stand-in
CONV_STRIDE = 4
CONV_PAD = 1
KPAD = 32           # CONV_K*CONV_K*IN_CH = 27, zero-padded to a sublane multiple
FEAT_CH = 128       # CNN feature channels (stand-in for 2048)
FEAT_HW = 4         # CNN feature-map spatial (stand-in for 14)
N_PATCH = FEAT_HW * FEAT_HW   # 16 tokens (stand-in for 196)
EMBED = 128         # embed_dim (stand-in for 768) -- multiple of 128 => lane-dense
HEADS = 4           # num_heads (stand-in for 12)
HEAD_DIM = EMBED // HEADS
DEPTH = 4           # ViT depth (stand-in for 12)
MLP_HIDDEN = 4 * EMBED        # mlp_ratio = 4
LN_EPS = 1e-6       # timm ViT LayerNorm eps
ATTN_SCALE = HEAD_DIM ** -0.5
VEC_W = max(3 * EMBED, MLP_HIDDEN)   # lane width of the packed per-block vector slab
NCORES = 1          # set to 2 on v7x to split the folded batch across both TensorCores


# ---------------- in-kernel helpers ----------------
def _layernorm(v, g, b):
    mu = jnp.mean(v, axis=-1, keepdims=True)
    var = jnp.mean(jnp.square(v - mu), axis=-1, keepdims=True)
    return (v - mu) * jax.lax.rsqrt(var + LN_EPS) * g + b


def _gelu_tanh(x):
    # tanh-approx GELU (jax.nn.gelu approximate=True); tanh goes to the EUP slot.
    c = 0.7978845608028654  # sqrt(2/pi)
    return 0.5 * x * (1.0 + jnp.tanh(c * (x + 0.044715 * x * x * x)))


# ---------------- fused forward kernel ----------------
def _mowen_kernel(cols_ref, conv_w_ref, conv_b_ref, proj_w_ref, proj_b_ref,
                  wqkv_ref, wpr_ref, wf1_ref, wf2_ref, vecs_ref,
                  o_ref, tok_ref):
    """grid = (cores, depth).  tok_ref: VMEM-resident (B_core*N_PATCH, EMBED) f32 tokens."""
    d = pl.program_id(1)
    b_core, n_tok, _ = cols_ref.shape
    bn = b_core * n_tok

    # ---- stem: conv(im2col matmul)+ReLU, then feature_projection (first depth step) ----
    @pl.when(d == 0)
    def _():
        cols = cols_ref[...].reshape(bn, KPAD)                       # (BN, KPAD) bf16
        feat = jnp.dot(cols, conv_w_ref[...],
                       preferred_element_type=jnp.float32) + conv_b_ref[...]
        feat = jnp.maximum(feat, 0.0)
        tok_ref[...] = jnp.dot(feat.astype(jnp.bfloat16), proj_w_ref[...],
                               preferred_element_type=jnp.float32) + proj_b_ref[...]

    # packed per-block vectors: one DMA, sliced with lane-aligned static slices
    vec = vecs_ref[0]                                                # (8, VEC_W) f32
    qkv_bias = vec[0:1, 0:3 * EMBED]
    bpr = vec[1:2, 0:EMBED]
    g1 = vec[2:3, 0:EMBED]
    be1 = vec[3:4, 0:EMBED]
    g2 = vec[4:5, 0:EMBED]
    be2 = vec[5:6, 0:EMBED]
    bf1 = vec[6:7, 0:MLP_HIDDEN]
    bf2 = vec[7:8, 0:EMBED]

    x = tok_ref[...]                                                 # (BN, EMBED) f32

    # ---- attention branch: x += proj(MHSA(LN(x))) ----
    h = _layernorm(x, g1, be1).astype(jnp.bfloat16)
    qkv = jnp.dot(h, wqkv_ref[0],
                  preferred_element_type=jnp.float32) + qkv_bias     # (BN, 3E) f32
    wpr = wpr_ref[0]                                                 # (H, D, E) bf16

    for b in range(b_core):                                          # static unroll, tiny B
        r0 = b * n_tok
        rows = qkv[r0:r0 + n_tok, :]                                 # (N, 3E), lane-aligned
        q = (rows[:, 0:EMBED] * ATTN_SCALE).reshape(n_tok, HEADS, HEAD_DIM)
        k = rows[:, EMBED:2 * EMBED].reshape(n_tok, HEADS, HEAD_DIM)
        v = rows[:, 2 * EMBED:3 * EMBED].reshape(n_tok, HEADS, HEAD_DIM)
        qh = jnp.swapaxes(q, 0, 1).astype(jnp.bfloat16)              # (H, N, D)
        kh = jnp.swapaxes(k, 0, 1).astype(jnp.bfloat16)
        vh = jnp.swapaxes(v, 0, 1).astype(jnp.bfloat16)

        s = jnp.einsum('hqd,hkd->hqk', qh, kh,
                       preferred_element_type=jnp.float32)           # (H, N, N)
        s = s - jnp.max(s, axis=-1, keepdims=True)
        p = jnp.exp(s)
        p = p * pl.reciprocal(jnp.sum(p, axis=-1, keepdims=True), approx=True)
        o = jnp.einsum('hqk,hkd->hqd', p.astype(jnp.bfloat16), vh,
                       preferred_element_type=jnp.float32)           # (H, N, D)

        # head-concat folded into the projection: no output-side transpose/reshape
        proj = jnp.einsum('hqd,hde->hqe', o.astype(jnp.bfloat16), wpr,
                          preferred_element_type=jnp.float32)        # (H, N, E)
        attn = jnp.sum(proj, axis=0) + bpr                           # (N, E)
        tok_ref[pl.ds(r0, n_tok), :] = x[r0:r0 + n_tok, :] + attn

    # ---- MLP branch: x += fc2(GELU(fc1(LN(x)))) ----
    x2 = tok_ref[...]
    h2 = _layernorm(x2, g2, be2).astype(jnp.bfloat16)
    h2 = jnp.dot(h2, wf1_ref[0], preferred_element_type=jnp.float32) + bf1
    h2 = _gelu_tanh(h2)
    h2 = jnp.dot(h2.astype(jnp.bfloat16), wf2_ref[0],
                 preferred_element_type=jnp.float32) + bf2
    tok_ref[...] = x2 + h2

    # ---- encoded_patches.mean(dim=1), only on the last depth step ----
    @pl.when(d == pl.num_programs(1) - 1)
    def _():
        xf = tok_ref[...]
        o_ref[...] = jnp.mean(xf.reshape(b_core, n_tok, EMBED), axis=1, keepdims=True)


# ---------------- JAX glue ----------------
def _im2col(x_nhwc, k, stride, pad):
    xp = jnp.pad(x_nhwc, ((0, 0), (pad, pad), (pad, pad), (0, 0)))
    _, Hp, Wp, _ = xp.shape
    oh = (Hp - k) // stride + 1
    ow = (Wp - k) // stride + 1
    cols = []
    for i in range(k):
        for j in range(k):
            cols.append(xp[:, i:i + stride * oh:stride, j:j + stride * ow:stride, :])
    return jnp.concatenate(cols, axis=-1), oh, ow                    # [B, oh, ow, k*k*C]


def _full_spec(a):
    nd = a.ndim
    return pl.BlockSpec(a.shape, lambda c, d, _nd=nd: (0,) * _nd)


def _depth_spec(a):
    blk = (1,) + a.shape[1:]
    nd = len(blk)
    return pl.BlockSpec(blk, lambda c, d, _nd=nd: (d,) + (0,) * (_nd - 1))


def mowen_forward(x_nchw, params, num_cores=NCORES):
    """MOWEN.forward(x, pretrain=False): cnn -> prepare_patches -> vit.blocks -> mean(dim=1)."""
    # NCHW (PyTorch) -> NHWC (kernel layout); im2col + K-padding is trace-time glue.
    x = jnp.transpose(x_nchw, (0, 2, 3, 1))
    cols, oh, ow = _im2col(x, CONV_K, CONV_STRIDE, CONV_PAD)
    Bx = x.shape[0]
    n_tok = oh * ow
    k_raw = CONV_K * CONV_K * IN_CH
    cols = cols.reshape(Bx, n_tok, k_raw)
    cols = jnp.pad(cols, ((0, 0), (0, 0), (0, KPAD - k_raw))).astype(jnp.bfloat16)

    assert Bx % num_cores == 0, (Bx, num_cores)
    b_core = Bx // num_cores

    stem = [params["conv_w"], params["conv_b"], params["proj_w"], params["proj_b"]]
    blocks = [params["wqkv"], params["wpr"], params["wf1"], params["wf2"], params["vecs"]]

    in_specs = [pl.BlockSpec((b_core, n_tok, KPAD), lambda c, d: (c, 0, 0))]
    in_specs += [_full_spec(a) for a in stem]
    in_specs += [_depth_spec(a) for a in blocks]

    out = pl.pallas_call(
        _mowen_kernel,
        out_shape=jax.ShapeDtypeStruct((Bx, 1, EMBED), jnp.float32),
        grid=(num_cores, DEPTH),
        in_specs=in_specs,
        out_specs=pl.BlockSpec((b_core, 1, EMBED), lambda c, d: (c, 0, 0)),
        scratch_shapes=[pltpu.VMEM((b_core * n_tok, EMBED), jnp.float32)],
        compiler_params=pltpu.CompilerParams(
            dimension_semantics=("parallel", "arbitrary"),
            vmem_limit_bytes=48 * 1024 * 1024),
    )(cols, *stem, *blocks)
    return out.reshape(Bx, EMBED)


def init_params(key):
    keys = iter(jax.random.split(key, 8))

    def rn(shape, scale=0.02):
        # MXU-weight matrices stored in bf16 (halves weight DMA bytes).
        return (scale * jax.random.normal(next(keys), shape)).astype(jnp.bfloat16)

    # packed per-block vectors (f32):
    #   row 0: fused qkv bias (3E)   row 1: attn proj bias (E)
    #   row 2: norm1 gamma           row 3: norm1 beta
    #   row 4: norm2 gamma           row 5: norm2 beta
    #   row 6: mlp fc1 bias (HID)    row 7: mlp fc2 bias (E)
    vecs = jnp.zeros((DEPTH, 8, VEC_W), jnp.float32)
    vecs = vecs.at[:, 2, :EMBED].set(1.0)   # norm1 gamma
    vecs = vecs.at[:, 4, :EMBED].set(1.0)   # norm2 gamma

    return {
        "conv_w": rn((KPAD, FEAT_CH)),          # padded rows multiply zero-padded cols
        "conv_b": jnp.zeros((1, FEAT_CH), jnp.float32),
        "proj_w": rn((FEAT_CH, EMBED)),
        "proj_b": jnp.zeros((1, EMBED), jnp.float32),
        "wqkv": rn((DEPTH, EMBED, 3 * EMBED)),  # fused q|k|v weight
        # attn proj weight stored head-major: wpr[d, h, i, :] == Wproj[h*HEAD_DIM + i, :]
        "wpr": rn((DEPTH, HEADS, HEAD_DIM, EMBED)),
        "wf1": rn((DEPTH, EMBED, MLP_HIDDEN)),
        "wf2": rn((DEPTH, MLP_HIDDEN, EMBED)),
        "vecs": vecs,
    }


if __name__ == "__main__":
    key = jax.random.PRNGKey(0)
    kx, kp = jax.random.split(key)
    x = jax.random.normal(kx, (B, IN_CH, IMG, IMG), dtype=jnp.float32)   # NCHW like PyTorch
    params = init_params(kp)

    fwd = jax.jit(mowen_forward)
    out = fwd(x, params)
    jax.block_until_ready(out)
    assert out.shape == (B, EMBED), out.shape
    assert bool(jnp.all(jnp.isfinite(out)))
    print("KERNEL_OK")
</pallas_src>

<mosaic_0001>
module attributes {stable_mosaic.version = 11 : i64} {
  func.func @_mowen_kernel(%arg0: i32, %arg1: i32, %arg2: memref<2x16x32xbf16, #tpu.memory_space<vmem>>, %arg3: memref<32x128xbf16, #tpu.memory_space<vmem>>, %arg4: memref<1x128xf32, #tpu.memory_space<vmem>>, %arg5: memref<128x128xbf16, #tpu.memory_space<vmem>>, %arg6: memref<1x128xf32, #tpu.memory_space<vmem>>, %arg7: memref<1x128x384xbf16, #tpu.memory_space<vmem>>, %arg8: memref<1x4x32x128xbf16, #tpu.memory_space<vmem>>, %arg9: memref<1x128x512xbf16, #tpu.memory_space<vmem>>, %arg10: memref<1x512x128xbf16, #tpu.memory_space<vmem>>, %arg11: memref<1x8x512xf32, #tpu.memory_space<vmem>>, %arg12: memref<2x1x128xf32, #tpu.memory_space<vmem>>, %arg13: memref<32x128xf32, #tpu.memory_space<vmem>>) attributes {dimension_semantics = [#tpu.dimension_semantics<parallel>, #tpu.dimension_semantics<arbitrary>], iteration_bounds = array<i64: 1, 4>, scalar_prefetch = 0 : i64, scratch_operands = 1 : i64, tpu.core_type = #tpu.core_type<tc>, window_params = [{transform_indices = @transform_0, window_bounds = array<i64: 2, 16, 32>}, {pipeline_mode = #tpu.pipeline_mode<synchronous>, transform_indices = @transform_1, window_bounds = array<i64: 32, 128>}, {pipeline_mode = #tpu.pipeline_mode<synchronous>, transform_indices = @transform_2, window_bounds = array<i64: 1, 128>}, {pipeline_mode = #tpu.pipeline_mode<synchronous>, transform_indices = @transform_3, window_bounds = array<i64: 128, 128>}, {pipeline_mode = #tpu.pipeline_mode<synchronous>, transform_indices = @transform_4, window_bounds = array<i64: 1, 128>}, {transform_indices = @transform_5, window_bounds = array<i64: 1, 128, 384>}, {transform_indices = @transform_6, window_bounds = array<i64: 1, 4, 32, 128>}, {transform_indices = @transform_7, window_bounds = array<i64: 1, 128, 512>}, {transform_indices = @transform_8, window_bounds = array<i64: 1, 512, 128>}, {transform_indices = @transform_9, window_bounds = array<i64: 1, 8, 512>}, {transform_indices = @transform_10, window_bounds = array<i64: 2, 1, 128>}]} {
    %c0_i32 = arith.constant 0 : i32
    %0 = arith.cmpi eq, %arg1, %c0_i32 : i32
    %1 = arith.extui %0 : i1 to i32
    %c0_i32_0 = arith.constant 0 : i32
    %2 = arith.cmpi ne, %1, %c0_i32_0 : i32
    scf.if %2 {
      %c0_56 = arith.constant 0 : index
      %c0_57 = arith.constant 0 : index
      %c0_58 = arith.constant 0 : index
      %169 = vector.load %arg2[%c0_56, %c0_57, %c0_58] : memref<2x16x32xbf16, #tpu.memory_space<vmem>>, vector<2x16x32xbf16>
      %170 = vector.shape_cast %169 : vector<2x16x32xbf16> to vector<32x32xbf16>
      %c0_59 = arith.constant 0 : index
      %c0_60 = arith.constant 0 : index
      %171 = vector.load %arg3[%c0_59, %c0_60] : memref<32x128xbf16, #tpu.memory_space<vmem>>, vector<32x128xbf16>
      %cst_61 = arith.constant dense<0.000000e+00> : vector<32x128xf32>
      %172 = tpu.matmul %170, %171, %cst_61 {dimension_numbers = #tpu.dot_dimension_numbers<[1], [0], [0], [1], [0, 0, 1, 1], [], []>} : vector<32x32xbf16>, vector<32x128xbf16>, vector<32x128xf32> -> vector<32x128xf32>
      %c0_62 = arith.constant 0 : index
      %c0_63 = arith.constant 0 : index
      %173 = vector.load %arg4[%c0_62, %c0_63] : memref<1x128xf32, #tpu.memory_space<vmem>>, vector<1x128xf32>
      %174 = vector.broadcast %173 : vector<1x128xf32> to vector<32x128xf32>
      %175 = arith.addf %172, %174 : vector<32x128xf32>
      %cst_64 = arith.constant 0.000000e+00 : f32
      %176 = vector.broadcast %cst_64 : f32 to vector<32x128xf32>
      %177 = arith.maximumf %175, %176 : vector<32x128xf32>
      %178 = arith.truncf %177 : vector<32x128xf32> to vector<32x128xbf16>
      %c0_65 = arith.constant 0 : index
      %c0_66 = arith.constant 0 : index
      %179 = vector.load %arg5[%c0_65, %c0_66] : memref<128x128xbf16, #tpu.memory_space<vmem>>, vector<128x128xbf16>
      %cst_67 = arith.constant dense<0.000000e+00> : vector<32x128xf32>
      %180 = tpu.matmul %178, %179, %cst_67 {dimension_numbers = #tpu.dot_dimension_numbers<[1], [0], [0], [1], [0, 0, 1, 1], [], []>} : vector<32x128xbf16>, vector<128x128xbf16>, vector<32x128xf32> -> vector<32x128xf32>
      %c0_68 = arith.constant 0 : index
      %c0_69 = arith.constant 0 : index
      %181 = vector.load %arg6[%c0_68, %c0_69] : memref<1x128xf32, #tpu.memory_space<vmem>>, vector<1x128xf32>
      %182 = vector.broadcast %181 : vector<1x128xf32> to vector<32x128xf32>
      %183 = arith.addf %180, %182 : vector<32x128xf32>
      %c0_70 = arith.constant 0 : index
      %c0_71 = arith.constant 0 : index
      %184 = vector.load %arg13[%c0_70, %c0_71] : memref<32x128xf32, #tpu.memory_space<vmem>>, vector<32x128xf32>
      tpu.vector_store %arg13[%c0_70, %c0_71], %183 {strides = array<i32>} : memref<32x128xf32, #tpu.memory_space<vmem>>, vector<32x128xf32>,
    } else {
    }
    %c0 = arith.constant 0 : index
    %c0_1 = arith.constant 0 : index
    %c0_2 = arith.constant 0 : index
    %3 = vector.load %arg11[%c0, %c0_1, %c0_2] : memref<1x8x512xf32, #tpu.memory_space<vmem>>, vector<1x8x512xf32>
    %4 = vector.shape_cast %3 : vector<1x8x512xf32> to vector<8x512xf32>
    %5 = vector.extract_strided_slice %4 {offsets = [0, 0], sizes = [1, 384], strides = [1, 1]} : vector<8x512xf32> to vector<1x384xf32>
    %6 = vector.extract_strided_slice %4 {offsets = [1, 0], sizes = [1, 128], strides = [1, 1]} : vector<8x512xf32> to vector<1x128xf32>
    %7 = vector.extract_strided_slice %4 {offsets = [2, 0], sizes = [1, 128], strides = [1, 1]} : vector<8x512xf32> to vector<1x128xf32>
    %8 = vector.extract_strided_slice %4 {offsets = [3, 0], sizes = [1, 128], strides = [1, 1]} : vector<8x512xf32> to vector<1x128xf32>
    %9 = vector.extract_strided_slice %4 {offsets = [4, 0], sizes = [1, 128], strides = [1, 1]} : vector<8x512xf32> to vector<1x128xf32>
    %10 = vector.extract_strided_slice %4 {offsets = [5, 0], sizes = [1, 128], strides = [1, 1]} : vector<8x512xf32> to vector<1x128xf32>
    %11 = vector.extract_strided_slice %4 {offsets = [6, 0], sizes = [1, 512], strides = [1, 1]} : vector<8x512xf32> to vector<1x512xf32>
    %12 = vector.extract_strided_slice %4 {offsets = [7, 0], sizes = [1, 128], strides = [1, 1]} : vector<8x512xf32> to vector<1x128xf32>
    %c0_3 = arith.constant 0 : index
    %c0_4 = arith.constant 0 : index
    %13 = vector.load %arg13[%c0_3, %c0_4] : memref<32x128xf32, #tpu.memory_space<vmem>>, vector<32x128xf32>
    %cst = arith.constant dense<0.000000e+00> : vector<32xf32>
    %14 = vector.multi_reduction <add>, %13, %cst [1] : vector<32x128xf32> to vector<32xf32>
    %15 = vector.shape_cast %14 : vector<32xf32> to vector<32x1xf32>
    %cst_5 = arith.constant 1.280000e+02 : f32
    %16 = vector.broadcast %cst_5 : f32 to vector<32x1xf32>
    %17 = arith.divf %15, %16 : vector<32x1xf32>
    %18 = vector.broadcast %17 : vector<32x1xf32> to vector<32x128xf32>
    %19 = arith.subf %13, %18 : vector<32x128xf32>
    %20 = arith.mulf %19, %19 : vector<32x128xf32>
    %cst_6 = arith.constant dense<0.000000e+00> : vector<32xf32>
    %21 = vector.multi_reduction <add>, %20, %cst_6 [1] : vector<32x128xf32> to vector<32xf32>
    %22 = vector.shape_cast %21 : vector<32xf32> to vector<32x1xf32>
    %cst_7 = arith.constant 1.280000e+02 : f32
    %23 = vector.broadcast %cst_7 : f32 to vector<32x1xf32>
    %24 = arith.divf %22, %23 : vector<32x1xf32>
    %25 = vector.broadcast %17 : vector<32x1xf32> to vector<32x128xf32>
    %26 = arith.subf %13, %25 : vector<32x128xf32>
    %cst_8 = arith.constant 9.99999997E-7 : f32
    %27 = vector.broadcast %cst_8 : f32 to vector<32x1xf32>
    %28 = arith.addf %24, %27 : vector<32x1xf32>
    %29 = math.rsqrt %28 : vector<32x1xf32>
    %30 = vector.broadcast %29 : vector<32x1xf32> to vector<32x128xf32>
    %31 = arith.mulf %26, %30 : vector<32x128xf32>
    %32 = vector.broadcast %7 : vector<1x128xf32> to vector<32x128xf32>
    %33 = arith.mulf %31, %32 : vector<32x128xf32>
    %34 = vector.broadcast %8 : vector<1x128xf32> to vector<32x128xf32>
    %35 = arith.addf %33, %34 : vector<32x128xf32>
    %36 = arith.truncf %35 : vector<32x128xf32> to vector<32x128xbf16>
    %c0_9 = arith.constant 0 : index
    %c0_10 = arith.constant 0 : index
    %c0_11 = arith.constant 0 : index
    %37 = vector.load %arg7[%c0_9, %c0_10, %c0_11] : memref<1x128x384xbf16, #tpu.memory_space<vmem>>, vector<1x128x384xbf16>
    %38 = vector.shape_cast %37 : vector<1x128x384xbf16> to vector<128x384xbf16>
    %cst_12 = arith.constant dense<0.000000e+00> : vector<32x384xf32>
    %39 = tpu.matmul %36, %38, %cst_12 {dimension_numbers = #tpu.dot_dimension_numbers<[1], [0], [0], [1], [0, 0, 1, 1], [], []>} : vector<32x128xbf16>, vector<128x384xbf16>, vector<32x384xf32> -> vector<32x384xf32>
    %40 = vector.broadcast %5 : vector<1x384xf32> to vector<32x384xf32>
    %41 = arith.addf %39, %40 : vector<32x384xf32>
    %c0_13 = arith.constant 0 : index
    %c0_14 = arith.constant 0 : index
    %c0_15 = arith.constant 0 : index
    %c0_16 = arith.constant 0 : index
    %42 = vector.load %arg8[%c0_13, %c0_14, %c0_15, %c0_16] : memref<1x4x32x128xbf16, #tpu.memory_space<vmem>>, vector<1x4x32x128xbf16>
    %43 = vector.shape_cast %42 : vector<1x4x32x128xbf16> to vector<4x32x128xbf16>
    %44 = vector.extract_strided_slice %41 {offsets = [0, 0], sizes = [16, 384], strides = [1, 1]} : vector<32x384xf32> to vector<16x384xf32>
    %45 = vector.extract_strided_slice %44 {offsets = [0, 0], sizes = [16, 128], strides = [1, 1]} : vector<16x384xf32> to vector<16x128xf32>
    %cst_17 = arith.constant 0.176776692 : f32
    %46 = vector.broadcast %cst_17 : f32 to vector<16x128xf32>
    %47 = arith.mulf %45, %46 : vector<16x128xf32>
    %48 = vector.shape_cast %47 : vector<16x128xf32> to vector<16x4x32xf32>
    %49 = vector.extract_strided_slice %44 {offsets = [0, 128], sizes = [16, 128], strides = [1, 1]} : vector<16x384xf32> to vector<16x128xf32>
    %50 = vector.shape_cast %49 : vector<16x128xf32> to vector<16x4x32xf32>
    %51 = vector.extract_strided_slice %44 {offsets = [0, 256], sizes = [16, 128], strides = [1, 1]} : vector<16x384xf32> to vector<16x128xf32>
    %52 = vector.shape_cast %51 : vector<16x128xf32> to vector<16x4x32xf32>
    %53 = tpu.transpose %48, [1, 0, 2] : vector<16x4x32xf32> -> vector<4x16x32xf32>
    %54 = arith.truncf %53 : vector<4x16x32xf32> to vector<4x16x32xbf16>
    %55 = tpu.transpose %50, [1, 0, 2] : vector<16x4x32xf32> -> vector<4x16x32xf32>
    %56 = arith.truncf %55 : vector<4x16x32xf32> to vector<4x16x32xbf16>
    %57 = tpu.transpose %52, [1, 0, 2] : vector<16x4x32xf32> -> vector<4x16x32xf32>
    %58 = arith.truncf %57 : vector<4x16x32xf32> to vector<4x16x32xbf16>
    "tpu.trace_start"() <{level = 10 : i32, message = "hqd,hkd->hqk"}> : () -> ()
    %cst_18 = arith.constant dense<0.000000e+00> : vector<4x16x16xf32>
    %59 = tpu.matmul %54, %56, %cst_18 {dimension_numbers = #tpu.dot_dimension_numbers<[2], [2], [1], [1], [0, 0, 0, 1, 1, 1], [0], [0]>} : vector<4x16x32xbf16>, vector<4x16x32xbf16>, vector<4x16x16xf32> -> vector<4x16x16xf32>
    "tpu.trace_stop"() : () -> ()
    %cst_19 = arith.constant dense<0xFF800000> : vector<4x16xf32>
    %60 = vector.multi_reduction <maximumf>, %59, %cst_19 [2] : vector<4x16x16xf32> to vector<4x16xf32>
    %61 = vector.shape_cast %60 : vector<4x16xf32> to vector<4x16x1xf32>
    %62 = vector.broadcast %61 : vector<4x16x1xf32> to vector<4x16x16xf32>
    %63 = arith.subf %59, %62 : vector<4x16x16xf32>
    %64 = math.exp %63 : vector<4x16x16xf32>
    %cst_20 = arith.constant dense<0.000000e+00> : vector<4x16xf32>
    %65 = vector.multi_reduction <add>, %64, %cst_20 [2] : vector<4x16x16xf32> to vector<4x16xf32>
    %66 = vector.shape_cast %65 : vector<4x16xf32> to vector<4x16x1xf32>
    %67 = tpu.reciprocal %66 {approx = true} : vector<4x16x1xf32> -> vector<4x16x1xf32>
    %68 = vector.broadcast %67 : vector<4x16x1xf32> to vector<4x16x16xf32>
    %69 = arith.mulf %64, %68 : vector<4x16x16xf32>
    %70 = arith.truncf %69 : vector<4x16x16xf32> to vector<4x16x16xbf16>
    "tpu.trace_start"() <{level = 10 : i32, message = "hqk,hkd->hqd"}> : () -> ()
    %cst_21 = arith.constant dense<0.000000e+00> : vector<4x16x32xf32>
    %71 = tpu.matmul %70, %58, %cst_21 {dimension_numbers = #tpu.dot_dimension_numbers<[2], [1], [1], [2], [0, 0, 0, 1, 1, 2], [0], [0]>} : vector<4x16x16xbf16>, vector<4x16x32xbf16>, vector<4x16x32xf32> -> vector<4x16x32xf32>
    "tpu.trace_stop"() : () -> ()
    %72 = arith.truncf %71 : vector<4x16x32xf32> to vector<4x16x32xbf16>
    "tpu.trace_start"() <{level = 10 : i32, message = "hqd,hde->hqe"}> : () -> ()
    %cst_22 = arith.constant dense<0.000000e+00> : vector<4x16x128xf32>
    %73 = tpu.matmul %72, %43, %cst_22 {dimension_numbers = #tpu.dot_dimension_numbers<[2], [1], [1], [2], [0, 0, 0, 1, 1, 2], [0], [0]>} : vector<4x16x32xbf16>, vector<4x32x128xbf16>, vector<4x16x128xf32> -> vector<4x16x128xf32>
    "tpu.trace_stop"() : () -> ()
    %cst_23 = arith.constant dense<0.000000e+00> : vector<16x128xf32>
    %74 = vector.multi_reduction <add>, %73, %cst_23 [0] : vector<4x16x128xf32> to vector<16x128xf32>
    %75 = vector.broadcast %6 : vector<1x128xf32> to vector<16x128xf32>
    %76 = arith.addf %74, %75 : vector<16x128xf32>
    %77 = vector.extract_strided_slice %13 {offsets = [0, 0], sizes = [16, 128], strides = [1, 1]} : vector<32x128xf32> to vector<16x128xf32>
    %78 = arith.addf %77, %76 : vector<16x128xf32>
    %c0_24 = arith.constant 0 : index
    %c0_25 = arith.constant 0 : index
    %79 = vector.load %arg13[%c0_24, %c0_25] : memref<32x128xf32, #tpu.memory_space<vmem>>, vector<16x128xf32>
    tpu.vector_store %arg13[%c0_24, %c0_25], %78 {strides = array<i32>} : memref<32x128xf32, #tpu.memory_space<vmem>>, vector<16x128xf32>,
    %80 = vector.extract_strided_slice %41 {offsets = [16, 0], sizes = [16, 384], strides = [1, 1]} : vector<32x384xf32> to vector<16x384xf32>
    %81 = vector.extract_strided_slice %80 {offsets = [0, 0], sizes = [16, 128], strides = [1, 1]} : vector<16x384xf32> to vector<16x128xf32>
    %cst_26 = arith.constant 0.176776692 : f32
    %82 = vector.broadcast %cst_26 : f32 to vector<16x128xf32>
    %83 = arith.mulf %81, %82 : vector<16x128xf32>
    %84 = vector.shape_cast %83 : vector<16x128xf32> to vector<16x4x32xf32>
    %85 = vector.extract_strided_slice %80 {offsets = [0, 128], sizes = [16, 128], strides = [1, 1]} : vector<16x384xf32> to vector<16x128xf32>
    %86 = vector.shape_cast %85 : vector<16x128xf32> to vector<16x4x32xf32>
    %87 = vector.extract_strided_slice %80 {offsets = [0, 256], sizes = [16, 128], strides = [1, 1]} : vector<16x384xf32> to vector<16x128xf32>
    %88 = vector.shape_cast %87 : vector<16x128xf32> to vector<16x4x32xf32>
    %89 = tpu.transpose %84, [1, 0, 2] : vector<16x4x32xf32> -> vector<4x16x32xf32>
    %90 = arith.truncf %89 : vector<4x16x32xf32> to vector<4x16x32xbf16>
    %91 = tpu.transpose %86, [1, 0, 2] : vector<16x4x32xf32> -> vector<4x16x32xf32>
    %92 = arith.truncf %91 : vector<4x16x32xf32> to vector<4x16x32xbf16>
    %93 = tpu.transpose %88, [1, 0, 2] : vector<16x4x32xf32> -> vector<4x16x32xf32>
    %94 = arith.truncf %93 : vector<4x16x32xf32> to vector<4x16x32xbf16>
    "tpu.trace_start"() <{level = 10 : i32, message = "hqd,hkd->hqk"}> : () -> ()
    %cst_27 = arith.constant dense<0.000000e+00> : vector<4x16x16xf32>
    %95 = tpu.matmul %90, %92, %cst_27 {dimension_numbers = #tpu.dot_dimension_numbers<[2], [2], [1], [1], [0, 0, 0, 1, 1, 1], [0], [0]>} : vector<4x16x32xbf16>, vector<4x16x32xbf16>, vector<4x16x16xf32> -> vector<4x16x16xf32>
    "tpu.trace_stop"() : () -> ()
    %cst_28 = arith.constant dense<0xFF800000> : vector<4x16xf32>
    %96 = vector.multi_reduction <maximumf>, %95, %cst_28 [2] : vector<4x16x16xf32> to vector<4x16xf32>
    %97 = vector.shape_cast %96 : vector<4x16xf32> to vector<4x16x1xf32>
    %98 = vector.broadcast %97 : vector<4x16x1xf32> to vector<4x16x16xf32>
    %99 = arith.subf %95, %98 : vector<4x16x16xf32>
    %100 = math.exp %99 : vector<4x16x16xf32>
    %cst_29 = arith.constant dense<0.000000e+00> : vector<4x16xf32>
    %101 = vector.multi_reduction <add>, %100, %cst_29 [2] : vector<4x16x16xf32> to vector<4x16xf32>
    %102 = vector.shape_cast %101 : vector<4x16xf32> to vector<4x16x1xf32>
    %103 = tpu.reciprocal %102 {approx = true} : vector<4x16x1xf32> -> vector<4x16x1xf32>
    %104 = vector.broadcast %103 : vector<4x16x1xf32> to vector<4x16x16xf32>
    %105 = arith.mulf %100, %104 : vector<4x16x16xf32>
    %106 = arith.truncf %105 : vector<4x16x16xf32> to vector<4x16x16xbf16>
    "tpu.trace_start"() <{level = 10 : i32, message = "hqk,hkd->hqd"}> : () -> ()
    %cst_30 = arith.constant dense<0.000000e+00> : vector<4x16x32xf32>
    %107 = tpu.matmul %106, %94, %cst_30 {dimension_numbers = #tpu.dot_dimension_numbers<[2], [1], [1], [2], [0, 0, 0, 1, 1, 2], [0], [0]>} : vector<4x16x16xbf16>, vector<4x16x32xbf16>, vector<4x16x32xf32> -> vector<4x16x32xf32>
    "tpu.trace_stop"() : () -> ()
    %108 = arith.truncf %107 : vector<4x16x32xf32> to vector<4x16x32xbf16>
    "tpu.trace_start"() <{level = 10 : i32, message = "hqd,hde->hqe"}> : () -> ()
    %cst_31 = arith.constant dense<0.000000e+00> : vector<4x16x128xf32>
    %109 = tpu.matmul %108, %43, %cst_31 {dimension_numbers = #tpu.dot_dimension_numbers<[2], [1], [1], [2], [0, 0, 0, 1, 1, 2], [0], [0]>} : vector<4x16x32xbf16>, vector<4x32x128xbf16>, vector<4x16x128xf32> -> vector<4x16x128xf32>
    "tpu.trace_stop"() : () -> ()
    %cst_32 = arith.constant dense<0.000000e+00> : vector<16x128xf32>
    %110 = vector.multi_reduction <add>, %109, %cst_32 [0] : vector<4x16x128xf32> to vector<16x128xf32>
    %111 = vector.broadcast %6 : vector<1x128xf32> to vector<16x128xf32>
    %112 = arith.addf %110, %111 : vector<16x128xf32>
    %113 = vector.extract_strided_slice %13 {offsets = [16, 0], sizes = [16, 128], strides = [1, 1]} : vector<32x128xf32> to vector<16x128xf32>
    %114 = arith.addf %113, %112 : vector<16x128xf32>
    %c16 = arith.constant 16 : index
    %c0_33 = arith.constant 0 : index
    %115 = vector.load %arg13[%c16, %c0_33] : memref<32x128xf32, #tpu.memory_space<vmem>>, vector<16x128xf32>
    tpu.vector_store %arg13[%c16, %c0_33], %114 {strides = array<i32>} : memref<32x128xf32, #tpu.memory_space<vmem>>, vector<16x128xf32>,
    %c0_34 = arith.constant 0 : index
    %c0_35 = arith.constant 0 : index
    %116 = vector.load %arg13[%c0_34, %c0_35] : memref<32x128xf32, #tpu.memory_space<vmem>>, vector<32x128xf32>
    %cst_36 = arith.constant dense<0.000000e+00> : vector<32xf32>
    %117 = vector.multi_reduction <add>, %116, %cst_36 [1] : vector<32x128xf32> to vector<32xf32>
    %118 = vector.shape_cast %117 : vector<32xf32> to vector<32x1xf32>
    %cst_37 = arith.constant 1.280000e+02 : f32
    %119 = vector.broadcast %cst_37 : f32 to vector<32x1xf32>
    %120 = arith.divf %118, %119 : vector<32x1xf32>
    %121 = vector.broadcast %120 : vector<32x1xf32> to vector<32x128xf32>
    %122 = arith.subf %116, %121 : vector<32x128xf32>
    %123 = arith.mulf %122, %122 : vector<32x128xf32>
    %cst_38 = arith.constant dense<0.000000e+00> : vector<32xf32>
    %124 = vector.multi_reduction <add>, %123, %cst_38 [1] : vector<32x128xf32> to vector<32xf32>
    %125 = vector.shape_cast %124 : vector<32xf32> to vector<32x1xf32>
    %cst_39 = arith.constant 1.280000e+02 : f32
    %126 = vector.broadcast %cst_39 : f32 to vector<32x1xf32>
    %127 = arith.divf %125, %126 : vector<32x1xf32>
    %128 = vector.broadcast %120 : vector<32x1xf32> to vector<32x128xf32>
    %129 = arith.subf %116, %128 : vector<32x128xf32>
    %cst_40 = arith.constant 9.99999997E-7 : f32
    %130 = vector.broadcast %cst_40 : f32 to vector<32x1xf32>
    %131 = arith.addf %127, %130 : vector<32x1xf32>
    %132 = math.rsqrt %131 : vector<32x1xf32>
    %133 = vector.broadcast %132 : vector<32x1xf32> to vector<32x128xf32>
    %134 = arith.mulf %129, %133 : vector<32x128xf32>
    %135 = vector.broadcast %9 : vector<1x128xf32> to vector<32x128xf32>
    %136 = arith.mulf %134, %135 : vector<32x128xf32>
    %137 = vector.broadcast %10 : vector<1x128xf32> to vector<32x128xf32>
    %138 = arith.addf %136, %137 : vector<32x128xf32>
    %139 = arith.truncf %138 : vector<32x128xf32> to vector<32x128xbf16>
    %c0_41 = arith.constant 0 : index
    %c0_42 = arith.constant 0 : index
    %c0_43 = arith.constant 0 : index
    %140 = vector.load %arg9[%c0_41, %c0_42, %c0_43] : memref<1x128x512xbf16, #tpu.memory_space<vmem>>, vector<1x128x512xbf16>
    %141 = vector.shape_cast %140 : vector<1x128x512xbf16> to vector<128x512xbf16>
    %cst_44 = arith.constant dense<0.000000e+00> : vector<32x512xf32>
    %142 = tpu.matmul %139, %141, %cst_44 {dimension_numbers = #tpu.dot_dimension_numbers<[1], [0], [0], [1], [0, 0, 1, 1], [], []>} : vector<32x128xbf16>, vector<128x512xbf16>, vector<32x512xf32> -> vector<32x512xf32>
    %143 = vector.broadcast %11 : vector<1x512xf32> to vector<32x512xf32>
    %144 = arith.addf %142, %143 : vector<32x512xf32>
    %cst_45 = arith.constant 5.000000e-01 : f32
    %145 = vector.broadcast %cst_45 : f32 to vector<32x512xf32>
    %146 = arith.mulf %145, %144 : vector<32x512xf32>
    %cst_46 = arith.constant 4.471500e-02 : f32
    %147 = vector.broadcast %cst_46 : f32 to vector<32x512xf32>
    %148 = arith.mulf %147, %144 : vector<32x512xf32>
    %149 = arith.mulf %148, %144 : vector<32x512xf32>
    %150 = arith.mulf %149, %144 : vector<32x512xf32>
    %151 = arith.addf %144, %150 : vector<32x512xf32>
    %cst_47 = arith.constant 0.797884583 : f32
    %152 = vector.broadcast %cst_47 : f32 to vector<32x512xf32>
    %153 = arith.mulf %152, %151 : vector<32x512xf32>
    %154 = math.tanh %153 : vector<32x512xf32>
    %cst_48 = arith.constant 1.000000e+00 : f32
    %155 = vector.broadcast %cst_48 : f32 to vector<32x512xf32>
    %156 = arith.addf %155, %154 : vector<32x512xf32>
    %157 = arith.mulf %146, %156 : vector<32x512xf32>
    %158 = arith.truncf %157 : vector<32x512xf32> to vector<32x512xbf16>
    %c0_49 = arith.constant 0 : index
    %c0_50 = arith.constant 0 : index
    %c0_51 = arith.constant 0 : index
    %159 = vector.load %arg10[%c0_49, %c0_50, %c0_51] : memref<1x512x128xbf16, #tpu.memory_space<vmem>>, vector<1x512x128xbf16>
    %160 = vector.shape_cast %159 : vector<1x512x128xbf16> to vector<512x128xbf16>
    %cst_52 = arith.constant dense<0.000000e+00> : vector<32x128xf32>
    %161 = tpu.matmul %158, %160, %cst_52 {dimension_numbers = #tpu.dot_dimension_numbers<[1], [0], [0], [1], [0, 0, 1, 1], [], []>} : vector<32x512xbf16>, vector<512x128xbf16>, vector<32x128xf32> -> vector<32x128xf32>
    %162 = vector.broadcast %12 : vector<1x128xf32> to vector<32x128xf32>
    %163 = arith.addf %161, %162 : vector<32x128xf32>
    %164 = arith.addf %116, %163 : vector<32x128xf32>
    %c0_53 = arith.constant 0 : index
    %c0_54 = arith.constant 0 : index
    %165 = vector.load %arg13[%c0_53, %c0_54] : memref<32x128xf32, #tpu.memory_space<vmem>>, vector<32x128xf32>
    tpu.vector_store %arg13[%c0_53, %c0_54], %164 {strides = array<i32>} : memref<32x128xf32, #tpu.memory_space<vmem>>, vector<32x128xf32>,
    %c3_i32 = arith.constant 3 : i32
    %166 = arith.cmpi eq, %arg1, %c3_i32 : i32
    %167 = arith.extui %166 : i1 to i32
    %c0_i32_55 = arith.constant 0 : i32
    %168 = arith.cmpi ne, %167, %c0_i32_55 : i32
    scf.if %168 {
      %c0_56 = arith.constant 0 : index
      %c0_57 = arith.constant 0 : index
      %169 = vector.load %arg13[%c0_56, %c0_57] : memref<32x128xf32, #tpu.memory_space<vmem>>, vector<32x128xf32>
      %170 = vector.shape_cast %169 : vector<32x128xf32> to vector<2x16x128xf32>
      %cst_58 = arith.constant dense<0.000000e+00> : vector<2x128xf32>
      %171 = vector.multi_reduction <add>, %170, %cst_58 [1] : vector<2x16x128xf32> to vector<2x128xf32>
      %172 = vector.shape_cast %171 : vector<2x128xf32> to vector<2x1x128xf32>
      %cst_59 = arith.constant 1.600000e+01 : f32
      %173 = vector.broadcast %cst_59 : f32 to vector<2x1x128xf32>
      %174 = arith.divf %172, %173 : vector<2x1x128xf32>
      %c0_60 = arith.constant 0 : index
      %c0_61 = arith.constant 0 : index
      %c0_62 = arith.constant 0 : index
      %175 = vector.load %arg12[%c0_60, %c0_61, %c0_62] : memref<2x1x128xf32, #tpu.memory_space<vmem>>, vector<2x1x128xf32>
      tpu.vector_store %arg12[%c0_60, %c0_61, %c0_62], %174 {strides = array<i32>} : memref<2x1x128xf32, #tpu.memory_space<vmem>>, vector<2x1x128xf32>,
    } else {
    }
    return
  }
  func.func @transform_0(%arg0: i32, %arg1: i32) -> (i32, i32, i32) {
    %c0_i32 = arith.constant 0 : i32
    %c0_i32_0 = arith.constant 0 : i32
    %c0_i32_1 = arith.constant 0 : i32
    return %arg0, %c0_i32, %c0_i32_0 : i32, i32, i32
  }
  func.func @transform_1(%arg0: i32, %arg1: i32) -> (i32, i32) {
    %c0_i32 = arith.constant 0 : i32
    %c0_i32_0 = arith.constant 0 : i32
    %c0_i32_1 = arith.constant 0 : i32
    return %c0_i32, %c0_i32_0 : i32, i32
  }
  func.func @transform_2(%arg0: i32, %arg1: i32) -> (i32, i32) {
    %c0_i32 = arith.constant 0 : i32
    %c0_i32_0 = arith.constant 0 : i32
    %c0_i32_1 = arith.constant 0 : i32
    return %c0_i32, %c0_i32_0 : i32, i32
  }
  func.func @transform_3(%arg0: i32, %arg1: i32) -> (i32, i32) {
    %c0_i32 = arith.constant 0 : i32
    %c0_i32_0 = arith.constant 0 : i32
    %c0_i32_1 = arith.constant 0 : i32
    return %c0_i32, %c0_i32_0 : i32, i32
  }
  func.func @transform_4(%arg0: i32, %arg1: i32) -> (i32, i32) {
    %c0_i32 = arith.constant 0 : i32
    %c0_i32_0 = arith.constant 0 : i32
    %c0_i32_1 = arith.constant 0 : i32
    return %c0_i32, %c0_i32_0 : i32, i32
  }
  func.func @transform_5(%arg0: i32, %arg1: i32) -> (i32, i32, i32) {
    %c0_i32 = arith.constant 0 : i32
    %c0_i32_0 = arith.constant 0 : i32
    %c0_i32_1 = arith.constant 0 : i32
    return %arg1, %c0_i32, %c0_i32_0 : i32, i32, i32
  }
  func.func @transform_6(%arg0: i32, %arg1: i32) -> (i32, i32, i32, i32) {
    %c0_i32 = arith.constant 0 : i32
    %c0_i32_0 = arith.constant 0 : i32
    %c0_i32_1 = arith.constant 0 : i32
    %c0_i32_2 = arith.constant 0 : i32
    return %arg1, %c0_i32, %c0_i32_0, %c0_i32_1 : i32, i32, i32, i32
  }
  func.func @transform_7(%arg0: i32, %arg1: i32) -> (i32, i32, i32) {
    %c0_i32 = arith.constant 0 : i32
    %c0_i32_0 = arith.constant 0 : i32
    %c0_i32_1 = arith.constant 0 : i32
    return %arg1, %c0_i32, %c0_i32_0 : i32, i32, i32
  }
  func.func @transform_8(%arg0: i32, %arg1: i32) -> (i32, i32, i32) {
    %c0_i32 = arith.constant 0 : i32
    %c0_i32_0 = arith.constant 0 : i32
    %c0_i32_1 = arith.constant 0 : i32
    return %arg1, %c0_i32, %c0_i32_0 : i32, i32, i32
  }
  func.func @transform_9(%arg0: i32, %arg1: i32) -> (i32, i32, i32) {
    %c0_i32 = arith.constant 0 : i32
    %c0_i32_0 = arith.constant 0 : i32
    %c0_i32_1 = arith.constant 0 : i32
    return %arg1, %c0_i32, %c0_i32_0 : i32, i32, i32
  }
  func.func @transform_10(%arg0: i32, %arg1: i32) -> (i32, i32, i32) {
    %c0_i32 = arith.constant 0 : i32
    %c0_i32_0 = arith.constant 0 : i32
    %c0_i32_1 = arith.constant 0 : i32
    return %arg0, %c0_i32, %c0_i32_0 : i32, i32, i32
  }
}

</mosaic_0001>

<bundles_post_ra>
// kernel: mowen_forward.1
= control target key start
LH: loop header
LB: loop body
LE: loop exit
PB: predicated region body
PF: predicated region fallthrough
CT: control target
= control target key end

     0   :  { %s7543_s0 = inlined_call_operand.vmem [shape: bf16[2,16,32], index: 0, kind: input, shape index: {}]   ;;  %s7544_s1 = inlined_call_operand.vmem [shape: bf16[32,128], index: 1, kind: input, shape index: {}]   ;;  %s7545_s2 = inlined_call_operand.vmem [shape: f32[1,128], index: 2, kind: input, shape index: {}]   ;;  %s7546_s3 = inlined_call_operand.vmem [shape: bf16[128,128], index: 3, kind: input, shape index: {}]   ;;  %s7547_s4 = inlined_call_operand.vmem [shape: f32[1,128], index: 4, kind: input, shape index: {}]   ;;  %s7548_s5 = inlined_call_operand.hbm [shape: bf16[4,128,384], index: 5, kind: input, shape index: {}]   ;;  %s7549_s6 = inlined_call_operand.vmem [shape: bf16[4,4,32,128], index: 6, kind: input, shape index: {}]   ;;  %s7550_s7 = inlined_call_operand.vmem [shape: bf16[4,128,512], index: 7, kind: input, shape index: {}]   ;;  %s7551_s8 = inlined_call_operand.hbm [shape: bf16[4,512,128], index: 8, kind: input, shape index: {}]   ;;  %s7552_s9 = inlined_call_operand.vmem [shape: f32[4,8,512], index: 9, kind: input, shape index: {}]   ;;  %s7553_s10 = inlined_call_operand.hbm [shape: f32[2,1,128], index: 10, kind: output, shape index: {}]  }
   0x1   :  { %7557 = sst [smem:[#allocation15_spill]] %s7548_s5 }
   0x2   :  { %7558 = sst [smem:[#allocation16_spill]] %s7553_s10 }
   0x3   :  { %15 = vsyncpa [#allocation4], 0 }
   0x4   :  { %17 = vsyncpa [#allocation4 + $0x1], 0 }
   0x5   :  { %18 = vsyncpa [#allocation7], 0 }
   0x6   :  { %20 = vsyncpa [#allocation7 + $0x1], 0 }
   0x7   :  { %21 = vsyncpa [#allocation5], 0  ;;  %s6378_s13 = smov 0   ;;  %s6380_s14 = smov 0  }
   0x8   :  { %s6382_s15 = smov 0   ;;  %s6384_s16 = smov 0  }
   0x9   :  { %s6386_s17 = smov 0   ;;  %s6388_s18 = smov 0  }
   0xa LB: > { %7559 = sst [smem:[#allocation12_spill]] %s6292_s15  ;;  %s7554_s19 = sadd.s32 4294967295, %s6304_s18   ;;  %s6304_s18 = sphi %s6388_s18, %s27_s18   ;;  %s6300_s17 = sphi %s6386_s17, %s7575_s17   ;;  %s6296_s16 = sphi %s6384_s16, %s7574_s16   ;;  %s6292_s15 = sphi %s6382_s15, %s7570_s15   ;;  %s6288_s14 = sphi %s6380_s14, %s7573_s14   ;;  %s6284_s13 = sphi %s6378_s13, %s7572_s13  }
   0xb   : > { %s36_s20 = sadd.s32 1, %s6300_s17  ;;  %s156_s21 = sadd.s32 1, %s6292_s15 }
   0xc   : > { %p37_p0 = scmp.ge.s32.totalorder %s36_s20, 4  ;;  %p163_p1 = scmp.ne.s32.totalorder %s6292_s15, %s6288_s14 }
   0xd   : > { %p164_p2 = scmp.eq.s32.totalorder %s6304_s18, 0  ;;  %p169_p4 = scmp.ne.s32.totalorder %s6288_s14, %s6284_s13 }
   0xe   : > { %s7577_s20 = smov (%p37_p0, %s36_s20), 0  ;;  %p170_p5 = scmp.eq.s32.totalorder %s7554_s19, 0 }
   0xf   : > { %7560 = sst [smem:[#allocation13_spill]] %s7577_s20  ;;  %p165_p3 = por %p164_p2, %p163_p1 }
  0x10   : > { %s153_s22 = ssub.s32 %s6300_s17, %s7577_s20  ;;  %p6419_p7 = por %p170_p5, %p169_p4 }
  0x11   : > { %p154_p6 = scmp.eq.s32.totalorder %s153_s22, 0  ;;  %p5848_p8 = scmp.lt.s32.totalorder %s6304_s18, 4 }
  0x12   : > { %s6428_s25 = sand.u32 1, %s6292_s15   ;;  %s5831_s26 = smul.u32 3072, %s6300_s17 }
  0x13   : > { %s6425_s24 = scalar_select %p154_p6, %s6292_s15, %s156_s21  }
  0x14   : > { %s5830_s27 = smul.u32 192, %s6428_s25  ;;  %s7563_s5 = sld [smem:[#allocation15_spill]] }
  0x15   : > { %7562 = sst [smem:[#allocation14_spill]] %s6425_s24  ;;  %p6435_p9 = pnand %p5848_p8, %p165_p3 }
  0x16   : > { %s349_s12 = scalar_lea.vmem [#allocation3], %s5830_s27  ;;  %s346_s21 = scalar_lea.sflag [#allocation4], %s6428_s25 }
  0x17   : > { %s356_s13 = sshll.u32 %s349_s12, 4  ;;  %p6168_p10 = pneg %p6435_p9  ;;  %s357_s13 = int_to_ptr.vmem [resolvable:$true] %s356_s13 }
  0x18   : > { %s6179_s22 = scalar_lea.vmem %s357_s13, 3072  ;;  %s6306_s28 = smov [#allocation3]  }
  0x19   : > { %p6180_p11 = scmp.ne.s32.totalorder %s357_s13, %s6179_s22 }
  0x1a   : > { %s355_s30 = scalar_lea.hbm %s7563_s5, %s5831_s26  ;;  %s6184_s26 = sshll.u32 %s6306_s28, 4  ;;  %s6185_s26 = int_to_ptr.vmem [resolvable:$false] %s6184_s26 }
  0x1b   : > { %p6182_p12 = pnand %p6180_p11, %p6168_p10  ;;  %s6186_s29 = scalar_lea.vmem %s6185_s26, 6144 }
  0x1c   : > { %p6187_p0 = scmp.lt.s32.totalorder %s357_s13, %s6185_s26  ;;  %p6188_p1 = scmp.lt.s32.totalorder %s6186_s29, %s6179_s22 }
  0x1d   : > { %p6183_p13 = pneg %p6182_p12 }
  0x1e   : > { %p6189_p2 = por %p6188_p1, %p6187_p0 }
  0x20   : > { %p6190_p3 = pnand %p6189_p2, %p6183_p13 }
  0x22   : > { %6193 = shalt.err (!%p6190_p3)
}
  0x23   : > { %s6307_s27 = smov 192   ;;  %s6308_s12 = smov 12  }
  0x24   : > { %5844 = dma.hbm_to_vmem [thread:$0]  (!%p6435_p9), %s355_s30, 3072, %s357_s13, %s346_s21, %s6307_s27, %s6307_s27, %s6308_s12  }
  0x25   : > { %p5308_p4 = scmp.ge.s32.totalorder %s6304_s18, 1  ;;  %p409_p5 = scmp.lt.s32.totalorder %s6304_s18, 5 }
  0x26   : > { %s5305_s28 = sshll.u32 %s6428_s25, 8  ;;  %s5482_s22 = sshll.u32 %s6300_s17, 12 }
  0x27   : > { %p6450_p6 = pnand %p5308_p4, %p409_p5  ;;  %s386_s29 = scalar_lea.vmem [#allocation6], %s5305_s28 }
  0x28   : > { %s393_s19 = sshll.u32 %s386_s29, 4  ;;  %s392_s24 = scalar_lea.hbm %s7551_s8, %s5482_s22  ;;  %s394_s19 = int_to_ptr.vmem [resolvable:$true] %s393_s19 }
  0x29   : > { %s383_s15 = scalar_lea.sflag [#allocation7], %s6428_s25  ;;  %s6207_s10 = scalar_lea.vmem %s394_s19, 4096 }
  0x2a   : > { %p6208_p8 = scmp.ne.s32.totalorder %s394_s19, %s6207_s10  ;;  %s6309_s30 = smov [#allocation6]  }
  0x2b   : > { %s6212_s13 = sshll.u32 %s6309_s30, 4  ;;  %s6213_s13 = int_to_ptr.vmem [resolvable:$false] %s6212_s13 }
  0x2c   : > { %p6210_p11 = pnand %p6208_p8, %p6168_p10  ;;  %s6214_s21 = scalar_lea.vmem %s6213_s13, 8192 }
  0x2d   : > { %p6215_p13 = scmp.lt.s32.totalorder %s394_s19, %s6213_s13  ;;  %p6216_p0 = scmp.lt.s32.totalorder %s6214_s21, %s6207_s10 }
  0x2e   : > { %p6211_p12 = pneg %p6210_p11 }
  0x2f   : > { %p6217_p1 = por %p6216_p0, %p6215_p13 }
  0x31   : > { %p6218_p2 = pnand %p6217_p1, %p6211_p12 }
  0x33   : > { %6221 = shalt.err (!%p6218_p2)
}
  0x34   : > { %s6310_s27 = smov 64   ;;  %s6311_s5 = smov 4  }
  0x35   : > { %5847 = dma.hbm_to_vmem [thread:$0]  (!%p6435_p9), %s392_s24, 4096, %s394_s19, %s383_s15, %s6310_s27, %s6310_s27, %s6311_s5  }
  0x36   : > { %413 = sbr.rel (%p6450_p6) target bundleno = 3706 (0xe7a), region = 60  ;;  %s415_s20 = sand.u32 (!%p6450_p6), 1, %s6288_s14  }
  0x37   : > { %s5832_s25 = smul.u32 (!%p6450_p6), 192, %s415_s20  ;;  %s416_s12 = scalar_lea.sflag (!%p6450_p6), [#allocation4], %s415_s20 }
  0x39   : > { %s6467_s28 = scalar_lea.vmem (!%p6450_p6), [#allocation3], %s5832_s25 }
  0x3b   : > { %6271 = dma.done.wait (%p6419_p7), %s416_s12, 3072  }
  0x3c   : > { %6273 = vsyncadd (%p6419_p7), %s416_s12, 4294964224  ;;  %s5309_s10 = sshll.u32 %s415_s20, 8  ;;  %s425_s22 = scalar_lea.sflag [#allocation7], %s415_s20 }
  0x3d   : > { %s6473_s11 = scalar_lea.vmem [#allocation6], %s5309_s10 }
  0x3e   : > { %6275 = dma.done.wait (%p6419_p7), %s425_s22, 4096  }
  0x3f   : > { %6277 = vsyncadd (%p6419_p7), %s425_s22, 4294963200  ;;  %p493_p9 = scmp.lt.s32.totalorder %s6296_s16, 3  ;;  %p5316_p7 = scmp.ne.s32.totalorder %s6296_s16, 0 }
  0x41   : > { %s494_s15 = scalar_select %p493_p9, %s6296_s16, 3 }
  0x42   : > { %513 = sbr.rel (%p5316_p7) target bundleno = 488 (0x1e8), region = 72 }
  0x43   : > { %s5483_s19 = sshll.u32 %s494_s15, 6  ;;  %s5484_s24 = sshll.u32 %s494_s15, 8 }
  0x44   : > { %s6484_s30 = scalar_lea.vmem %s7549_s6, %s5483_s19  ;;  %s6489_s27 = scalar_lea.vmem %s7550_s7, %s5484_s24 }
  0x45   : > { %s5485_s5 = sshll.u32 %s494_s15, 5 }
  0x46   : > { %s6494_s25 = scalar_lea.vmem %s7552_s9, %s5485_s5 }
  0x47   : > { %v5914_v0 = vld [vmem:[%s7544_s1 + $0x8] sm:$0xff]   ;;  %v5915_v1 = vld [vmem:[%s7544_s1] sm:$0xff]   ;;  %vm551_vm0 = vcmask 261120   ;;  %v5918_v3 = vld [vmem:[%s7546_s3 + $0x38] sm:$0xff]  }
  0x48   : > { %5622 = vmatprep.subr.bf16.mxu0 %v5914_v0  ;;  %v5916_v2 = vld [vmem:[%s7543_s0] sm:$0xff]   ;;  %v5919_v4 = vld [vmem:[%s7546_s3 + $0x30] sm:$0xff]   ;;  %v5917_v5 = vld [vmem:[%s7543_s0 + $0x8] sm:$0xff]   ;;  %5630 = vmatprep.subr.bf16.mxu1 %v5918_v3 }
  0x49   : > { %5623 = vmatpush3.bf16.msra.mxu0 %v5914_v0  ;;  %5626 = vmatprep.mubr.msk.bf16.mxu0 %vm551_vm0, %v5916_v2  ;;  %v5920_v6 = vld [vmem:[%s7546_s3 + $0x28] sm:$0xff]   ;;  %v5921_v7 = vld [vmem:[%s7546_s3 + $0x20] sm:$0xff]   ;;  %v5922_v8 = vld [vmem:[%s7546_s3 + $0x18] sm:$0xff]  }
  0x4a   : > { %5624 = vmatprep.subr.bf16.mxu0 %v5915_v1  ;;  %5631 = vmatpush3.bf16.msra.mxu1 %v5918_v3  ;;  %v5923_v9 = vld [vmem:[%s7546_s3 + $0x10] sm:$0xff]   ;;  %v5924_v10 = vld [vmem:[%s7546_s3 + $0x8] sm:$0xff]   ;;  %v5925_v11 = vld [vmem:[%s7546_s3] sm:$0xff]  }
  0x4b   : > { %5632 = vmatprep.subr.bf16.mxu1 %v5919_v4  ;;  %v5317_v14 = vld [vmem:[%s7545_s2] ss:$0 sm:$0xff] }
  0x4c   : > { %v5324_v27 = vld [vmem:[%s7547_s4] ss:$0 sm:$0xff] }
  0x4d   : > { %5625 = vmatpush3.bf16.msra.mxu0 %v5915_v1 }
  0x4e   : > { %5633 = vmatpush3.bf16.msra.mxu1 %v5919_v4 }
  0x4f   : > { %5634 = vmatprep.subr.bf16.mxu1 %v5920_v6 }
  0x50   : > { %5627 = vmatmul.mubr.msk.bf16.vlgmr.msra.gmra.mxu0 %vm551_vm0, %v5917_v5 }
  0x52   : > { %5635 = vmatpush3.bf16.msra.mxu1 %v5920_v6 }
  0x53   : > { %5636 = vmatprep.subr.bf16.mxu1 %v5921_v7 }
  0x56   : > { %5637 = vmatpush3.bf16.msra.mxu1 %v5921_v7 }
  0x57   : > { %5638 = vmatprep.subr.bf16.mxu1 %v5922_v8 }
  0x5a   : > { %5639 = vmatpush3.bf16.msra.mxu1 %v5922_v8 }
  0x5b   : > { %5640 = vmatprep.subr.bf16.mxu1 %v5923_v9 }
  0x5e   : > { %5641 = vmatpush3.bf16.msra.mxu1 %v5923_v9 }
  0x5f   : > { %5642 = vmatprep.subr.bf16.mxu1 %v5924_v10 }
  0x62   : > { %5643 = vmatpush3.bf16.msra.mxu1 %v5924_v10 }
  0x63   : > { %5644 = vmatprep.subr.bf16.mxu1 %v5925_v11 }
  0x66   : > { %5645 = vmatpush3.bf16.msra.mxu1 %v5925_v11 }
 0x110   : > { %v5628_v12 = vpop.f32.mrf.mxu0 }
 0x111   : > { %v601_v18 = vadd.f32 %v5628_v12, %v5317_v14 }
 0x112   : > { %v592_v13 = vpop.f32.mrf.mxu0 }
 0x113   : > { %v593_v16 = vadd.f32 %v5317_v14, %v592_v13  ;;  %v609_v24 = vmax.f32 %v601_v18, 0.0 }
 0x114   : > { %v5629_v15 = vpop.f32.mrf.mxu0 }
 0x115   : > { %v604_v17 = vadd.f32 %v5629_v15, %v5317_v14  ;;  %v607_v22 = vmax.f32 %v593_v16, 0.0 }
 0x116   : > { %v595_v19 = vpop.f32.mrf.mxu0 }
 0x117   : > { %v596_v20 = vadd.f32 %v5317_v14, %v595_v19  ;;  %v610_v21 = vmax.f32 %v604_v17, 0.0 }
 0x119   : > { %v608_v23 = vmax.f32 %v596_v20, 0.0  ;;  %v612_v26 = vpack.c.bf16 %v610_v21, %v609_v24 }
 0x11b   : > { %v611_v25 = vpack.c.bf16 %v608_v23, %v607_v22 }
 0x11d   : > { %5646 = vmatprep.mubr.bf16.mxu1 %v611_v25 }
 0x11e   : > { %5647 = vmatmul.mubr.bf16.vlgmr.msra.gmra.mxu1 %v612_v26 }
 0x1de   : > { %v5648_v28 = vpop.f32.mrf.mxu1 }
 0x1df   : > { %v727_v29 = vadd.f32 %v5648_v28, %v5324_v27 }
 0x1e0   : > { %v718_v30 = vpop.f32.mrf.mxu1 }
 0x1e1   : > { %735 = vst [vmem:[#allocation2 + $0x18] sm:$0xff] %v727_v29  ;;  %v719_v31 = vadd.f32 %v5324_v27, %v718_v30 }
 0x1e2   : > { %v5649_v32 = vpop.f32.mrf.mxu1 }
 0x1e3   : > { %733 = vst [vmem:[#allocation2 + $0x10] sm:$0xff] %v719_v31  ;;  %v730_v33 = vadd.f32 %v5649_v32, %v5324_v27 }
 0x1e4   : > { %v721_v34 = vpop.f32.mrf.mxu1 }
 0x1e5   : > { %736 = vst [vmem:[#allocation2 + $0x8] sm:$0xff] %v730_v33  ;;  %v722_v35 = vadd.f32 %v5324_v27, %v721_v34 }
 0x1e7   : > { %734 = vst [vmem:[#allocation2] sm:$0xff] %v722_v35 }
 0x1e8 PF: > { %v743_v38 = vld [vmem:[#allocation2 + $0x18] sm:$0xff]  ;;  %v5928_v40 = vld [vmem:[%s6467_s28 + $0xa8] ss:$12 sps:$4 sm:$0xff]   ;;  %v5935_v54 = vld [vmem:[%s6467_s28 + $0x64] ss:$12 sps:$4 sm:$0xff]   ;;  %v6312_v59 = vmov 0   ;;  %v790_v13 = vlaneseq }
 0x1e9   : > { %v5926_v39 = vld [vmem:[%s6467_s28 + $0xac] ss:$12 sps:$4 sm:$0xff]   ;;  %v5929_v50 = vld [vmem:[%s6467_s28 + $0x94] ss:$12 sps:$4 sm:$0xff]   ;;  %v5931_v51 = vld [vmem:[%s6467_s28 + $0x90] ss:$12 sps:$4 sm:$0xff]   ;;  %1012 = vmatprep.mubr.bf16.mxu0 %v6312_v59 }
 0x1ea   : > { %v741_v36 = vld [vmem:[#allocation2 + $0x10] sm:$0xff]  ;;  %980 = vmatprep.subr.bf16.mxu0 %v5926_v39  ;;  %v5932_v52 = vld [vmem:[%s6467_s28 + $0x7c] ss:$12 sps:$4 sm:$0xff]   ;;  %v5934_v53 = vld [vmem:[%s6467_s28 + $0x78] ss:$12 sps:$4 sm:$0xff]   ;;  %v6570_v17 = vshrl.u32 %v790_v13, 7 }
 0x1eb   : > { %745 = vadd.xlane.f32.xlu0 %v741_v36  ;;  %981 = vmatpush1.bf16.msra.mxu0 %v5928_v40  ;;  %v5937_v55 = vld [vmem:[%s6467_s28 + $0x60] ss:$12 sps:$4 sm:$0xff]   ;;  %v5940_v57 = vld [vmem:[%s6467_s28 + $0x48] ss:$12 sps:$4 sm:$0xff]   ;;  %v5943_v60 = vld [vmem:[%s6467_s28 + $0x30] ss:$12 sps:$4 sm:$0xff]  }
 0x1ec   : > { %v744_v49 = vld [vmem:[#allocation2 + $0x8] sm:$0xff]  ;;  %982 = vmatprep.subr.bf16.mxu0 %v5929_v50  ;;  %v5941_v58 = vld [vmem:[%s6467_s28 + $0x34] ss:$12 sps:$4 sm:$0xff]   ;;  %v5946_v62 = vld [vmem:[%s6467_s28 + $0x18] ss:$12 sps:$4 sm:$0xff]   ;;  %v792_v19 = vsub.s32 2, %v6570_v17 }
 0x1ed   : > { %v5938_v56 = vld [vmem:[%s6467_s28 + $0x4c] ss:$12 sps:$4 sm:$0xff]   ;;  %v5944_v61 = vld [vmem:[%s6467_s28 + $0x1c] ss:$12 sps:$4 sm:$0xff]   ;;  %v5947_v0 = vld [vmem:[%s6467_s28 + $0x4] ss:$12 sps:$4 sm:$0xff]  }
 0x1ee   : > { %v742_v37 = vld [vmem:[#allocation2] sm:$0xff]  ;;  %v5950_v5 = vld [vmem:[%s6467_s28 + $0xb0] ss:$12 sps:$4 sm:$0xff]   ;;  %v800_v24 = vsub.s32 3, %v6570_v17  ;;  %v5953_v34 = vld [vmem:[%s6467_s28 + $0x68] ss:$12 sps:$4 sm:$0xff]  }
 0x1ef   : > { %747 = vadd.xlane.f32.xlu0 %v742_v37  ;;  %983 = vmatpush1.bf16.msra.mxu0 %v5931_v51  ;;  %v5949_v2 = vld [vmem:[%s6467_s28] ss:$12 sps:$4 sm:$0xff]   ;;  %v5951_v6 = vld [vmem:[%s6467_s28 + $0x98] ss:$12 sps:$4 sm:$0xff]   ;;  %v5954_v35 = vld [vmem:[%s6467_s28 + $0x50] ss:$12 sps:$4 sm:$0xff]  }
 0x1f0   : > { %984 = vmatprep.subr.bf16.mxu0 %v5932_v52  ;;  %5650 = vmatprep.subr.bf16.mxu1 %v5950_v5  ;;  %v737_v20 = vld [vmem:[%s6494_s25] sm:$0xff]  ;;  %s6314_s22 = smov 96   ;;  %s6315_s19 = smov 32   ;;  %vm6317_vm1 = vmmov 0   ;;  %vm1988_vm2 = vcmask 261120   ;;  %vm2177_vm3 = vcmask 130048  }
 0x1f1   : > { %5651 = vmatpush3.bf16.msra.mxu1 %v5950_v5  ;;  %v793_v23 = vrot.slane %v737_v20, %v792_v19  ;;  %v801_v28 = vrot.slane %v737_v20, %v800_v24  ;;  %v5952_v33 = vld [vmem:[%s6467_s28 + $0x80] ss:$12 sps:$4 sm:$0xff]   ;;  %v6316_v5 = vmov 0.0   ;;  %p5477_p10 = scmp.ne.s32.totalorder %s6296_s16, 3 }
 0x1f2   : > { %5652 = vmatprep.subr.bf16.mxu1 %v5951_v6 }
 0x1f3   : > { %749 = vadd.xlane.f32.xlu0 %v743_v38  ;;  %985 = vmatpush1.bf16.msra.mxu0 %v5934_v53 }
 0x1f4   : > { %986 = vmatprep.subr.bf16.mxu0 %v5935_v54  ;;  %v738_v54 = vld [vmem:[%s6494_s25 + $0x8] sm:$0xff] }
 0x1f5   : > { %5653 = vmatpush3.bf16.msra.mxu1 %v5951_v6  ;;  %v6318_v6 = vmov 1983009808  }
 0x1f6   : > { %5654 = vmatprep.subr.bf16.mxu1 %v5952_v33 }
 0x1f7   : > { %987 = vmatpush1.bf16.msra.mxu0 %v5937_v55  ;;  %v6587_v55 = vsub.s32 0, %v6570_v17 }
 0x1f8   : > { %988 = vmatprep.subr.bf16.mxu0 %v5938_v56 }
 0x1f9   : > { %5655 = vmatpush3.bf16.msra.mxu1 %v5952_v33  ;;  %v6590_v56 = vrot.slane %v738_v54, %v6587_v55 }
 0x1fa   : > { %5656 = vmatprep.subr.bf16.mxu1 %v5953_v34 }
 0x1fb   : > { %989 = vmatpush1.bf16.msra.mxu0 %v5940_v57 }
 0x1fc   : > { %990 = vmatprep.subr.bf16.mxu0 %v5941_v58 }
 0x1fd   : > { %5657 = vmatpush3.bf16.msra.mxu1 %v5953_v34 }
 0x1fe   : > { %5658 = vmatprep.subr.bf16.mxu1 %v5954_v35 }
 0x1ff   : > { %991 = vmatpush1.bf16.msra.mxu0 %v5943_v60  ;;  %v6593_v60 = vrot.slane %v737_v20, %v6587_v55 }
 0x200   : > { %992 = vmatprep.subr.bf16.mxu0 %v5944_v61 }
 0x201   : > { %5659 = vmatpush3.bf16.msra.mxu1 %v5954_v35 }
 0x203   : > { %993 = vmatpush1.bf16.msra.mxu0 %v5946_v62 }
 0x204   : > { %994 = vmatprep.subr.bf16.mxu0 %v5947_v0 }
 0x207   : > { %995 = vmatpush1.bf16.msra.mxu0 %v5949_v2 }
 0x208   : > { %5676 = vmatprep.subr.bf16.mxu0 %v6316_v5 }
 0x274   : > { %v746_v41 = vpop.xlane.xlu0 %745 }
 0x275   : > { %v754_v42 = vmul.f32 0.0078125, %v746_v41 }
 0x277   : > { %v6541_v43 = vsub.f32 %v741_v36, %v754_v42  ;;  %v5955_v36 = vld [vmem:[%s6467_s28 + $0x38] ss:$12 sps:$4 sm:$0xff]  }
 0x278   : > { %v748_v44 = vpop.xlane.xlu0 %747  ;;  %5660 = vmatprep.subr.bf16.mxu1 %v5955_v36 }
 0x279   : > { %v755_v45 = vmul.f32 0.0078125, %v748_v44  ;;  %v762_v46 = vmul.f32 %v6541_v43, %v6541_v43  ;;  %5661 = vmatpush3.bf16.msra.mxu1 %v5955_v36 }
 0x27b   : > { %v6545_v47 = vsub.f32 %v742_v37, %v755_v45  ;;  %766 = vadd.xlane.f32.xlu1 %v762_v46  ;;  %v5956_v37 = vld [vmem:[%s6467_s28 + $0x20] ss:$12 sps:$4 sm:$0xff]  }
 0x27c   : > { %v750_v63 = vpop.xlane.xlu0 %749  ;;  %5662 = vmatprep.subr.bf16.mxu1 %v5956_v37 }
 0x27d   : > { %v763_v48 = vmul.f32 %v6545_v47, %v6545_v47  ;;  %v756_v1 = vmul.f32 0.0078125, %v750_v63  ;;  %5663 = vmatpush3.bf16.msra.mxu1 %v5956_v37 }
 0x27f   : > { %768 = vadd.xlane.f32.xlu1 %v763_v48  ;;  %v6564_v3 = vsub.f32 %v743_v38, %v756_v1  ;;  %v5957_v38 = vld [vmem:[%s6467_s28 + $0x8] ss:$12 sps:$4 sm:$0xff]   ;;  %s6313_s28 = smov 64  }
 0x280   : > { %5664 = vmatprep.subr.bf16.mxu1 %v5957_v38 }
 0x281   : > { %v764_v4 = vmul.f32 %v6564_v3, %v6564_v3  ;;  %5665 = vmatpush3.bf16.msra.mxu1 %v5957_v38 }
 0x282   : > { %5670 = vmatprep.subr.bf16.mxu1 %v6316_v5 }
 0x283   : > { %751 = vadd.xlane.f32.xlu1 %v744_v49  ;;  %770 = vadd.xlane.f32.xlu0 %v764_v4 }
 0x304   : > { %v767_v7 = vpop.xlane.xlu1 %766 }
 0x305   : > { %v774_v8 = vmul.f32 0.0078125, %v767_v7  ;;  %v1123_v7 = vunpack.c.l.s4 %v6318_v6 }
 0x307   : > { %v778_v9 = vadd.f32 1e-06, %v774_v8  ;;  %v6319_v8 = vmov 1934713408  }
 0x308   : > { %v769_v10 = vpop.xlane.xlu1 %768 }
 0x309   : > { %6046 = vrsqrt.f32 %v778_v9  ;;  %v775_v11 = vmul.f32 0.0078125, %v769_v10  ;;  %v1155_v9 = vunpack.c.l.s4 %v6319_v8  ;;  %v1124_v10 = vunpack.c.0.s8 %v1123_v7 }
 0x30b   : > { %v779_v12 = vadd.f32 1e-06, %v775_v11  ;;  %v1156_v13 = vunpack.c.0.s8 %v1155_v9 }
 0x30c   : > { %v752_v14 = vpop.xlane.xlu1 %751  ;;  %v771_v39 = vpop.xlane.xlu0 %770 }
 0x30d   : > { %6048 = vrsqrt.f32 %v779_v12  ;;  %v757_v15 = vmul.f32 0.0078125, %v752_v14  ;;  %v776_v40 = vmul.f32 0.0078125, %v771_v39  ;;  %v6633_v14 = vsub.s32 %v1124_v10, %v6570_v17 }
 0x30f   : > { %v761_v16 = vsub.f32 %v744_v49, %v757_v15  ;;  %v780_v41 = vadd.f32 1e-06, %v776_v40 }
 0x311   : > { %v765_v18 = vmul.f32 %v761_v16, %v761_v16  ;;  %6050 = vrsqrt.f32 %v780_v41 }
 0x313   : > { %772 = vadd.xlane.f32.xlu1 %v765_v18 }
 0x316   : > { %v6047_v21 = vpop.eup %6046 }
 0x317   : > { %v786_v22 = vmul.f32 %v6047_v21, %v6541_v43 }
 0x319   : > { %v794_v27 = vmul.f32 %v793_v23, %v786_v22  ;;  %v6636_v22 = vsub.s32 %v1156_v13, %v6570_v17 }
 0x31a   : > { %v6049_v25 = vpop.eup %6048 }
 0x31b   : > { %v787_v26 = vmul.f32 %v6049_v25, %v6545_v47  ;;  %v802_v30 = vadd.f32 %v801_v28, %v794_v27 }
 0x31d   : > { %v795_v29 = vmul.f32 %v793_v23, %v787_v26 }
 0x31e   : > { %v6051_v45 = vpop.eup %6050 }
 0x31f   : > { %v803_v31 = vadd.f32 %v801_v28, %v795_v29  ;;  %v788_v46 = vmul.f32 %v6051_v45, %v6564_v3 }
 0x321   : > { %v806_v32 = vpack.c.bf16 %v803_v31, %v802_v30  ;;  %v796_v47 = vmul.f32 %v793_v23, %v788_v46 }
 0x323   : > { %1013 = vmatmul.mubr.bf16.vlgmr.msra.gmra.mxu0 %v806_v32  ;;  %5666 = vmatprep.mubr.bf16.mxu1 %v806_v32  ;;  %v804_v51 = vadd.f32 %v801_v28, %v796_v47 }
 0x324   : > { %1022 = vmatprep.mubr.bf16.mxu0 %v6312_v59 }
 0x39c   : > { %v773_v42 = vpop.xlane.xlu1 %772 }
 0x39d   : > { %v777_v43 = vmul.f32 0.0078125, %v773_v42 }
 0x39f   : > { %v781_v44 = vadd.f32 1e-06, %v777_v43 }
 0x3a1   : > { %6052 = vrsqrt.f32 %v781_v44 }
 0x3ae   : > { %v6053_v48 = vpop.eup %6052 }
 0x3af   : > { %v789_v49 = vmul.f32 %v6053_v48, %v761_v16 }
 0x3b1   : > { %v797_v50 = vmul.f32 %v793_v23, %v789_v49 }
 0x3b3   : > { %v805_v52 = vadd.f32 %v801_v28, %v797_v50 }
 0x3b5   : > { %v807_v53 = vpack.c.bf16 %v805_v52, %v804_v51 }
 0x3b7   : > { %1023 = vmatmul.mubr.bf16.gmra.mxu0 %v807_v53  ;;  %5667 = vmatmul.mubr.bf16.vlgmr.msra.gmra.mxu1 %v807_v53 }
 0x3b8   : > { %5672 = vmatprep.mubr.msk.bf16.mxu1 %vm6317_vm1, %v6316_v5  ;;  %5678 = vmatprep.mubr.msk.bf16.mxu0 %vm6317_vm1, %v6316_v5 }
 0x3e3   : > { %v1014_v57 = vpop.f32.mrf.mxu0 }
 0x3e4   : > { %v1015_v0 = vadd.f32 %v1014_v57, %v6593_v60 }
 0x3e5   : > { %v1016_v58 = vpop.f32.mrf.mxu0 }
 0x3e6   : > { %v1017_v61 = vadd.f32 %v1016_v58, %v6590_v56  ;;  %v6605_v2 = vmul.f32 0.17677669, %v1015_v0 }
 0x3e7   : > { %v1018_v62 = vpop.f32.mrf.mxu0 }
 0x3e8   : > { %1264 = vrot.lane.b32.xlu1 %v1017_v61, %s6313_s28  ;;  %1258 = vrot.lane.b32.xlu0 %v1017_v61, %s6314_s22  ;;  %v1019_v3 = vadd.f32 %v1018_v62, %v6593_v60 }
 0x3e9   : > { %v1020_v63 = vpop.f32.mrf.mxu0 }
 0x3ea   : > { %v6600_v1 = vadd.f32 %v1020_v63, %v6590_v56  ;;  %v6616_v4 = vmul.f32 0.17677669, %v1019_v3 }
 0x3ec   : > { %1260 = vrot.lane.b32.xlu1 %v6600_v1, %s6314_s22  ;;  %1270 = vrot.lane.b32.xlu0 %v1017_v61, %s6315_s19 }
 0x3f0   : > { %1266 = vrot.lane.b32.xlu1 %v6600_v1, %s6313_s28  ;;  %1102 = vrot.lane.b32.xlu0 %v6605_v2, %s6314_s22 }
 0x3f4   : > { %1272 = vrot.lane.b32.xlu1 %v6600_v1, %s6315_s19  ;;  %1108 = vrot.lane.b32.xlu0 %v6605_v2, %s6313_s28 }
 0x3f8   : > { %1104 = vrot.lane.b32.xlu1 %v6616_v4, %s6314_s22  ;;  %1114 = vrot.lane.b32.xlu0 %v6605_v2, %s6315_s19 }
 0x3fc   : > { %1110 = vrot.lane.b32.xlu1 %v6616_v4, %s6313_s28 }
 0x400   : > { %1116 = vrot.lane.b32.xlu1 %v6616_v4, %s6315_s19 }
 0x45a   : > { %v1265_v11 = vpop.permute.xlu1 %1264  ;;  %v1259_v12 = vpop.permute.xlu0 %1258 }
 0x45b   : > { %v1276_v15 = vcombine.low %v1017_v61, %v1265_v11  ;;  %v1277_v16 = vcombine.high %v1017_v61, %v1265_v11 }
 0x45d   : > { %v1284_v23 = vrot.slane %v1276_v15, %v6633_v14  ;;  %v1291_v24 = vrot.slane %v1277_v16, %v6633_v14 }
 0x45e   : > { %v1261_v18 = vpop.permute.xlu1 %1260  ;;  %v1271_v19 = vpop.permute.xlu0 %1270 }
 0x45f   : > { %v1292_v20 = vcombine.low %v1259_v12, %v1271_v19  ;;  %v1293_v21 = vcombine.high %v1259_v12, %v1271_v19 }
 0x461   : > { %v1300_v25 = vrot.slane %v1292_v20, %v6633_v14  ;;  %v1307_v26 = vrot.slane %v1293_v21, %v6633_v14 }
 0x462   : > { %v1267_v27 = vpop.permute.xlu1 %1266  ;;  %v1103_v28 = vpop.permute.xlu0 %1102 }
 0x463   : > { %v1308_v29 = vcombine.low %v1284_v23, %v1300_v25  ;;  %v1309_v30 = vcombine.high %v1284_v23, %v1300_v25  ;;  %v1324_v31 = vcombine.low %v1291_v24, %v1307_v26  ;;  %v1325_v32 = vcombine.high %v1291_v24, %v1307_v26 }
 0x464   : > { %v1344_v33 = vcombine.low %v6600_v1, %v1267_v27  ;;  %v1345_v34 = vcombine.high %v6600_v1, %v1267_v27 }
 0x465   : > { %v1316_v35 = vrot.slane %v1308_v29, %v6636_v22  ;;  %v1323_v36 = vrot.slane %v1309_v30, %v6636_v22  ;;  %v1332_v37 = vrot.slane %v1324_v31, %v6636_v22  ;;  %v1339_v38 = vrot.slane %v1325_v32, %v6636_v22 }
 0x466   : > { %v1273_v39 = vpop.permute.xlu1 %1272  ;;  %v1109_v40 = vpop.permute.xlu0 %1108  ;;  %v1352_v47 = vrot.slane %v1344_v33, %v6633_v14  ;;  %v1359_v48 = vrot.slane %v1345_v34, %v6633_v14 }
 0x467   : > { %v1708_v41 = vcombine.low %v1316_v35, %v1323_v36  ;;  %v5361_v42 = vcombine.high %v1316_v35, %v1323_v36  ;;  %v1724_v43 = vcombine.low %v1332_v37, %v1339_v38  ;;  %v5362_v44 = vcombine.high %v1332_v37, %v1339_v38 }
 0x468   : > { %v1360_v45 = vcombine.low %v1261_v18, %v1273_v39  ;;  %v1361_v46 = vcombine.high %v1261_v18, %v1273_v39  ;;  %v1120_v49 = vcombine.low %v6605_v2, %v1109_v40  ;;  %v1121_v50 = vcombine.high %v6605_v2, %v1109_v40 }
 0x469   : > { %v6653_v51 = vrot.slane %v1708_v41, %v6633_v14  ;;  %v6656_v52 = vrot.slane %v5361_v42, %v6633_v14  ;;  %v6661_v61 = vrot.slane %v1724_v43, %v6633_v14  ;;  %v6664_v62 = vrot.slane %v5362_v44, %v6633_v14 }
 0x46a   : > { %v1368_v53 = vrot.slane %v1360_v45, %v6633_v14  ;;  %v1375_v54 = vrot.slane %v1361_v46, %v6633_v14  ;;  %v1105_v57 = vpop.permute.xlu1 %1104  ;;  %v1115_v58 = vpop.permute.xlu0 %1114  ;;  %v1128_v7 = vrot.slane %v1120_v49, %v6633_v14  ;;  %v1135_v8 = vrot.slane %v1121_v50, %v6633_v14 }
 0x46b   : > { %v1136_v63 = vcombine.low %v1103_v28, %v1115_v58  ;;  %v1137_v0 = vcombine.high %v1103_v28, %v1115_v58  ;;  %v1740_v32 = vcombine.low %v6653_v51, %v6656_v52  ;;  %v1756_v33 = vcombine.low %v6661_v61, %v6664_v62 }
 0x46c   : > { %v1376_v1 = vcombine.low %v1352_v47, %v1368_v53  ;;  %v1377_v2 = vcombine.high %v1352_v47, %v1368_v53  ;;  %v1392_v3 = vcombine.low %v1359_v48, %v1375_v54  ;;  %v1393_v6 = vcombine.high %v1359_v48, %v1375_v54 }
 0x46d   : > { %v1144_v9 = vrot.slane %v1136_v63, %v6633_v14  ;;  %v1151_v10 = vrot.slane %v1137_v0, %v6633_v14 }
 0x46e   : > { %v1384_v11 = vrot.slane %v1376_v1, %v6636_v22  ;;  %v1391_v12 = vrot.slane %v1377_v2, %v6636_v22  ;;  %v1400_v13 = vrot.slane %v1392_v3, %v6636_v22  ;;  %v1407_v15 = vrot.slane %v1393_v6, %v6636_v22  ;;  %v1111_v16 = vpop.permute.xlu1 %1110 }
 0x46f   : > { %v1152_v18 = vcombine.low %v1128_v7, %v1144_v9  ;;  %v1153_v19 = vcombine.high %v1128_v7, %v1144_v9  ;;  %v1168_v20 = vcombine.low %v1135_v8, %v1151_v10  ;;  %v1169_v21 = vcombine.high %v1135_v8, %v1151_v10 }
 0x470   : > { %v1776_v23 = vcombine.low %v1384_v11, %v1391_v12  ;;  %v5363_v24 = vcombine.high %v1384_v11, %v1391_v12  ;;  %v1792_v25 = vcombine.low %v1400_v13, %v1407_v15  ;;  %v5364_v26 = vcombine.high %v1400_v13, %v1407_v15 }
 0x471   : > { %v1160_v27 = vrot.slane %v1152_v18, %v6636_v22  ;;  %v1167_v28 = vrot.slane %v1153_v19, %v6636_v22  ;;  %v1176_v29 = vrot.slane %v1168_v20, %v6636_v22  ;;  %v1183_v30 = vrot.slane %v1169_v21, %v6636_v22 }
 0x472   : > { %v1117_v31 = vpop.permute.xlu1 %1116  ;;  %v1188_v38 = vcombine.low %v6616_v4, %v1111_v16  ;;  %v1189_v39 = vcombine.high %v6616_v4, %v1111_v16  ;;  %v6685_v42 = vrot.slane %v1776_v23, %v6633_v14  ;;  %v6688_v43 = vrot.slane %v5363_v24, %v6633_v14 }
 0x473   : > { %v1568_v34 = vcombine.low %v1160_v27, %v1167_v28  ;;  %v5357_v35 = vcombine.high %v1160_v27, %v1167_v28  ;;  %v1584_v36 = vcombine.low %v1176_v29, %v1183_v30  ;;  %v5358_v37 = vcombine.high %v1176_v29, %v1183_v30 }
 0x474   : > { %v1204_v40 = vcombine.low %v1105_v57, %v1117_v31  ;;  %v1205_v41 = vcombine.high %v1105_v57, %v1117_v31  ;;  %v6691_v44 = vrot.slane %v1792_v25, %v6633_v14  ;;  %v6694_v45 = vrot.slane %v5364_v26, %v6633_v14 }
 0x475   : > { %v1196_v46 = vrot.slane %v1188_v38, %v6633_v14  ;;  %v1203_v47 = vrot.slane %v1189_v39, %v6633_v14  ;;  %v6701_v49 = vrot.slane %v1568_v34, %v6633_v14  ;;  %v6704_v50 = vrot.slane %v5357_v35, %v6633_v14 }
 0x476   : > { %v1212_v4 = vrot.slane %v1204_v40, %v6633_v14  ;;  %v1219_v48 = vrot.slane %v1205_v41, %v6633_v14  ;;  %v6707_v53 = vrot.slane %v1584_v36, %v6633_v14  ;;  %v6710_v54 = vrot.slane %v5358_v37, %v6633_v14 }
 0x477   : > { %v1748_v1 = vrot.slane %v1740_v32, %v6636_v22  ;;  %v1764_v2 = vrot.slane %v1756_v33, %v6636_v22  ;;  %v1600_v9 = vcombine.low %v6701_v49, %v6704_v50  ;;  %v1808_v11 = vcombine.low %v6685_v42, %v6688_v43  ;;  %v739_v32 = vld [vmem:[%s6494_s25 + $0x10] sm:$0xff]  ;;  %v5668_v35 = vpop.f32.mrf.mxu1 }
 0x478   : > { %v1220_v57 = vcombine.low %v1196_v46, %v1212_v4  ;;  %v1221_v58 = vcombine.high %v1196_v46, %v1212_v4  ;;  %v1236_v63 = vcombine.low %v1203_v47, %v1219_v48  ;;  %v1237_v0 = vcombine.high %v1203_v47, %v1219_v48 }
 0x479   : > { %v1616_v10 = vcombine.low %v6707_v53, %v6710_v54  ;;  %v1824_v12 = vcombine.low %v6691_v44, %v6694_v45  ;;  %v1772_v19 = vcombine.low %v1748_v1, %v1764_v2  ;;  %v1816_v20 = vrot.slane %v1808_v11, %v6636_v22 }
 0x47a   : > { %v1228_v3 = vrot.slane %v1220_v57, %v6636_v22  ;;  %v1235_v6 = vrot.slane %v1221_v58, %v6636_v22  ;;  %v1244_v7 = vrot.slane %v1236_v63, %v6636_v22  ;;  %v1251_v8 = vrot.slane %v1237_v0, %v6636_v22  ;;  %v6752_v58 = vpop.f32.mrf.mxu1 }
 0x47b   : > { %v1832_v21 = vrot.slane %v1824_v12, %v6636_v22  ;;  %v1773_v23 = vcombine.high %v1748_v1, %v1764_v2  ;;  %v1741_v30 = vcombine.high %v6653_v51, %v6656_v52  ;;  %v1757_v31 = vcombine.high %v6661_v61, %v6664_v62 }
 0x47c   : > { %v1636_v13 = vcombine.low %v1228_v3, %v1235_v6  ;;  %v5359_v15 = vcombine.high %v1228_v3, %v1235_v6  ;;  %v1652_v16 = vcombine.low %v1244_v7, %v1251_v8  ;;  %v5360_v18 = vcombine.high %v1244_v7, %v1251_v8  ;;  %v5669_v11 = vpop.f32.mrf.mxu1 }
 0x47d   : > { %v1840_v28 = vcombine.low %v1816_v20, %v1832_v21  ;;  %v1841_v29 = vcombine.high %v1816_v20, %v1832_v21  ;;  %v1608_v36 = vrot.slane %v1600_v9, %v6636_v22  ;;  %v1624_v37 = vrot.slane %v1616_v10, %v6636_v22 }
 0x47e   : > { %v1643_v24 = vrot.slane %v1636_v13, %v6633_v14  ;;  %v1651_v25 = vrot.slane %v5359_v15, %v6633_v14  ;;  %v1659_v26 = vrot.slane %v1652_v16, %v6633_v14  ;;  %v1667_v27 = vrot.slane %v5360_v18, %v6633_v14 }
 0x47f   : > { %v1844_v38 = vpack.c.bf16 %v1840_v28, %v1772_v19  ;;  %v1845_v39 = vpack.c.bf16 %v1841_v29, %v1773_v23  ;;  %v1755_v51 = vrot.slane %v1741_v30, %v6636_v22  ;;  %v6743_v52 = vrot.slane %v739_v32, %v6587_v55  ;;  %v1070_v30 = vpop.f32.mrf.mxu1 }
 0x480   : > { %v1668_v33 = vcombine.low %v1643_v24, %v1651_v25  ;;  %v1684_v34 = vcombine.low %v1659_v26, %v1667_v27  ;;  %v1771_v46 = vrot.slane %v1757_v31, %v6636_v22  ;;  %v1809_v47 = vcombine.high %v6685_v42, %v6688_v43 }
 0x481   : > { %v1993_v61 = vsel %vm1988_vm2, %v1844_v38, 0  ;;  %v2040_v62 = vsel %vm1988_vm2, %v1845_v39, 0  ;;  %v1825_v57 = vcombine.high %v6691_v44, %v6694_v45  ;;  %v1633_v55 = vcombine.high %v1608_v36, %v1624_v37 }
 0x482   : > { %v1676_v40 = vrot.slane %v1668_v33, %v6636_v22  ;;  %v1692_v41 = vrot.slane %v1684_v34, %v6636_v22  ;;  %5671 = vmatpush3.bf16.xpose.msra.mxu1 %v1993_v61  ;;  %5677 = vmatpush3.bf16.xpose.msra.mxu0 %v2040_v62  ;;  %v1632_v63 = vcombine.low %v1608_v36, %v1624_v37 }
 0x483   : > { %5682 = vmatprep.subr.bf16.mxu1 %v6316_v5  ;;  %5688 = vmatprep.subr.bf16.mxu0 %v6316_v5  ;;  %v1823_v0 = vrot.slane %v1809_v47, %v6636_v22  ;;  %v1669_v1 = vcombine.high %v1643_v24, %v1651_v25  ;;  %v1685_v2 = vcombine.high %v1659_v26, %v1667_v27  ;;  %v6788_v26 = vpop.f32.mrf.mxu0 }
 0x484   : > { %v1701_v4 = vcombine.high %v1676_v40, %v1692_v41  ;;  %v1700_v48 = vcombine.low %v1676_v40, %v1692_v41  ;;  %v1839_v42 = vrot.slane %v1825_v57, %v6636_v22  ;;  %v6759_v43 = vadd.f32 %v5668_v35, %v6743_v52 }
 0x485   : > { %v1601_v44 = vcombine.high %v6701_v49, %v6704_v50  ;;  %v1617_v45 = vcombine.high %v6707_v53, %v6710_v54  ;;  %v1774_v7 = vcombine.low %v1755_v51, %v1771_v46  ;;  %v1775_v9 = vcombine.high %v1755_v51, %v1771_v46  ;;  %v6790_v27 = vpop.f32.mrf.mxu0 }
 0x486   : > { %v1704_v3 = vpack.c.bf16 %v1700_v48, %v1632_v63  ;;  %v1705_v6 = vpack.c.bf16 %v1701_v4, %v1633_v55  ;;  %v1842_v8 = vcombine.low %v1823_v0, %v1839_v42  ;;  %v1843_v10 = vcombine.high %v1823_v0, %v1839_v42 }
 0x487   : > { %v6766_v12 = vadd.f32 %v5669_v11, %v6743_v52  ;;  %v1683_v13 = vrot.slane %v1669_v1, %v6636_v22  ;;  %v1699_v15 = vrot.slane %v1685_v2, %v6636_v22  ;;  %v1615_v49 = vrot.slane %v1601_v44, %v6636_v22  ;;  %v6792_v28 = vpop.f32.mrf.mxu0 }
 0x488   : > { %v1846_v16 = vpack.c.bf16 %v1842_v8, %v1774_v7  ;;  %v1847_v18 = vpack.c.bf16 %v1843_v10, %v1775_v9  ;;  %v1631_v50 = vrot.slane %v1617_v45, %v6636_v22  ;;  %v6807_v1 = vadd.f32 %v1070_v30, %v6743_v52 }
 0x489   : > { %5673 = vmatmul.mubr.msk.bf16.vlgmr.msra.gmra.mxu1 %vm1988_vm2, %v1704_v3  ;;  %5679 = vmatmul.mubr.msk.bf16.vlgmr.msra.gmra.mxu0 %vm1988_vm2, %v1705_v6  ;;  %v1702_v19 = vcombine.low %v1683_v13, %v1699_v15  ;;  %v1703_v20 = vcombine.high %v1683_v13, %v1699_v15  ;;  %v6794_v29 = vpop.f32.mrf.mxu0  ;;  %v6813_v2 = vadd.f32 %v6752_v58, %v6743_v52 }
 0x48a   : > { %v2087_v53 = vsel %vm1988_vm2, %v1846_v16, 0  ;;  %v2134_v54 = vsel %vm1988_vm2, %v1847_v18, 0  ;;  %5684 = vmatprep.mubr.msk.bf16.mxu1 %vm6317_vm1, %v6316_v5  ;;  %5690 = vmatprep.mubr.msk.bf16.mxu0 %vm6317_vm1, %v6316_v5  ;;  %v1634_v21 = vcombine.low %v1615_v49, %v1631_v50  ;;  %v1635_v23 = vcombine.high %v1615_v49, %v1631_v50 }
 0x48b   : > { %5683 = vmatpush3.bf16.xpose.msra.mxu1 %v2087_v53  ;;  %5689 = vmatpush3.bf16.xpose.msra.mxu0 %v2134_v54 }
 0x48c   : > { %5694 = vmatprep.subr.bf16.mxu1 %v6316_v5  ;;  %5700 = vmatprep.subr.bf16.mxu0 %v6316_v5  ;;  %v1706_v24 = vpack.c.bf16 %v1702_v19, %v1634_v21  ;;  %v1707_v25 = vpack.c.bf16 %v1703_v20, %v1635_v23 }
 0x492   : > { %5685 = vmatmul.mubr.msk.bf16.vlgmr.msra.gmra.mxu1 %vm1988_vm2, %v1706_v24  ;;  %5691 = vmatmul.mubr.msk.bf16.vlgmr.msra.gmra.mxu0 %vm1988_vm2, %v1707_v25 }
 0x493   : > { %5696 = vmatprep.mubr.msk.bf16.mxu1 %vm6317_vm1, %v6316_v5  ;;  %5702 = vmatprep.mubr.msk.bf16.mxu0 %vm6317_vm1, %v6316_v5 }
 0x549   : > { %v2029_v31 = vpop.f32.mrf.mxu1  ;;  %v2076_v32 = vpop.f32.mrf.mxu0 }
 0x54a   : > { %v2178_v33 = vsel %vm2177_vm3, %v2029_v31, -inf  ;;  %v2184_v38 = vsel %vm2177_vm3, %v2076_v32, -inf }
 0x54b   : > { %v5680_v34 = vpop.f32.mrf.mxu0  ;;  %2179 = vmax.xlane.f32.xlu0 %v2178_v33  ;;  %v5674_v35 = vpop.f32.mrf.mxu1 }
 0x54d   : > { %v2032_v36 = vpop.f32.mrf.mxu1  ;;  %v2079_v37 = vpop.f32.mrf.mxu0 }
 0x54e   : > { %v2181_v39 = vsel %vm2177_vm3, %v2032_v36, -inf  ;;  %v2187_v62 = vsel %vm2177_vm3, %v2079_v37, -inf }
 0x54f   : > { %v5681_v40 = vpop.f32.mrf.mxu0  ;;  %2185 = vmax.xlane.f32.xlu0 %v2184_v38  ;;  %2182 = vmax.xlane.f32.xlu1 %v2181_v39  ;;  %v5675_v41 = vpop.f32.mrf.mxu1 }
 0x552   : > { %v2123_v51 = vpop.f32.mrf.mxu1  ;;  %v2170_v61 = vpop.f32.mrf.mxu0 }
 0x553   : > { %2188 = vmax.xlane.f32.xlu0 %v2187_v62  ;;  %v2190_v57 = vsel %vm2177_vm3, %v2123_v51, -inf  ;;  %v2196_v0 = vsel %vm2177_vm3, %v2170_v61, -inf }
 0x554   : > { %v5692_v46 = vpop.f32.mrf.mxu0  ;;  %v5686_v47 = vpop.f32.mrf.mxu1 }
 0x556   : > { %v6800_v4 = vpop.f32.mrf.mxu1  ;;  %v6802_v48 = vpop.f32.mrf.mxu0 }
 0x557   : > { %2191 = vmax.xlane.f32.xlu0 %v2190_v57  ;;  %v2193_v42 = vsel %vm2177_vm3, %v6800_v4, -inf  ;;  %v2199_v44 = vsel %vm2177_vm3, %v6802_v48, -inf }
 0x558   : > { %v5693_v55 = vpop.f32.mrf.mxu0  ;;  %v5687_v63 = vpop.f32.mrf.mxu1 }
 0x559   : > { %v1029_v55 = vadd.f32 %v6792_v28, %v6593_v60 }
 0x55b   : > { %2197 = vmax.xlane.f32.xlu0 %v2196_v0 }
 0x560   : > { %1416 = vrot.lane.b32.xlu1 %v6807_v1, %s6314_s22 }
 0x564   : > { %1420 = vrot.lane.b32.xlu1 %v6813_v2, %s6313_s28 }
 0x571   : > { %1414 = vrot.lane.b32.xlu0 %v6813_v2, %s6314_s22 }
 0x575   : > { %1426 = vrot.lane.b32.xlu0 %v6813_v2, %s6315_s19 }
 0x588   : > { %2194 = vmax.xlane.f32.xlu1 %v2193_v42 }
 0x58c   : > { %2200 = vmax.xlane.f32.xlu1 %v2199_v44 }
 0x59d   : > { %1422 = vrot.lane.b32.xlu1 %v6807_v1, %s6313_s28 }
 0x5d4   : > { %v2180_v52 = vpop.xlane.xlu0 %2179 }
 0x5d5   : > { %v2202_v58 = vsub.f32 %v2029_v31, %v2180_v52 }
 0x5d7   : > { %v2210_v45 = vmul.f32 1.442695, %v2202_v58 }
 0x5d8   : > { %v2186_v3 = vpop.xlane.xlu0 %2185  ;;  %v2183_v6 = vpop.xlane.xlu1 %2182 }
 0x5d9   : > { %6054 = vpow2.f32 %v2210_v45  ;;  %v2204_v7 = vsub.f32 %v2076_v32, %v2186_v3  ;;  %v2203_v8 = vsub.f32 %v2032_v36, %v2183_v6 }
 0x5db   : > { %v2214_v9 = vmul.f32 1.442695, %v2204_v7  ;;  %v2212_v10 = vmul.f32 1.442695, %v2203_v8 }
 0x5dc   : > { %v2189_v11 = vpop.xlane.xlu0 %2188  ;;  %v6853_v36 = vpop.permute.xlu1 %1416 }
 0x5dd   : > { %6056 = vpow2.f32 %v2214_v9  ;;  %v2205_v13 = vsub.f32 %v2079_v37, %v2189_v11 }
 0x5de   : > { %6058 = vpow2.f32 %v2212_v10 }
 0x5df   : > { %v2216_v15 = vmul.f32 1.442695, %v2205_v13 }
 0x5e0   : > { %v2192_v16 = vpop.xlane.xlu0 %2191  ;;  %v1421_v37 = vpop.permute.xlu1 %1420 }
 0x5e1   : > { %6060 = vpow2.f32 %v2216_v15  ;;  %v2206_v18 = vsub.f32 %v2123_v51, %v2192_v16  ;;  %v1432_v63 = vcombine.low %v6813_v2, %v1421_v37  ;;  %v1433_v42 = vcombine.high %v6813_v2, %v1421_v37 }
 0x5e3   : > { %v2218_v49 = vmul.f32 1.442695, %v2206_v18  ;;  %v1440_v52 = vrot.slane %v1432_v63, %v6633_v14  ;;  %v1447_v3 = vrot.slane %v1433_v42, %v6633_v14 }
 0x5e4   : > { %v2198_v50 = vpop.xlane.xlu0 %2197 }
 0x5e5   : > { %6062 = vpow2.f32 %v2218_v49  ;;  %v2208_v53 = vsub.f32 %v2170_v61, %v2198_v50 }
 0x5e6   : > { %v6827_v54 = vpop.eup %6054 }
 0x5e7   : > { %v2222_v19 = vmul.f32 1.442695, %v2208_v53  ;;  %v2226_v20 = vsel %vm2177_vm3, %v6827_v54, 0.0 }
 0x5e8   : > { %2227 = vadd.xlane.f32.xlu0 %v2226_v20 }
 0x5e9   : > { %6064 = vpow2.f32 %v2222_v19 }
 0x5ea   : > { %v6831_v21 = vpop.eup %6056 }
 0x5eb   : > { %v6833_v23 = vpop.eup %6058  ;;  %v2232_v24 = vsel %vm2177_vm3, %v6831_v21, 0.0 }
 0x5ec   : > { %2233 = vadd.xlane.f32.xlu0 %v2232_v24  ;;  %v2229_v25 = vsel %vm2177_vm3, %v6833_v23, 0.0 }
 0x5ed   : > { %2230 = vadd.xlane.f32.xlu1 %v2229_v25 }
 0x5ee   : > { %v6839_v30 = vpop.eup %6060 }
 0x5ef   : > { %v2235_v31 = vsel %vm2177_vm3, %v6839_v30, 0.0 }
 0x5f1   : > { %2236 = vadd.xlane.f32.xlu1 %v2235_v31 }
 0x5f2   : > { %v6843_v32 = vpop.eup %6062 }
 0x5f3   : > { %v2238_v33 = vsel %vm2177_vm3, %v6843_v32, 0.0 }
 0x5f4   : > { %2239 = vadd.xlane.f32.xlu0 %v2238_v33 }
 0x5f6   : > { %v6847_v34 = vpop.eup %6064 }
 0x5f7   : > { %v2244_v35 = vsel %vm2177_vm3, %v6847_v34, 0.0 }
 0x5f8   : > { %2245 = vadd.xlane.f32.xlu0 %v2244_v35 }
 0x602   : > { %1428 = vrot.lane.b32.xlu1 %v6807_v1, %s6315_s19 }
 0x611   : > { %v2195_v38 = vpop.xlane.xlu1 %2194 }
 0x612   : > { %v2207_v39 = vsub.f32 %v6800_v4, %v2195_v38  ;;  %v6867_v4 = vadd.f32 %v6794_v29, %v6590_v56  ;;  %v1025_v29 = vadd.f32 %v6788_v26, %v6593_v60  ;;  %v1415_v60 = vpop.permute.xlu0 %1414 }
 0x614   : > { %v2220_v40 = vmul.f32 1.442695, %v2207_v39 }
 0x615   : > { %v2201_v41 = vpop.xlane.xlu1 %2200 }
 0x616   : > { %6066 = vpow2.f32 %v2220_v40  ;;  %v2209_v51 = vsub.f32 %v6802_v48, %v2201_v41  ;;  %v6873_v48 = vadd.f32 %v6790_v27, %v6590_v56  ;;  %v6889_v56 = vmul.f32 0.17677669, %v1025_v29  ;;  %v1427_v26 = vpop.permute.xlu0 %1426 }
 0x617   : > { %v6891_v27 = vmul.f32 0.17677669, %v1029_v55  ;;  %v1448_v28 = vcombine.low %v1415_v60, %v1427_v26  ;;  %v1449_v0 = vcombine.high %v1415_v60, %v1427_v26 }
 0x618   : > { %v2224_v61 = vmul.f32 1.442695, %v2209_v51 }
 0x619   : > { %v1456_v44 = vrot.slane %v1448_v28, %v6633_v14  ;;  %v1463_v58 = vrot.slane %v1449_v0, %v6633_v14  ;;  %v1423_v45 = vpop.permute.xlu1 %1422 }
 0x61a   : > { %6068 = vpow2.f32 %v2224_v61  ;;  %v1500_v50 = vcombine.low %v6807_v1, %v1423_v45  ;;  %v1501_v53 = vcombine.high %v6807_v1, %v1423_v45 }
 0x61b   : > { %v1464_v6 = vcombine.low %v1440_v52, %v1456_v44  ;;  %v1465_v7 = vcombine.high %v1440_v52, %v1456_v44  ;;  %v1480_v8 = vcombine.low %v1447_v3, %v1463_v58  ;;  %v1481_v9 = vcombine.high %v1447_v3, %v1463_v58 }
 0x61c   : > { %v1508_v38 = vrot.slane %v1500_v50, %v6633_v14  ;;  %v1515_v39 = vrot.slane %v1501_v53, %v6633_v14 }
 0x61d   : > { %v1472_v11 = vrot.slane %v1464_v6, %v6636_v22  ;;  %v1479_v13 = vrot.slane %v1465_v7, %v6636_v22  ;;  %v1488_v2 = vrot.slane %v1480_v8, %v6636_v22  ;;  %v1495_v16 = vrot.slane %v1481_v9, %v6636_v22 }
 0x61f   : > { %v1848_v49 = vcombine.low %v1472_v11, %v1479_v13  ;;  %v5365_v19 = vcombine.high %v1472_v11, %v1479_v13  ;;  %v1864_v20 = vcombine.low %v1488_v2, %v1495_v16  ;;  %v5366_v24 = vcombine.high %v1488_v2, %v1495_v16 }
 0x621   : > { %v1855_v37 = vrot.slane %v1848_v49, %v6633_v14  ;;  %v1863_v41 = vrot.slane %v5365_v19, %v6633_v14  ;;  %v1871_v51 = vrot.slane %v1864_v20, %v6633_v14  ;;  %v1879_v61 = vrot.slane %v5366_v24, %v6633_v14 }
 0x623   : > { %v6857_v62 = vpop.eup %6066  ;;  %v1880_v63 = vcombine.low %v1855_v37, %v1863_v41  ;;  %v1896_v0 = vcombine.low %v1871_v51, %v1879_v61  ;;  %v1897_v11 = vcombine.high %v1871_v51, %v1879_v61 }
 0x624   : > { %v2241_v46 = vsel %vm2177_vm3, %v6857_v62, 0.0 }
 0x625   : > { %v1888_v8 = vrot.slane %v1880_v63, %v6636_v22  ;;  %v1904_v9 = vrot.slane %v1896_v0, %v6636_v22 }
 0x626   : > { %2242 = vadd.xlane.f32.xlu1 %v2241_v46 }
 0x627   : > { %v6861_v47 = vpop.eup %6068 }
 0x628   : > { %v2247_v57 = vsel %vm2177_vm3, %v6861_v47, 0.0 }
 0x629   : > { %2248 = vadd.xlane.f32.xlu0 %v2247_v57 }
 0x637   : > { %2852 = vrot.lane.b32.xlu1 %v6867_v4, %s6314_s22 }
 0x63b   : > { %2856 = vrot.lane.b32.xlu1 %v6873_v48, %s6313_s28 }
 0x63f   : > { %2858 = vrot.lane.b32.xlu1 %v6867_v4, %s6313_s28  ;;  %2850 = vrot.lane.b32.xlu0 %v6873_v48, %s6314_s22 }
 0x643   : > { %2864 = vrot.lane.b32.xlu1 %v6867_v4, %s6315_s19  ;;  %2862 = vrot.lane.b32.xlu0 %v6873_v48, %s6315_s19 }
 0x647   : > { %2696 = vrot.lane.b32.xlu1 %v6891_v27, %s6314_s22  ;;  %2694 = vrot.lane.b32.xlu0 %v6889_v56, %s6314_s22 }
 0x64b   : > { %2702 = vrot.lane.b32.xlu1 %v6891_v27, %s6313_s28  ;;  %2700 = vrot.lane.b32.xlu0 %v6889_v56, %s6313_s28 }
 0x64f   : > { %2708 = vrot.lane.b32.xlu1 %v6891_v27, %s6315_s19  ;;  %2706 = vrot.lane.b32.xlu0 %v6889_v56, %s6315_s19 }
 0x671   : > { %v2228_v15 = vpop.xlane.xlu0 %2227 }
 0x675   : > { %v2234_v31 = vpop.xlane.xlu0 %2233 }
 0x676   : > { %v2231_v10 = vpop.xlane.xlu1 %2230 }
 0x677   : > { %6070 = vrcp.f32 %v2231_v10  ;;  %v1881_v10 = vcombine.high %v1855_v37, %v1863_v41 }
 0x67a   : > { %v2237_v18 = vpop.xlane.xlu1 %2236 }
 0x67b   : > { %6072 = vrcp.f32 %v2237_v18 }
 0x67c   : > { %6074 = vrcp.f32 %v2228_v15 }
 0x67d   : > { %6076 = vrcp.f32 %v2234_v31  ;;  %v1911_v31 = vrot.slane %v1897_v11, %v6636_v22 }
 0x67e   : > { %v1429_v25 = vpop.permute.xlu1 %1428 }
 0x67f   : > { %v1516_v33 = vcombine.low %v6853_v36, %v1429_v25  ;;  %v1517_v35 = vcombine.high %v6853_v36, %v1429_v25  ;;  %v1895_v25 = vrot.slane %v1881_v10, %v6636_v22 }
 0x681   : > { %v1524_v1 = vrot.slane %v1516_v33, %v6633_v14  ;;  %v1531_v40 = vrot.slane %v1517_v35, %v6633_v14  ;;  %v1912_v35 = vcombine.low %v1888_v8, %v1904_v9 }
 0x683   : > { %v1532_v36 = vcombine.low %v1508_v38, %v1524_v1  ;;  %v1533_v46 = vcombine.high %v1508_v38, %v1524_v1  ;;  %v1548_v57 = vcombine.low %v1515_v39, %v1531_v40  ;;  %v1549_v29 = vcombine.high %v1515_v39, %v1531_v40 }
 0x684   : > { %v6071_v18 = vpop.eup %6070  ;;  %v1913_v38 = vcombine.high %v1888_v8, %v1904_v9 }
 0x685   : > { %v1540_v55 = vrot.slane %v1532_v36, %v6636_v22  ;;  %v1547_v60 = vrot.slane %v1533_v46, %v6636_v22  ;;  %v1556_v26 = vrot.slane %v1548_v57, %v6636_v22  ;;  %v1563_v28 = vrot.slane %v1549_v29, %v6636_v22 }
 0x686   : > { %v2259_v1 = vmul.f32 %v6071_v18, %v6833_v23  ;;  %v1914_v29 = vcombine.low %v1895_v25, %v1911_v31 }
 0x687   : > { %v1916_v42 = vcombine.low %v1540_v55, %v1547_v60  ;;  %v5367_v44 = vcombine.high %v1540_v55, %v1547_v60  ;;  %v1932_v52 = vcombine.low %v1556_v26, %v1563_v28  ;;  %v5368_v58 = vcombine.high %v1556_v26, %v1563_v28 }
 0x688   : > { %v6073_v49 = vpop.eup %6072  ;;  %v1915_v55 = vcombine.high %v1895_v25, %v1911_v31 }
 0x689   : > { %v1923_v45 = vrot.slane %v1916_v42, %v6633_v14  ;;  %v1931_v3 = vrot.slane %v5367_v44, %v6633_v14  ;;  %v1939_v6 = vrot.slane %v1932_v52, %v6633_v14  ;;  %v1947_v7 = vrot.slane %v5368_v58, %v6633_v14  ;;  %v6075_v24 = vpop.eup %6074 }
 0x68a   : > { %v6077_v33 = vpop.eup %6076  ;;  %v2261_v40 = vmul.f32 %v6073_v49, %v6839_v30  ;;  %v2258_v46 = vmul.f32 %v6075_v24, %v6827_v54  ;;  %v2240_v54 = vpop.xlane.xlu0 %2239  ;;  %v6991_v24 = vld [vmem:[%s6484_s30 + $0x38] sm:$0xff]  }
 0x68b   : > { %v1948_v13 = vcombine.low %v1923_v45, %v1931_v3  ;;  %v1964_v15 = vcombine.low %v1939_v6, %v1947_v7  ;;  %v1949_v2 = vcombine.high %v1923_v45, %v1931_v3  ;;  %v1965_v16 = vcombine.high %v1939_v6, %v1947_v7 }
 0x68c   : > { %v2260_v57 = vmul.f32 %v6077_v33, %v6831_v21  ;;  %v2266_v60 = vpack.c.bf16 %v2259_v1, %v2258_v46  ;;  %6078 = vrcp.f32 %v2240_v54  ;;  %v7005_v1 = vld [vmem:[%s6484_s30 + $0x30] sm:$0xff]  }
 0x68d   : > { %v1956_v50 = vrot.slane %v1948_v13, %v6636_v22  ;;  %v1972_v53 = vrot.slane %v1964_v15, %v6636_v22  ;;  %v1963_v19 = vrot.slane %v1949_v2, %v6636_v22  ;;  %v1979_v20 = vrot.slane %v1965_v16, %v6636_v22 }
 0x68e   : > { %v2267_v26 = vpack.c.bf16 %v2261_v40, %v2260_v57  ;;  %v2246_v21 = vpop.xlane.xlu0 %2245 }
 0x68f   : > { %v1980_v37 = vcombine.low %v1956_v50, %v1972_v53  ;;  %v1981_v39 = vcombine.high %v1956_v50, %v1972_v53  ;;  %v1982_v61 = vcombine.low %v1963_v19, %v1979_v20  ;;  %v1983_v36 = vcombine.high %v1963_v19, %v1979_v20  ;;  %v6988_v20 = vld [vmem:[%s6484_s30 + $0x28] sm:$0xff]  }
 0x691   : > { %v1984_v41 = vpack.c.bf16 %v1980_v37, %v1912_v35  ;;  %v1985_v51 = vpack.c.bf16 %v1981_v39, %v1913_v38  ;;  %v1986_v23 = vpack.c.bf16 %v1982_v61, %v1914_v29  ;;  %v1987_v30 = vpack.c.bf16 %v1983_v36, %v1915_v55  ;;  %v7001_v39 = vld [vmem:[%s6484_s30 + $0x20] sm:$0xff]  }
 0x693   : > { %5695 = vmatpush3.bf16.msra.mxu1 %v1984_v41  ;;  %5701 = vmatpush3.bf16.msra.mxu0 %v1985_v51 }
 0x694   : > { %5706 = vmatprep.subr.bf16.mxu1 %v6316_v5  ;;  %5712 = vmatprep.subr.bf16.mxu0 %v6316_v5 }
 0x696   : > { %5697 = vmatmul.mubr.msk.bf16.vlgmr.msra.gmra.mxu1 %vm2177_vm3, %v2266_v60  ;;  %5703 = vmatmul.mubr.msk.bf16.vlgmr.msra.gmra.mxu0 %vm2177_vm3, %v2267_v26 }
 0x697   : > { %5707 = vmatpush3.bf16.msra.mxu1 %v1986_v23  ;;  %5713 = vmatpush3.bf16.msra.mxu0 %v1987_v30 }
 0x698   : > { %5708 = vmatprep.mubr.msk.bf16.mxu1 %vm6317_vm1, %v6316_v5  ;;  %5714 = vmatprep.mubr.msk.bf16.mxu0 %vm6317_vm1, %v6316_v5 }
 0x699   : > { %5718 = vmatprep.subr.bf16.mxu1 %v6316_v5  ;;  %5726 = vmatprep.subr.bf16.mxu0 %v6316_v5  ;;  %v6079_v0 = vpop.eup %6078 }
 0x69a   : > { %v2262_v44 = vmul.f32 %v6079_v0, %v6843_v32  ;;  %v6968_v32 = vld [vmem:[%s6484_s30 + $0x8] sm:$0xff]  }
 0x6af   : > { %v2243_v28 = vpop.xlane.xlu1 %2242 }
 0x6b0   : > { %6080 = vrcp.f32 %v2243_v28 }
 0x6b2   : > { %v2249_v63 = vpop.xlane.xlu0 %2248 }
 0x6b3   : > { %6082 = vrcp.f32 %v2249_v63  ;;  %v2853_v9 = vpop.permute.xlu1 %2852 }
 0x6b4   : > { %6084 = vrcp.f32 %v2246_v21 }
 0x6b6   : > { %v2851_v13 = vpop.permute.xlu0 %2850 }
 0x6b7   : > { %v2857_v10 = vpop.permute.xlu1 %2856 }
 0x6b8   : > { %v2868_v51 = vcombine.low %v6873_v48, %v2857_v10  ;;  %v2869_v23 = vcombine.high %v6873_v48, %v2857_v10 }
 0x6ba   : > { %v2863_v18 = vpop.permute.xlu0 %2862  ;;  %v2876_v30 = vrot.slane %v2868_v51, %v6633_v14 }
 0x6bb   : > { %v2859_v11 = vpop.permute.xlu1 %2858  ;;  %v2884_v40 = vcombine.low %v2851_v13, %v2863_v18  ;;  %v2885_v57 = vcombine.high %v2851_v13, %v2863_v18 }
 0x6bc   : > { %v2936_v61 = vcombine.low %v6867_v4, %v2859_v11  ;;  %v2937_v55 = vcombine.high %v6867_v4, %v2859_v11 }
 0x6bd   : > { %v6081_v42 = vpop.eup %6080  ;;  %v2892_v29 = vrot.slane %v2884_v40, %v6633_v14  ;;  %v2899_v28 = vrot.slane %v2885_v57, %v6633_v14 }
 0x6be   : > { %v2263_v52 = vmul.f32 %v6081_v42, %v6857_v62  ;;  %v6971_v62 = vld [vmem:[%s6484_s30 + $0x18] sm:$0xff]   ;;  %v6995_v38 = vpop.permute.xlu0 %2694  ;;  %v2944_v54 = vrot.slane %v2936_v61, %v6633_v14  ;;  %v2951_v4 = vrot.slane %v2937_v55, %v6633_v14 }
 0x6bf   : > { %v2865_v15 = vpop.permute.xlu1 %2864  ;;  %v2900_v63 = vcombine.low %v2876_v30, %v2892_v29  ;;  %v2901_v0 = vcombine.high %v2876_v30, %v2892_v29 }
 0x6c0   : > { %v6083_v58 = vpop.eup %6082  ;;  %v2268_v45 = vpack.c.bf16 %v2263_v52, %v2262_v44  ;;  %v2952_v41 = vcombine.low %v2853_v9, %v2865_v15  ;;  %v2953_v36 = vcombine.high %v2853_v9, %v2865_v15  ;;  %v2883_v52 = vrot.slane %v2869_v23, %v6633_v14 }
 0x6c1   : > { %v6085_v3 = vpop.eup %6084  ;;  %v2265_v6 = vmul.f32 %v6083_v58, %v6861_v47  ;;  %v6978_v47 = vld [vmem:[%s6484_s30] sm:$0xff]   ;;  %v2908_v9 = vrot.slane %v2900_v63, %v6636_v22  ;;  %v2915_v10 = vrot.slane %v2901_v0, %v6636_v22 }
 0x6c2   : > { %5709 = vmatmul.mubr.msk.bf16.vlgmr.msra.gmra.mxu1 %vm2177_vm3, %v2268_v45  ;;  %v2264_v7 = vmul.f32 %v6085_v3, %v6847_v34  ;;  %v6981_v34 = vld [vmem:[%s6484_s30 + $0x10] sm:$0xff]   ;;  %v2960_v60 = vrot.slane %v2952_v41, %v6633_v14  ;;  %v2701_v26 = vpop.permute.xlu0 %2700  ;;  %v2967_v21 = vrot.slane %v2953_v36, %v6633_v14 }
 0x6c3   : > { %5722 = vmatprep.mubr.msk.bf16.mxu1 %vm6317_vm1, %v6316_v5  ;;  %5719 = vmatpush3.bf16.msra.mxu1 %v6968_v32  ;;  %v6993_v25 = vpop.permute.xlu1 %2696 }
 0x6c4   : > { %v2269_v8 = vpack.c.bf16 %v2265_v6, %v2264_v7  ;;  %5720 = vmatprep.subr.bf16.mxu1 %v6316_v5  ;;  %v2968_v42 = vcombine.low %v2944_v54, %v2960_v60  ;;  %v2969_v58 = vcombine.high %v2944_v54, %v2960_v60  ;;  %v2984_v45 = vcombine.low %v2951_v4, %v2967_v21 }
 0x6c5   : > { %v2985_v3 = vcombine.high %v2951_v4, %v2967_v21  ;;  %v2916_v6 = vcombine.low %v2883_v52, %v2899_v28  ;;  %v2917_v7 = vcombine.high %v2883_v52, %v2899_v28 }
 0x6c6   : > { %5715 = vmatmul.mubr.msk.bf16.vlgmr.msra.gmra.mxu0 %vm2177_vm3, %v2269_v8  ;;  %v2707_v48 = vpop.permute.xlu0 %2706  ;;  %v2976_v11 = vrot.slane %v2968_v42, %v6636_v22  ;;  %v2983_v15 = vrot.slane %v2969_v58, %v6636_v22 }
 0x6c7   : > { %5730 = vmatprep.mubr.msk.bf16.mxu0 %vm6317_vm1, %v6316_v5  ;;  %5727 = vmatpush3.bf16.msra.mxu0 %v6971_v62  ;;  %v2703_v46 = vpop.permute.xlu1 %2702 }
 0x6c8   : > { %5728 = vmatprep.subr.bf16.mxu0 %v6316_v5  ;;  %5721 = vmatpush3.bf16.msra.mxu1 %v6978_v47  ;;  %v2780_v18 = vcombine.low %v6891_v27, %v2703_v46  ;;  %v3368_v41 = vcombine.low %v2976_v11, %v2983_v15  ;;  %v5395_v36 = vcombine.high %v2976_v11, %v2983_v15 }
 0x6c9   : > { %5734 = vmatprep.subr.bf16.mxu1 %v6316_v5 }
 0x6ca   : > { %v3375_v42 = vrot.slane %v3368_v41, %v6633_v14 }
 0x6cb   : > { %5729 = vmatpush3.bf16.msra.mxu0 %v6981_v34  ;;  %v2709_v44 = vpop.permute.xlu1 %2708 }
 0x6cc   : > { %5742 = vmatprep.subr.bf16.mxu0 %v6316_v5  ;;  %v2796_v8 = vcombine.low %v6993_v25, %v2709_v44  ;;  %v2797_v13 = vcombine.high %v6993_v25, %v2709_v44  ;;  %v2713_v25 = vcombine.high %v6889_v56, %v2701_v26  ;;  %v3383_v44 = vrot.slane %v5395_v36, %v6633_v14 }
 0x6ce   : > { %v2811_v40 = vrot.slane %v2797_v13, %v6633_v14  ;;  %v2727_v55 = vrot.slane %v2713_v25, %v6633_v14 }
 0x756   : > { %v2307_v2 = vpop.f32.mrf.mxu1  ;;  %v2351_v16 = vpop.f32.mrf.mxu0 }
 0x758   : > { %v5698_v49 = vpop.f32.mrf.mxu1  ;;  %v5704_v50 = vpop.f32.mrf.mxu0 }
 0x759   : > { %v2992_v49 = vrot.slane %v2984_v45, %v6636_v22  ;;  %v2999_v50 = vrot.slane %v2985_v3, %v6636_v22 }
 0x75a   : > { %v2310_v53 = vpop.f32.mrf.mxu1  ;;  %v2354_v19 = vpop.f32.mrf.mxu0 }
 0x75b   : > { %v2446_v31 = vpack.c.bf16 %v2310_v53, %v2307_v2  ;;  %v2447_v33 = vpack.c.bf16 %v2354_v19, %v2351_v16  ;;  %v2728_v2 = vcombine.low %v6995_v38, %v2707_v48  ;;  %v2729_v16 = vcombine.high %v6995_v38, %v2707_v48 }
 0x75c   : > { %v5699_v35 = vpop.f32.mrf.mxu1  ;;  %v5705_v37 = vpop.f32.mrf.mxu0  ;;  %v2781_v53 = vcombine.high %v6891_v27, %v2703_v46  ;;  %v2924_v19 = vrot.slane %v2916_v6, %v6636_v22  ;;  %v5393_v38 = vcombine.high %v2908_v9, %v2915_v10  ;;  %v2788_v27 = vrot.slane %v2780_v18, %v6633_v14 }
 0x75d   : > { %5723 = vmatmul.mubr.msk.bf16.vlgmr.msra.gmra.mxu1 %vm1988_vm2, %v2446_v31  ;;  %5731 = vmatmul.mubr.msk.bf16.vlgmr.msra.gmra.mxu0 %vm1988_vm2, %v2447_v33  ;;  %v2712_v31 = vcombine.low %v6889_v56, %v2701_v26  ;;  %v2804_v33 = vrot.slane %v2796_v8, %v6633_v14  ;;  %v2931_v35 = vrot.slane %v2917_v7, %v6636_v22 }
 0x75e   : > { %5735 = vmatpush3.bf16.msra.mxu1 %v6988_v20  ;;  %5743 = vmatpush3.bf16.msra.mxu0 %v6991_v24  ;;  %v3300_v37 = vcombine.low %v2908_v9, %v2915_v10  ;;  %v2736_v51 = vrot.slane %v2728_v2, %v6633_v14  ;;  %v2743_v61 = vrot.slane %v2729_v16, %v6633_v14 }
 0x75f   : > { %5736 = vmatprep.subr.bf16.mxu1 %v6316_v5  ;;  %5738 = vmatprep.mubr.msk.bf16.mxu1 %vm6317_vm1, %v6316_v5  ;;  %v3384_v46 = vcombine.low %v2992_v49, %v2999_v50  ;;  %v5396_v57 = vcombine.high %v2992_v49, %v2999_v50  ;;  %v2795_v56 = vrot.slane %v2781_v53, %v6633_v14 }
 0x760   : > { %5744 = vmatprep.subr.bf16.mxu0 %v6316_v5  ;;  %5746 = vmatprep.mubr.msk.bf16.mxu0 %vm6317_vm1, %v6316_v5  ;;  %v2720_v29 = vrot.slane %v2712_v31, %v6633_v14  ;;  %v2812_v60 = vcombine.low %v2788_v27, %v2804_v33  ;;  %v2813_v26 = vcombine.high %v2788_v27, %v2804_v33 }
 0x761   : > { %v3316_v23 = vcombine.low %v2924_v19, %v2931_v35  ;;  %v5394_v30 = vcombine.high %v2924_v19, %v2931_v35  ;;  %v2828_v54 = vcombine.low %v2795_v56, %v2811_v40  ;;  %v2829_v21 = vcombine.high %v2795_v56, %v2811_v40 }
 0x762   : > { %5737 = vmatpush3.bf16.msra.mxu1 %v7001_v39  ;;  %5745 = vmatpush3.bf16.msra.mxu0 %v7005_v1  ;;  %v2744_v28 = vcombine.low %v2720_v29, %v2736_v51  ;;  %v2745_v63 = vcombine.high %v2720_v29, %v2736_v51  ;;  %v2760_v0 = vcombine.low %v2727_v55, %v2743_v61 }
 0x763   : > { %5750 = vmatprep.subr.bf16.mxu1 %v6316_v5  ;;  %5756 = vmatprep.subr.bf16.mxu0 %v6316_v5  ;;  %v2761_v4 = vcombine.high %v2727_v55, %v2743_v61  ;;  %v3391_v52 = vrot.slane %v3384_v46, %v6633_v14  ;;  %v3399_v58 = vrot.slane %v5396_v57, %v6633_v14 }
 0x764   : > { %v3307_v45 = vrot.slane %v3300_v37, %v6633_v14  ;;  %v3315_v3 = vrot.slane %v5393_v38, %v6633_v14  ;;  %v2820_v48 = vrot.slane %v2812_v60, %v6636_v22  ;;  %v2827_v6 = vrot.slane %v2813_v26, %v6636_v22 }
 0x765   : > { %v3323_v7 = vrot.slane %v3316_v23, %v6633_v14  ;;  %v3331_v8 = vrot.slane %v5394_v30, %v6633_v14  ;;  %v2836_v9 = vrot.slane %v2828_v54, %v6636_v22  ;;  %v2843_v10 = vrot.slane %v2829_v21, %v6636_v22 }
 0x766   : > { %v2752_v11 = vrot.slane %v2744_v28, %v6636_v22  ;;  %v2759_v13 = vrot.slane %v2745_v63, %v6636_v22  ;;  %v2768_v15 = vrot.slane %v2760_v0, %v6636_v22  ;;  %v2775_v2 = vrot.slane %v2761_v4, %v6636_v22 }
 0x767   : > { %v3400_v16 = vcombine.low %v3375_v42, %v3383_v44  ;;  %v3416_v18 = vcombine.low %v3391_v52, %v3399_v58  ;;  %v3228_v49 = vcombine.low %v2820_v48, %v2827_v6  ;;  %v5391_v50 = vcombine.high %v2820_v48, %v2827_v6 }
 0x768   : > { %v3244_v53 = vcombine.low %v2836_v9, %v2843_v10  ;;  %v5392_v19 = vcombine.high %v2836_v9, %v2843_v10  ;;  %v3332_v31 = vcombine.low %v3307_v45, %v3315_v3  ;;  %v3348_v25 = vcombine.low %v3323_v7, %v3331_v8 }
 0x769   : > { %v3160_v33 = vcombine.low %v2752_v11, %v2759_v13  ;;  %v5389_v35 = vcombine.high %v2752_v11, %v2759_v13  ;;  %v3176_v37 = vcombine.low %v2768_v15, %v2775_v2  ;;  %v5390_v38 = vcombine.high %v2768_v15, %v2775_v2 }
 0x76a   : > { %v3408_v40 = vrot.slane %v3400_v16, %v6636_v22  ;;  %v3424_v41 = vrot.slane %v3416_v18, %v6636_v22  ;;  %v3235_v51 = vrot.slane %v3228_v49, %v6633_v14  ;;  %v3243_v61 = vrot.slane %v5391_v50, %v6633_v14 }
 0x76b   : > { %v3251_v27 = vrot.slane %v3244_v53, %v6633_v14  ;;  %v3259_v36 = vrot.slane %v5392_v19, %v6633_v14  ;;  %v3340_v46 = vrot.slane %v3332_v31, %v6636_v22  ;;  %v3356_v57 = vrot.slane %v3348_v25, %v6636_v22 }
 0x76c   : > { %v3167_v56 = vrot.slane %v3160_v33, %v6633_v14  ;;  %v3175_v29 = vrot.slane %v5389_v35, %v6633_v14  ;;  %v3183_v55 = vrot.slane %v3176_v37, %v6633_v14  ;;  %v3191_v60 = vrot.slane %v5390_v38, %v6633_v14 }
 0x76d   : > { %v3432_v26 = vcombine.low %v3408_v40, %v3424_v41  ;;  %v3401_v23 = vcombine.high %v3375_v42, %v3383_v44  ;;  %v3417_v30 = vcombine.high %v3391_v52, %v3399_v58  ;;  %v3260_v54 = vcombine.low %v3235_v51, %v3243_v61 }
 0x76e   : > { %v3276_v28 = vcombine.low %v3251_v27, %v3259_v36  ;;  %v3364_v63 = vcombine.low %v3340_v46, %v3356_v57  ;;  %v3333_v0 = vcombine.high %v3307_v45, %v3315_v3  ;;  %v3349_v4 = vcombine.high %v3323_v7, %v3331_v8 }
 0x76f   : > { %v3192_v48 = vcombine.low %v3167_v56, %v3175_v29  ;;  %v3208_v9 = vcombine.low %v3183_v55, %v3191_v60  ;;  %v3415_v11 = vrot.slane %v3401_v23, %v6636_v22  ;;  %v3431_v13 = vrot.slane %v3417_v30, %v6636_v22 }
 0x770   : > { %v3436_v10 = vpack.c.bf16 %v3432_v26, %v3364_v63  ;;  %v3268_v15 = vrot.slane %v3260_v54, %v6636_v22  ;;  %v3284_v42 = vrot.slane %v3276_v28, %v6636_v22  ;;  %v3347_v52 = vrot.slane %v3333_v0, %v6636_v22 }
 0x771   : > { %v3363_v58 = vrot.slane %v3349_v4, %v6636_v22  ;;  %v3433_v3 = vcombine.high %v3408_v40, %v3424_v41  ;;  %v3200_v7 = vrot.slane %v3192_v48, %v6636_v22  ;;  %v3216_v8 = vrot.slane %v3208_v9, %v6636_v22 }
 0x772   : > { %v3584_v18 = vsel %vm1988_vm2, %v3436_v10, 0  ;;  %v3434_v49 = vcombine.low %v3415_v11, %v3431_v13  ;;  %v3365_v50 = vcombine.high %v3340_v46, %v3356_v57  ;;  %v3261_v53 = vcombine.high %v3235_v51, %v3243_v61 }
 0x773   : > { %v3277_v19 = vcombine.high %v3251_v27, %v3259_v36  ;;  %v3292_v25 = vcombine.low %v3268_v15, %v3284_v42  ;;  %v3366_v33 = vcombine.low %v3347_v52, %v3363_v58  ;;  %v3193_v37 = vcombine.high %v3167_v56, %v3175_v29 }
 0x774   : > { %v3437_v35 = vpack.c.bf16 %v3433_v3, %v3365_v50  ;;  %v3209_v38 = vcombine.high %v3183_v55, %v3191_v60  ;;  %v3224_v41 = vcombine.low %v3200_v7, %v3216_v8  ;;  %v3275_v30 = vrot.slane %v3261_v53, %v6636_v22 }
 0x775   : > { %v3438_v26 = vpack.c.bf16 %v3434_v49, %v3366_v33  ;;  %v3291_v46 = vrot.slane %v3277_v19, %v6636_v22  ;;  %v3435_v61 = vcombine.high %v3415_v11, %v3431_v13  ;;  %v3207_v27 = vrot.slane %v3193_v37, %v6636_v22 }
 0x776   : > { %v3296_v54 = vpack.c.bf16 %v3292_v25, %v3224_v41  ;;  %v3631_v51 = vsel %vm1988_vm2, %v3437_v35, 0  ;;  %v3223_v36 = vrot.slane %v3209_v38, %v6636_v22  ;;  %v3293_v29 = vcombine.high %v3268_v15, %v3284_v42 }
 0x777   : > { %v3678_v56 = vsel %vm1988_vm2, %v3438_v26, 0  ;;  %v3367_v55 = vcombine.high %v3347_v52, %v3363_v58  ;;  %v3294_v60 = vcombine.low %v3275_v30, %v3291_v46 }
 0x778   : > { %v3226_v63 = vcombine.low %v3207_v27, %v3223_v36  ;;  %v3227_v9 = vcombine.high %v3207_v27, %v3223_v36 }
 0x779   : > { %v3439_v28 = vpack.c.bf16 %v3435_v61, %v3367_v55 }
 0x77a   : > { %v3298_v4 = vpack.c.bf16 %v3294_v60, %v3226_v63 }
 0x77b   : > { %v3725_v48 = vsel %vm1988_vm2, %v3439_v28, 0 }
 0x782   : > { %v2395_v21 = vpop.f32.mrf.mxu1 }
 0x784   : > { %v5710_v6 = vpop.f32.mrf.mxu1 }
 0x785   : > { %v3295_v6 = vcombine.high %v3275_v30, %v3291_v46 }
 0x786   : > { %v2398_v2 = vpop.f32.mrf.mxu1  ;;  %v2439_v16 = vpop.f32.mrf.mxu0 }
 0x787   : > { %v2448_v44 = vpack.c.bf16 %v2398_v2, %v2395_v21  ;;  %v3225_v21 = vcombine.high %v3200_v7, %v3216_v8  ;;  %v3299_v10 = vpack.c.bf16 %v3295_v6, %v3227_v9 }
 0x788   : > { %v5711_v45 = vpop.f32.mrf.mxu1  ;;  %v5716_v31 = vpop.f32.mrf.mxu0 }
 0x789   : > { %5739 = vmatmul.mubr.msk.bf16.vlgmr.msra.gmra.mxu1 %vm1988_vm2, %v2448_v44  ;;  %v3297_v0 = vpack.c.bf16 %v3293_v29, %v3225_v21 }
 0x78a   : > { %5751 = vmatpush3.bf16.xpose.msra.mxu1 %v3584_v18  ;;  %5752 = vmatprep.mubr.msk.bf16.mxu1 %vm6317_vm1, %v6316_v5  ;;  %v2442_v40 = vpop.f32.mrf.mxu0 }
 0x78b   : > { %5762 = vmatprep.subr.bf16.mxu1 %v6316_v5  ;;  %v2449_v23 = vpack.c.bf16 %v2442_v40, %v2439_v16 }
 0x78c   : > { %v5717_v57 = vpop.f32.mrf.mxu0 }
 0x78d   : > { %5747 = vmatmul.mubr.msk.bf16.vlgmr.msra.gmra.mxu0 %vm1988_vm2, %v2449_v23 }
 0x78e   : > { %5757 = vmatpush3.bf16.xpose.msra.mxu0 %v3631_v51  ;;  %5758 = vmatprep.mubr.msk.bf16.mxu0 %vm6317_vm1, %v6316_v5 }
 0x78f   : > { %5768 = vmatprep.subr.bf16.mxu0 %v6316_v5 }
 0x791   : > { %5753 = vmatmul.mubr.msk.bf16.vlgmr.msra.gmra.mxu1 %vm1988_vm2, %v3296_v54 }
 0x792   : > { %5763 = vmatpush3.bf16.xpose.msra.mxu1 %v3678_v56  ;;  %5764 = vmatprep.mubr.msk.bf16.mxu1 %vm6317_vm1, %v6316_v5 }
 0x793   : > { %5774 = vmatprep.subr.bf16.mxu1 %v6316_v5 }
 0x795   : > { %5759 = vmatmul.mubr.msk.bf16.vlgmr.msra.gmra.mxu0 %vm1988_vm2, %v3297_v0 }
 0x796   : > { %5769 = vmatpush3.bf16.xpose.msra.mxu0 %v3725_v48  ;;  %5770 = vmatprep.mubr.msk.bf16.mxu0 %vm6317_vm1, %v6316_v5 }
 0x797   : > { %5780 = vmatprep.subr.bf16.mxu0 %v6316_v5 }
 0x799   : > { %5765 = vmatmul.mubr.msk.bf16.vlgmr.msra.gmra.mxu1 %vm1988_vm2, %v3298_v4 }
 0x79a   : > { %5776 = vmatprep.mubr.msk.bf16.mxu1 %vm6317_vm1, %v6316_v5 }
 0x79d   : > { %5771 = vmatmul.mubr.msk.bf16.vlgmr.msra.gmra.mxu0 %vm1988_vm2, %v3299_v10 }
 0x79e   : > { %5782 = vmatprep.mubr.msk.bf16.mxu0 %vm6317_vm1, %v6316_v5 }
 0x81d   : > { %v2499_v11 = vpop.f32.mrf.mxu1  ;;  %v2555_v13 = vpop.f32.mrf.mxu0 }
 0x81e   : > { %v2674_v15 = vadd.f32 %v2555_v13, %v2499_v11 }
 0x81f   : > { %v5724_v2 = vpop.f32.mrf.mxu1  ;;  %v5732_v42 = vpop.f32.mrf.mxu0 }
 0x821   : > { %v2502_v44 = vpop.f32.mrf.mxu1  ;;  %v2558_v52 = vpop.f32.mrf.mxu0 }
 0x822   : > { %v2677_v58 = vadd.f32 %v2558_v52, %v2502_v44 }
 0x823   : > { %v5725_v45 = vpop.f32.mrf.mxu1  ;;  %v5733_v3 = vpop.f32.mrf.mxu0 }
 0x849   : > { %v2611_v7 = vpop.f32.mrf.mxu1 }
 0x84a   : > { %v2675_v8 = vadd.f32 %v2674_v15, %v2611_v7 }
 0x84b   : > { %v5740_v16 = vpop.f32.mrf.mxu1 }
 0x84d   : > { %v2614_v18 = vpop.f32.mrf.mxu1  ;;  %v2667_v53 = vpop.f32.mrf.mxu0 }
 0x84e   : > { %v2678_v49 = vadd.f32 %v2677_v58, %v2614_v18  ;;  %v7119_v19 = vadd.f32 %v2675_v8, %v2667_v53 }
 0x84f   : > { %v5741_v50 = vpop.f32.mrf.mxu1  ;;  %v5748_v25 = vpop.f32.mrf.mxu0 }
 0x851   : > { %v3620_v31 = vpop.f32.mrf.mxu1  ;;  %v2670_v37 = vpop.f32.mrf.mxu0 }
 0x852   : > { %v3768_v33 = vsel %vm2177_vm3, %v3620_v31, -inf  ;;  %v7122_v38 = vadd.f32 %v2678_v49, %v2670_v37 }
 0x853   : > { %3769 = vmax.xlane.f32.xlu0 %v3768_v33  ;;  %v5754_v35 = vpop.f32.mrf.mxu1  ;;  %v5749_v41 = vpop.f32.mrf.mxu0 }
 0x855   : > { %v3623_v40 = vpop.f32.mrf.mxu1  ;;  %v3667_v30 = vpop.f32.mrf.mxu0 }
 0x856   : > { %v3771_v26 = vsel %vm2177_vm3, %v3623_v40, -inf  ;;  %v3774_v46 = vsel %vm2177_vm3, %v3667_v30, -inf }
 0x857   : > { %3772 = vmax.xlane.f32.xlu1 %v3771_v26  ;;  %v5755_v23 = vpop.f32.mrf.mxu1  ;;  %v5760_v54 = vpop.f32.mrf.mxu0  ;;  %3775 = vmax.xlane.f32.xlu0 %v3774_v46 }
 0x859   : > { %v3714_v57 = vpop.f32.mrf.mxu1  ;;  %v3670_v61 = vpop.f32.mrf.mxu0 }
 0x85a   : > { %v3777_v27 = vsel %vm2177_vm3, %v3670_v61, -inf  ;;  %v3780_v60 = vsel %vm2177_vm3, %v3714_v57, -inf }
 0x85b   : > { %v5766_v51 = vpop.f32.mrf.mxu1  ;;  %v5761_v56 = vpop.f32.mrf.mxu0  ;;  %3778 = vmax.xlane.f32.xlu0 %v3777_v27 }
 0x85d   : > { %v7127_v36 = vpop.f32.mrf.mxu1  ;;  %v3761_v55 = vpop.f32.mrf.mxu0 }
 0x85e   : > { %v3786_v63 = vsel %vm2177_vm3, %v3761_v55, -inf  ;;  %v3783_v4 = vsel %vm2177_vm3, %v7127_v36, -inf }
 0x85f   : > { %v5767_v29 = vpop.f32.mrf.mxu1  ;;  %v5772_v21 = vpop.f32.mrf.mxu0  ;;  %3781 = vmax.xlane.f32.xlu0 %v3780_v60 }
 0x860   : > { %v7181_v21 = vld [vmem:[%s6494_s25] sm:$0xff] }
 0x861   : > { %v7130_v28 = vpop.f32.mrf.mxu0 }
 0x862   : > { %v3789_v48 = vsel %vm2177_vm3, %v7130_v28, -inf }
 0x863   : > { %v5773_v0 = vpop.f32.mrf.mxu0  ;;  %3787 = vmax.xlane.f32.xlu0 %v3786_v63 }
 0x868   : > { %3008 = vrot.lane.b32.xlu1 %v6766_v12, %s6314_s22 }
 0x86c   : > { %3012 = vrot.lane.b32.xlu1 %v6759_v43, %s6313_s28 }
 0x879   : > { %3006 = vrot.lane.b32.xlu0 %v6759_v43, %s6314_s22 }
 0x87d   : > { %3018 = vrot.lane.b32.xlu0 %v6759_v43, %s6315_s19 }
 0x890   : > { %3784 = vmax.xlane.f32.xlu1 %v3783_v4 }
 0x894   : > { %3790 = vmax.xlane.f32.xlu1 %v3789_v48 }
 0x8a5   : > { %3014 = vrot.lane.b32.xlu1 %v6766_v12, %s6313_s28 }
 0x8dc   : > { %v3770_v6 = vpop.xlane.xlu0 %3769 }
 0x8dd   : > { %v3792_v9 = vsub.f32 %v3620_v31, %v3770_v6  ;;  %v6159_v6 = vld [vmem:[#allocation2] sm:$0xff] }
 0x8df   : > { %v3800_v10 = vmul.f32 1.442695, %v3792_v9 }
 0x8e0   : > { %v3773_v11 = vpop.xlane.xlu1 %3772  ;;  %v3776_v15 = vpop.xlane.xlu0 %3775 }
 0x8e1   : > { %6086 = vpow2.f32 %v3800_v10  ;;  %v3793_v13 = vsub.f32 %v3623_v40, %v3773_v11  ;;  %v3794_v42 = vsub.f32 %v3667_v30, %v3776_v15  ;;  %v6160_v10 = vld [vmem:[#allocation2 + $0x10] sm:$0xff] }
 0x8e3   : > { %v3802_v2 = vmul.f32 1.442695, %v3793_v13  ;;  %v3804_v44 = vmul.f32 1.442695, %v3794_v42 }
 0x8e4   : > { %v3779_v52 = vpop.xlane.xlu0 %3778  ;;  %v7173_v46 = vpop.permute.xlu1 %3008 }
 0x8e5   : > { %6088 = vpow2.f32 %v3802_v2  ;;  %v3795_v58 = vsub.f32 %v3670_v61, %v3779_v52 }
 0x8e6   : > { %6090 = vpow2.f32 %v3804_v44 }
 0x8e7   : > { %v3806_v45 = vmul.f32 1.442695, %v3795_v58 }
 0x8e8   : > { %v3782_v3 = vpop.xlane.xlu0 %3781 }
 0x8e9   : > { %6092 = vpow2.f32 %v3806_v45  ;;  %v3796_v7 = vsub.f32 %v3714_v57, %v3782_v3  ;;  %v3013_v57 = vpop.permute.xlu1 %3012 }
 0x8ea   : > { %v3025_v42 = vcombine.high %v6759_v43, %v3013_v57 }
 0x8eb   : > { %v3808_v16 = vmul.f32 1.442695, %v3796_v7 }
 0x8ec   : > { %v3788_v18 = vpop.xlane.xlu0 %3787  ;;  %v3039_v3 = vrot.slane %v3025_v42, %v6633_v14 }
 0x8ed   : > { %6094 = vpow2.f32 %v3808_v16  ;;  %v3798_v50 = vsub.f32 %v3761_v55, %v3788_v18  ;;  %v2682_v55 = vsub.s32 1, %v6570_v17 }
 0x8ee   : > { %v7147_v8 = vpop.eup %6086 }
 0x8ef   : > { %v3816_v49 = vsel %vm2177_vm3, %v7147_v8, 0.0  ;;  %v3812_v31 = vmul.f32 1.442695, %v3798_v50  ;;  %v7184_v63 = vrot.slane %v7181_v21, %v2682_v55 }
 0x8f0   : > { %3817 = vadd.xlane.f32.xlu0 %v3816_v49 }
 0x8f1   : > { %6096 = vpow2.f32 %v3812_v31 }
 0x8f2   : > { %v7151_v53 = vpop.eup %6088 }
 0x8f3   : > { %v3819_v25 = vsel %vm2177_vm3, %v7151_v53, 0.0  ;;  %v7155_v33 = vpop.eup %6090 }
 0x8f4   : > { %3820 = vadd.xlane.f32.xlu1 %v3819_v25  ;;  %v3822_v35 = vsel %vm2177_vm3, %v7155_v33, 0.0 }
 0x8f5   : > { %3823 = vadd.xlane.f32.xlu0 %v3822_v35 }
 0x8f6   : > { %v7159_v37 = vpop.eup %6092 }
 0x8f7   : > { %v3825_v40 = vsel %vm2177_vm3, %v7159_v37, 0.0 }
 0x8f8   : > { %3826 = vadd.xlane.f32.xlu1 %v3825_v40 }
 0x8fa   : > { %v7163_v41 = vpop.eup %6094 }
 0x8fb   : > { %v3828_v26 = vsel %vm2177_vm3, %v7163_v41, 0.0 }
 0x8fc   : > { %3829 = vadd.xlane.f32.xlu0 %v3828_v26 }
 0x8fe   : > { %v7167_v23 = vpop.eup %6096 }
 0x8ff   : > { %v3834_v30 = vsel %vm2177_vm3, %v7167_v23, 0.0 }
 0x900   : > { %3835 = vadd.xlane.f32.xlu0 %v3834_v30 }
 0x909   : > { %3020 = vrot.lane.b32.xlu1 %v6766_v12, %s6315_s19 }
 0x919   : > { %v3785_v54 = vpop.xlane.xlu1 %3784 }
 0x91a   : > { %v3797_v51 = vsub.f32 %v7127_v36, %v3785_v54  ;;  %v2685_v36 = vadd.f32 %v7184_v63, %v7122_v38  ;;  %v3007_v38 = vpop.permute.xlu0 %3006 }
 0x91c   : > { %v3810_v61 = vmul.f32 1.442695, %v3797_v51  ;;  %v7196_v9 = vadd.f32 %v6159_v6, %v2685_v36 }
 0x91d   : > { %v3791_v27 = vpop.xlane.xlu1 %3790 }
 0x91e   : > { %6098 = vpow2.f32 %v3810_v61  ;;  %v3799_v56 = vsub.f32 %v7130_v28, %v3791_v27  ;;  %v2684_v28 = vadd.f32 %v7184_v63, %v7119_v19  ;;  %v3019_v13 = vpop.permute.xlu0 %3018  ;;  %v3024_v19 = vcombine.low %v6759_v43, %v3013_v57 }
 0x91f   : > { %v3040_v15 = vcombine.low %v3007_v38, %v3019_v13  ;;  %v3041_v2 = vcombine.high %v3007_v38, %v3019_v13 }
 0x920   : > { %v3814_v29 = vmul.f32 1.442695, %v3799_v56  ;;  %v7198_v11 = vadd.f32 %v6160_v10, %v2684_v28  ;;  %v3032_v58 = vrot.slane %v3024_v19, %v6633_v14 }
 0x921   : > { %v3048_v44 = vrot.slane %v3040_v15, %v6633_v14  ;;  %v3015_v52 = vpop.permute.xlu1 %3014  ;;  %v3055_v45 = vrot.slane %v3041_v2, %v6633_v14 }
 0x922   : > { %6100 = vpow2.f32 %v3814_v29  ;;  %v3092_v57 = vcombine.low %v6766_v12, %v3015_v52  ;;  %v3093_v54 = vcombine.high %v6766_v12, %v3015_v52 }
 0x923   : > { %v3056_v7 = vcombine.low %v3032_v58, %v3048_v44  ;;  %v3057_v16 = vcombine.high %v3032_v58, %v3048_v44  ;;  %v3072_v49 = vcombine.low %v3039_v3, %v3055_v45  ;;  %v3073_v50 = vcombine.high %v3039_v3, %v3055_v45 }
 0x924   : > { %v3100_v28 = vrot.slane %v3092_v57, %v6633_v14 }
 0x925   : > { %v3064_v31 = vrot.slane %v3056_v7, %v6636_v22  ;;  %v3071_v25 = vrot.slane %v3057_v16, %v6636_v22  ;;  %v3080_v43 = vrot.slane %v3072_v49, %v6636_v22  ;;  %v3087_v40 = vrot.slane %v3073_v50, %v6636_v22 }
 0x927   : > { %v3440_v30 = vcombine.low %v3064_v31, %v3071_v25  ;;  %v5397_v51 = vcombine.high %v3064_v31, %v3071_v25  ;;  %v3456_v61 = vcombine.low %v3080_v43, %v3087_v40  ;;  %v5398_v27 = vcombine.high %v3080_v43, %v3087_v40 }
 0x929   : > { %v3447_v36 = vrot.slane %v3440_v30, %v6633_v14  ;;  %v3455_v10 = vrot.slane %v5397_v51, %v6633_v14  ;;  %v3463_v38 = vrot.slane %v3456_v61, %v6633_v14  ;;  %v3471_v13 = vrot.slane %v5398_v27, %v6633_v14 }
 0x92b   : > { %v7178_v60 = vpop.eup %6098  ;;  %v3472_v45 = vcombine.low %v3447_v36, %v3455_v10  ;;  %v3488_v3 = vcombine.low %v3463_v38, %v3471_v13  ;;  %v3489_v30 = vcombine.high %v3463_v38, %v3471_v13 }
 0x92c   : > { %v3831_v0 = vsel %vm2177_vm3, %v7178_v60, 0.0 }
 0x92d   : > { %3832 = vadd.xlane.f32.xlu1 %v3831_v0  ;;  %v3480_v43 = vrot.slane %v3472_v45, %v6636_v22  ;;  %v3496_v40 = vrot.slane %v3488_v3, %v6636_v22 }
 0x92f   : > { %v7190_v4 = vpop.eup %6100  ;;  %v3505_v38 = vcombine.high %v3480_v43, %v3496_v40 }
 0x930   : > { %v3837_v48 = vsel %vm2177_vm3, %v7190_v4, 0.0 }
 0x931   : > { %3838 = vadd.xlane.f32.xlu0 %v3837_v48  ;;  %4234 = vadd.xlane.f32.xlu1 %v7196_v9  ;;  %v3107_v48 = vrot.slane %v3093_v54, %v6633_v14 }
 0x935   : > { %4232 = vadd.xlane.f32.xlu0 %v7198_v11 }
 0x979   : > { %v3818_v35 = vpop.xlane.xlu0 %3817 }
 0x97d   : > { %v3821_v18 = vpop.xlane.xlu1 %3820 }
 0x97e   : > { %v3824_v29 = vpop.xlane.xlu0 %3823  ;;  %6102 = vrcp.f32 %v3821_v18 }
 0x981   : > { %v3827_v26 = vpop.xlane.xlu1 %3826 }
 0x982   : > { %6104 = vrcp.f32 %v3827_v26  ;;  %v3473_v26 = vcombine.high %v3447_v36, %v3455_v10  ;;  %v3503_v36 = vrot.slane %v3489_v30, %v6636_v22 }
 0x983   : > { %6106 = vrcp.f32 %v3818_v35 }
 0x984   : > { %6108 = vrcp.f32 %v3824_v29 }
 0x985   : > { %v3021_v56 = vpop.permute.xlu1 %3020 }
 0x986   : > { %v3108_v55 = vcombine.low %v7173_v46, %v3021_v56  ;;  %v3109_v0 = vcombine.high %v7173_v46, %v3021_v56 }
 0x988   : > { %v3116_v12 = vrot.slane %v3108_v55, %v6633_v14  ;;  %v3123_v6 = vrot.slane %v3109_v0, %v6633_v14 }
 0x98a   : > { %v3124_v46 = vcombine.low %v3100_v28, %v3116_v12  ;;  %v3125_v15 = vcombine.high %v3100_v28, %v3116_v12  ;;  %v3140_v19 = vcombine.low %v3107_v48, %v3123_v6  ;;  %v3141_v2 = vcombine.high %v3107_v48, %v3123_v6 }
 0x98b   : > { %v6103_v27 = vpop.eup %6102  ;;  %v3487_v48 = vrot.slane %v3473_v26, %v6636_v22  ;;  %v3504_v6 = vcombine.low %v3480_v43, %v3496_v40 }
 0x98c   : > { %v3132_v42 = vrot.slane %v3124_v46, %v6636_v22  ;;  %v3139_v44 = vrot.slane %v3125_v15, %v6636_v22  ;;  %v3148_v52 = vrot.slane %v3140_v19, %v6636_v22  ;;  %v3155_v58 = vrot.slane %v3141_v2, %v6636_v22 }
 0x98d   : > { %v3849_v46 = vmul.f32 %v6103_v27, %v7151_v53  ;;  %v3507_v45 = vcombine.high %v3487_v48, %v3503_v36 }
 0x98e   : > { %v3508_v7 = vcombine.low %v3132_v42, %v3139_v44  ;;  %v5399_v16 = vcombine.high %v3132_v42, %v3139_v44  ;;  %v3524_v18 = vcombine.low %v3148_v52, %v3155_v58  ;;  %v5400_v49 = vcombine.high %v3148_v52, %v3155_v58 }
 0x98f   : > { %v6105_v56 = vpop.eup %6104 }
 0x990   : > { %v3515_v50 = vrot.slane %v3508_v7, %v6633_v14  ;;  %v3523_v31 = vrot.slane %v5399_v16, %v6633_v14  ;;  %v3531_v25 = vrot.slane %v3524_v18, %v6633_v14  ;;  %v3539_v35 = vrot.slane %v5400_v49, %v6633_v14  ;;  %v6107_v28 = vpop.eup %6106 }
 0x991   : > { %v6109_v12 = vpop.eup %6108  ;;  %v3851_v15 = vmul.f32 %v6105_v56, %v7159_v37  ;;  %v3848_v52 = vmul.f32 %v6107_v28, %v7147_v8  ;;  %v3830_v8 = vpop.xlane.xlu0 %3829 }
 0x992   : > { %v3540_v57 = vcombine.low %v3515_v50, %v3523_v31  ;;  %v3556_v54 = vcombine.low %v3531_v25, %v3539_v35  ;;  %v3541_v51 = vcombine.high %v3515_v50, %v3523_v31  ;;  %v3557_v61 = vcombine.high %v3531_v25, %v3539_v35 }
 0x993   : > { %v3850_v58 = vmul.f32 %v6109_v12, %v7155_v33  ;;  %v3856_v3 = vpack.c.bf16 %v3849_v46, %v3848_v52  ;;  %6110 = vrcp.f32 %v3830_v8 }
 0x994   : > { %v3548_v29 = vrot.slane %v3540_v57, %v6636_v22  ;;  %v3564_v55 = vrot.slane %v3556_v54, %v6636_v22  ;;  %v3555_v0 = vrot.slane %v3541_v51, %v6636_v22  ;;  %v3571_v14 = vrot.slane %v3557_v61, %v6636_v22 }
 0x995   : > { %v3506_v22 = vcombine.low %v3487_v48, %v3503_v36  ;;  %v3857_v7 = vpack.c.bf16 %v3851_v15, %v3850_v58  ;;  %v3836_v33 = vpop.xlane.xlu0 %3835 }
 0x996   : > { %v3572_v10 = vcombine.low %v3548_v29, %v3564_v55  ;;  %v3573_v13 = vcombine.high %v3548_v29, %v3564_v55  ;;  %v3574_v42 = vcombine.low %v3555_v0, %v3571_v14  ;;  %v3575_v44 = vcombine.high %v3555_v0, %v3571_v14 }
 0x997   : > { %6112 = vrcp.f32 %v3836_v33 }
 0x998   : > { %v3576_v19 = vpack.c.bf16 %v3572_v10, %v3504_v6  ;;  %v3577_v2 = vpack.c.bf16 %v3573_v13, %v3505_v38  ;;  %v3578_v53 = vpack.c.bf16 %v3574_v42, %v3506_v22  ;;  %v3579_v37 = vpack.c.bf16 %v3575_v44, %v3507_v45 }
 0x99a   : > { %5775 = vmatpush3.bf16.msra.mxu1 %v3576_v19  ;;  %5781 = vmatpush3.bf16.msra.mxu0 %v3577_v2 }
 0x99b   : > { %5786 = vmatprep.subr.bf16.mxu1 %v6316_v5  ;;  %5792 = vmatprep.subr.bf16.mxu0 %v6316_v5 }
 0x99d   : > { %5777 = vmatmul.mubr.msk.bf16.vlgmr.msra.gmra.mxu1 %vm2177_vm3, %v3856_v3  ;;  %5783 = vmatmul.mubr.msk.bf16.vlgmr.msra.gmra.mxu0 %vm2177_vm3, %v3857_v7 }
 0x99e   : > { %5787 = vmatpush3.bf16.msra.mxu1 %v3578_v53  ;;  %5793 = vmatpush3.bf16.msra.mxu0 %v3579_v37 }
 0x99f   : > { %5788 = vmatprep.mubr.msk.bf16.mxu1 %vm6317_vm1, %v6316_v5  ;;  %5794 = vmatprep.mubr.msk.bf16.mxu0 %vm6317_vm1, %v6316_v5 }
 0x9a0   : > { %5798 = vmatprep.subr.bf16.mxu1 %v6316_v5  ;;  %5806 = vmatprep.subr.bf16.mxu0 %v6316_v5  ;;  %v6111_v49 = vpop.eup %6110 }
 0x9a1   : > { %v3852_v35 = vmul.f32 %v6111_v49, %v7163_v41 }
 0x9a4   : > { %v6113_v50 = vpop.eup %6112 }
 0x9a5   : > { %v3854_v40 = vmul.f32 %v6113_v50, %v7167_v23 }
 0x9b6   : > { %v3833_v16 = vpop.xlane.xlu1 %3832 }
 0x9b7   : > { %6114 = vrcp.f32 %v3833_v16  ;;  %v6161_v16 = vld [vmem:[#allocation2 + $0x18] sm:$0xff] }
 0x9ba   : > { %v3839_v18 = vpop.xlane.xlu0 %3838  ;;  %v4235_v22 = vpop.xlane.xlu1 %4234 }
 0x9bb   : > { %6116 = vrcp.f32 %v3839_v18  ;;  %v4241_v8 = vmul.f32 0.0078125, %v4235_v22 }
 0x9be   : > { %v4233_v13 = vpop.xlane.xlu0 %4232 }
 0x9bf   : > { %v4240_v42 = vmul.f32 0.0078125, %v4233_v13 }
 0x9c1   : > { %v7290_v33 = vsub.f32 %v7198_v11, %v4240_v42 }
 0x9c4   : > { %v6115_v31 = vpop.eup %6114 }
 0x9c5   : > { %v3853_v43 = vmul.f32 %v6115_v31, %v7178_v60 }
 0x9c7   : > { %v3858_v30 = vpack.c.bf16 %v3853_v43, %v3852_v35  ;;  %v6162_v35 = vld [vmem:[#allocation2 + $0x8] sm:$0xff] }
 0x9c8   : > { %v6117_v25 = vpop.eup %6116 }
 0x9c9   : > { %v3855_v26 = vmul.f32 %v6117_v25, %v7190_v4  ;;  %5789 = vmatmul.mubr.msk.bf16.vlgmr.msra.gmra.mxu1 %vm2177_vm3, %v3858_v30  ;;  %v7297_v25 = vsub.f32 %v7196_v9, %v4241_v8  ;;  %v5968_v30 = vld [vmem:[%s6489_s27 + $0xe4] ss:$16 sps:$4 sm:$0xff]  }
 0x9ca   : > { %5799 = vmatpush3.bf16.msra.mxu1 %v6968_v32  ;;  %5802 = vmatprep.mubr.msk.bf16.mxu1 %vm6317_vm1, %v6316_v5 }
 0x9cb   : > { %v3859_v57 = vpack.c.bf16 %v3855_v26, %v3854_v40  ;;  %5800 = vmatprep.subr.bf16.mxu1 %v6316_v5  ;;  %v4248_v40 = vmul.f32 %v7290_v33, %v7290_v33  ;;  %v5966_v26 = vld [vmem:[%s6489_s27 + $0xe0] ss:$16 sps:$4 sm:$0xff]  }
 0x9cd   : > { %5795 = vmatmul.mubr.msk.bf16.vlgmr.msra.gmra.mxu0 %vm2177_vm3, %v3859_v57  ;;  %v5969_v57 = vld [vmem:[%s6489_s27 + $0xe8] ss:$16 sps:$4 sm:$0xff]  }
 0x9ce   : > { %5807 = vmatpush3.bf16.msra.mxu0 %v6971_v62  ;;  %5810 = vmatprep.mubr.msk.bf16.mxu0 %vm6317_vm1, %v6316_v5 }
 0x9cf   : > { %5808 = vmatprep.subr.bf16.mxu0 %v6316_v5  ;;  %5801 = vmatpush3.bf16.msra.mxu1 %v6978_v47 }
 0x9d0   : > { %5814 = vmatprep.subr.bf16.mxu1 %v6316_v5 }
 0x9d2   : > { %5809 = vmatpush3.bf16.msra.mxu0 %v6981_v34 }
 0x9d3   : > { %5822 = vmatprep.subr.bf16.mxu0 %v6316_v5 }
 0xa5d   : > { %v3897_v32 = vpop.f32.mrf.mxu1  ;;  %v3941_v62 = vpop.f32.mrf.mxu0 }
 0xa5f   : > { %v5778_v41 = vpop.f32.mrf.mxu1  ;;  %v5784_v23 = vpop.f32.mrf.mxu0 }
 0xa60   : > { %v5974_v41 = vld [vmem:[%s6489_s27 + $0xc4] ss:$16 sps:$4 sm:$0xff]   ;;  %v5975_v23 = vld [vmem:[%s6489_s27 + $0xc8] ss:$16 sps:$4 sm:$0xff]  }
 0xa61   : > { %v3900_v60 = vpop.f32.mrf.mxu1  ;;  %v3944_v4 = vpop.f32.mrf.mxu0 }
 0xa62   : > { %v4036_v54 = vpack.c.bf16 %v3900_v60, %v3897_v32  ;;  %v4037_v51 = vpack.c.bf16 %v3944_v4, %v3941_v62  ;;  %v5971_v32 = vld [vmem:[%s6489_s27 + $0xec] ss:$16 sps:$4 sm:$0xff]   ;;  %v5972_v62 = vld [vmem:[%s6489_s27 + $0xc0] ss:$16 sps:$4 sm:$0xff]  }
 0xa63   : > { %v5779_v61 = vpop.f32.mrf.mxu1  ;;  %v5785_v27 = vpop.f32.mrf.mxu0  ;;  %v5977_v60 = vld [vmem:[%s6489_s27 + $0xcc] ss:$16 sps:$4 sm:$0xff]   ;;  %v5978_v4 = vld [vmem:[%s6489_s27 + $0xa0] ss:$16 sps:$4 sm:$0xff]  }
 0xa64   : > { %5803 = vmatmul.mubr.msk.bf16.vlgmr.msra.gmra.mxu1 %vm1988_vm2, %v4036_v54  ;;  %5811 = vmatmul.mubr.msk.bf16.vlgmr.msra.gmra.mxu0 %vm1988_vm2, %v4037_v51  ;;  %v5980_v54 = vld [vmem:[%s6489_s27 + $0xa4] ss:$16 sps:$4 sm:$0xff]   ;;  %v5981_v51 = vld [vmem:[%s6489_s27 + $0xa8] ss:$16 sps:$4 sm:$0xff]   ;;  %v5983_v61 = vld [vmem:[%s6489_s27 + $0xac] ss:$16 sps:$4 sm:$0xff]  }
 0xa65   : > { %5815 = vmatpush3.bf16.msra.mxu1 %v6988_v20  ;;  %5823 = vmatpush3.bf16.msra.mxu0 %v6991_v24  ;;  %v5986_v27 = vld [vmem:[%s6489_s27 + $0x84] ss:$16 sps:$4 sm:$0xff]  }
 0xa66   : > { %5816 = vmatprep.subr.bf16.mxu1 %v6316_v5  ;;  %5818 = vmatprep.mubr.msk.bf16.mxu1 %vm6317_vm1, %v6316_v5 }
 0xa67   : > { %5824 = vmatprep.subr.bf16.mxu0 %v6316_v5  ;;  %5826 = vmatprep.mubr.msk.bf16.mxu0 %vm6317_vm1, %v6316_v5 }
 0xa69   : > { %5817 = vmatpush3.bf16.msra.mxu1 %v7001_v39  ;;  %5825 = vmatpush3.bf16.msra.mxu0 %v7005_v1 }
 0xa6a   : > { %4502 = vmatprep.subr.bf16.mxu1 %v5968_v30  ;;  %4555 = vmatprep.subr.bf16.mxu0 %v5971_v32  ;;  %v6015_v32 = vld [vmem:[%s6473_s11 + $0xf8] sm:$0xff]  }
 0xa89   : > { %v3985_v47 = vpop.f32.mrf.mxu1 }
 0xa8b   : > { %v5790_v56 = vpop.f32.mrf.mxu1 }
 0xa8c   : > { %v5987_v56 = vld [vmem:[%s6489_s27 + $0x88] ss:$16 sps:$4 sm:$0xff]  }
 0xa8d   : > { %v4029_v34 = vpop.f32.mrf.mxu0  ;;  %v3988_v29 = vpop.f32.mrf.mxu1 }
 0xa8e   : > { %v4038_v24 = vpack.c.bf16 %v3988_v29, %v3985_v47  ;;  %v5989_v47 = vld [vmem:[%s6489_s27 + $0x8c] ss:$16 sps:$4 sm:$0xff]  }
 0xa8f   : > { %v5796_v20 = vpop.f32.mrf.mxu0  ;;  %v5791_v0 = vpop.f32.mrf.mxu1  ;;  %v5995_v29 = vld [vmem:[%s6489_s27 + $0x6c] ss:$16 sps:$4 sm:$0xff]  }
 0xa90   : > { %5819 = vmatmul.mubr.msk.bf16.vlgmr.msra.gmra.mxu1 %vm1988_vm2, %v4038_v24  ;;  %v5992_v20 = vld [vmem:[%s6489_s27 + $0x64] ss:$16 sps:$4 sm:$0xff]   ;;  %v5990_v24 = vld [vmem:[%s6489_s27 + $0x60] ss:$16 sps:$4 sm:$0xff]  }
 0xa91   : > { %v4032_v55 = vpop.f32.mrf.mxu0  ;;  %4534 = vmatprep.mubr.bf16.mxu1 %v6312_v59  ;;  %4503 = vmatpush1.bf16.msra.mxu1 %v5966_v26  ;;  %v5998_v0 = vld [vmem:[%s6489_s27 + $0x44] ss:$16 sps:$4 sm:$0xff]  }
 0xa92   : > { %v4039_v14 = vpack.c.bf16 %v4032_v55, %v4029_v34  ;;  %4504 = vmatprep.subr.bf16.mxu1 %v5974_v41  ;;  %v5984_v34 = vld [vmem:[%s6489_s27 + $0x80] ss:$16 sps:$4 sm:$0xff]   ;;  %v5993_v55 = vld [vmem:[%s6489_s27 + $0x68] ss:$16 sps:$4 sm:$0xff]  }
 0xa93   : > { %v5797_v28 = vpop.f32.mrf.mxu0  ;;  %v6017_v41 = vld [vmem:[%s6473_s11 + $0xb8] sm:$0xff]  }
 0xa94   : > { %5827 = vmatmul.mubr.msk.bf16.vlgmr.msra.gmra.mxu0 %vm1988_vm2, %v4039_v14  ;;  %v6001_v14 = vld [vmem:[%s6489_s27 + $0x4c] ss:$16 sps:$4 sm:$0xff]   ;;  %v5996_v28 = vld [vmem:[%s6489_s27 + $0x40] ss:$16 sps:$4 sm:$0xff]  }
 0xa95   : > { %4587 = vmatprep.mubr.bf16.mxu0 %v6312_v59  ;;  %4556 = vmatpush1.bf16.msra.mxu0 %v5969_v57 }
 0xa96   : > { %4557 = vmatprep.subr.bf16.mxu0 %v5977_v60  ;;  %4505 = vmatpush1.bf16.msra.mxu1 %v5972_v62  ;;  %v6016_v62 = vld [vmem:[%s6473_s11 + $0x38] sm:$0xff]   ;;  %v6019_v60 = vld [vmem:[%s6473_s11 + $0xf0] sm:$0xff]  }
 0xa97   : > { %4506 = vmatprep.subr.bf16.mxu1 %v5980_v54  ;;  %v6021_v54 = vld [vmem:[%s6473_s11 + $0xb0] sm:$0xff]  }
 0xa99   : > { %4558 = vmatpush1.bf16.msra.mxu0 %v5975_v23  ;;  %v6018_v23 = vld [vmem:[%s6473_s11 + $0x70] sm:$0xff]  }
 0xa9a   : > { %4559 = vmatprep.subr.bf16.mxu0 %v5983_v61  ;;  %4507 = vmatpush1.bf16.msra.mxu1 %v5978_v4  ;;  %v6020_v4 = vld [vmem:[%s6473_s11 + $0x30] sm:$0xff]   ;;  %v6024_v61 = vld [vmem:[%s6473_s11 + $0x28] sm:$0xff]  }
 0xa9b   : > { %4508 = vmatprep.subr.bf16.mxu1 %v5986_v27  ;;  %v6025_v27 = vld [vmem:[%s6473_s11 + $0xa8] sm:$0xff]  }
 0xa9d   : > { %4560 = vmatpush1.bf16.msra.mxu0 %v5981_v51  ;;  %v6023_v51 = vld [vmem:[%s6473_s11 + $0xe8] sm:$0xff]  }
 0xa9e   : > { %4561 = vmatprep.subr.bf16.mxu0 %v5989_v47  ;;  %4509 = vmatpush1.bf16.msra.mxu1 %v5984_v34  ;;  %v6026_v47 = vld [vmem:[%s6473_s11 + $0x60] sm:$0xff]  }
 0xa9f   : > { %4510 = vmatprep.subr.bf16.mxu1 %v5992_v20  ;;  %v6027_v34 = vld [vmem:[%s6473_s11 + $0xe0] sm:$0xff]  }
 0xaa0   : > { %v6029_v20 = vld [vmem:[%s6473_s11 + $0xa0] sm:$0xff]  }
 0xaa1   : > { %4562 = vmatpush1.bf16.msra.mxu0 %v5987_v56  ;;  %v6028_v56 = vld [vmem:[%s6473_s11 + $0x20] sm:$0xff]  }
 0xaa2   : > { %4563 = vmatprep.subr.bf16.mxu0 %v5995_v29  ;;  %4511 = vmatpush1.bf16.msra.mxu1 %v5990_v24  ;;  %v6030_v29 = vld [vmem:[%s6473_s11 + $0x58] sm:$0xff]  }
 0xaa3   : > { %4512 = vmatprep.subr.bf16.mxu1 %v5998_v0  ;;  %v6031_v24 = vld [vmem:[%s6473_s11 + $0xd8] sm:$0xff]  }
 0xaa4   : > { %v6033_v0 = vld [vmem:[%s6473_s11 + $0x98] sm:$0xff]  }
 0xaa5   : > { %4564 = vmatpush1.bf16.msra.mxu0 %v5993_v55  ;;  %v6032_v55 = vld [vmem:[%s6473_s11 + $0x18] sm:$0xff]  }
 0xaa6   : > { %4565 = vmatprep.subr.bf16.mxu0 %v6001_v14  ;;  %4513 = vmatpush1.bf16.msra.mxu1 %v5996_v28  ;;  %v6034_v14 = vld [vmem:[%s6473_s11 + $0x50] sm:$0xff]  }
 0xaa7   : > { %v6035_v28 = vld [vmem:[%s6473_s11 + $0xd0] sm:$0xff]  }
 0xb24   : > { %v4077_v5 = vpop.f32.mrf.mxu1  ;;  %v4121_v39 = vpop.f32.mrf.mxu0 }
 0xb25   : > { %v4216_v38 = vadd.f32 %v4121_v39, %v4077_v5  ;;  %v5999_v5 = vld [vmem:[%s6489_s27 + $0x48] ss:$16 sps:$4 sm:$0xff]   ;;  %v6004_v39 = vld [vmem:[%s6489_s27 + $0x24] ss:$16 sps:$4 sm:$0xff]  }
 0xb26   : > { %v5804_v1 = vpop.f32.mrf.mxu1  ;;  %v5812_v48 = vpop.f32.mrf.mxu0  ;;  %4566 = vmatpush1.bf16.msra.mxu0 %v5999_v5  ;;  %4514 = vmatprep.subr.bf16.mxu1 %v6004_v39  ;;  %v6036_v5 = vld [vmem:[%s6473_s11 + $0x10] sm:$0xff]  }
 0xb27   : > { %v6007_v1 = vld [vmem:[%s6489_s27 + $0x2c] ss:$16 sps:$4 sm:$0xff]   ;;  %v6002_v48 = vld [vmem:[%s6489_s27 + $0x20] ss:$16 sps:$4 sm:$0xff]  }
 0xb28   : > { %v4080_v36 = vpop.f32.mrf.mxu1  ;;  %v4124_v12 = vpop.f32.mrf.mxu0  ;;  %4567 = vmatprep.subr.bf16.mxu0 %v6007_v1  ;;  %4515 = vmatpush1.bf16.msra.mxu1 %v6002_v48  ;;  %v6037_v39 = vld [vmem:[%s6473_s11 + $0x90] sm:$0xff]   ;;  %v6038_v1 = vld [vmem:[%s6473_s11 + $0x48] sm:$0xff]  }
 0xb29   : > { %v4219_v44 = vadd.f32 %v4124_v12, %v4080_v36  ;;  %v6005_v36 = vld [vmem:[%s6489_s27 + $0x28] ss:$16 sps:$4 sm:$0xff]   ;;  %v6010_v12 = vld [vmem:[%s6489_s27 + $0x4] ss:$16 sps:$4 sm:$0xff]  }
 0xb2a   : > { %v5805_v6 = vpop.f32.mrf.mxu1  ;;  %v5813_v10 = vpop.f32.mrf.mxu0  ;;  %4568 = vmatpush1.bf16.msra.mxu0 %v6005_v36  ;;  %4516 = vmatprep.subr.bf16.mxu1 %v6010_v12  ;;  %v6039_v48 = vld [vmem:[%s6473_s11 + $0xc8] sm:$0xff]  }
 0xb2b   : > { %v6013_v6 = vld [vmem:[%s6489_s27 + $0xc] ss:$16 sps:$4 sm:$0xff]   ;;  %v6008_v10 = vld [vmem:[%s6489_s27] ss:$16 sps:$4 sm:$0xff]  }
 0xb2c   : > { %4569 = vmatprep.subr.bf16.mxu0 %v6013_v6  ;;  %4517 = vmatpush1.bf16.msra.mxu1 %v6008_v10  ;;  %v6040_v36 = vld [vmem:[%s6473_s11 + $0x8] sm:$0xff]   ;;  %v6042_v6 = vld [vmem:[%s6473_s11 + $0x40] sm:$0xff]  }
 0xb2d   : > { %v6041_v12 = vld [vmem:[%s6473_s11 + $0x88] sm:$0xff]   ;;  %v6043_v10 = vld [vmem:[%s6473_s11 + $0xc0] sm:$0xff]  }
 0xb50   : > { %v4165_v46 = vpop.f32.mrf.mxu1 }
 0xb51   : > { %v4217_v15 = vadd.f32 %v4216_v38, %v4165_v46  ;;  %v6011_v38 = vld [vmem:[%s6489_s27 + $0x8] ss:$16 sps:$4 sm:$0xff]  }
 0xb52   : > { %v5820_v2 = vpop.f32.mrf.mxu1  ;;  %4570 = vmatpush1.bf16.msra.mxu0 %v6011_v38 }
 0xb53   : > { %5594 = vmatprep.subr.bf16.mxu0 %v6015_v32 }
 0xb54   : > { %v4209_v19 = vpop.f32.mrf.mxu0  ;;  %v4168_v45 = vpop.f32.mrf.mxu1 }
 0xb55   : > { %v4218_v52 = vadd.f32 %v4217_v15, %v4209_v19  ;;  %v4220_v3 = vadd.f32 %v4219_v44, %v4168_v45 }
 0xb56   : > { %v5828_v58 = vpop.f32.mrf.mxu0  ;;  %v5821_v37 = vpop.f32.mrf.mxu1 }
 0xb57   : > { %v4222_v7 = vadd.f32 %v4218_v52, %v7184_v63  ;;  %v4278_v37 = vsub.s32 4, %v6570_v17 }
 0xb58   : > { %v4212_v53 = vpop.f32.mrf.mxu0 }
 0xb59   : > { %v7292_v18 = vadd.f32 %v6161_v16, %v4222_v7  ;;  %v4221_v49 = vadd.f32 %v4220_v3, %v4212_v53 }
 0xb5a   : > { %v5829_v50 = vpop.f32.mrf.mxu0 }
 0xb5b   : > { %v4223_v31 = vadd.f32 %v4221_v49, %v7184_v63  ;;  %4236 = vadd.xlane.f32.xlu0 %v7292_v18  ;;  %v4249_v63 = vmul.f32 %v7297_v25, %v7297_v25  ;;  %v7351_v49 = vrot.slane %v7181_v21, %v4278_v37  ;;  %v4286_v50 = vsub.s32 5, %v6570_v17 }
 0xb5d   : > { %v7299_v43 = vadd.f32 %v6162_v35, %v4223_v31 }
 0xb5f   : > { %4252 = vadd.xlane.f32.xlu0 %v4248_v40  ;;  %4238 = vadd.xlane.f32.xlu1 %v7299_v43 }
 0xb63   : > { %4254 = vadd.xlane.f32.xlu1 %v4249_v63  ;;  %v7357_v63 = vrot.slane %v7181_v21, %v4286_v50 }
 0xbe4   : > { %v4237_v13 = vpop.xlane.xlu0 %4236 }
 0xbe5   : > { %v4242_v46 = vmul.f32 0.0078125, %v4237_v13  ;;  %v6044_v13 = vld [vmem:[%s6473_s11] sm:$0xff]  }
 0xbe7   : > { %v7339_v15 = vsub.f32 %v7292_v18, %v4242_v46  ;;  %v6045_v46 = vld [vmem:[%s6473_s11 + $0x80] sm:$0xff]  }
 0xbe8   : > { %v4253_v19 = vpop.xlane.xlu0 %4252  ;;  %v4239_v2 = vpop.xlane.xlu1 %4238 }
 0xbe9   : > { %v4260_v42 = vmul.f32 0.0078125, %v4253_v19  ;;  %v4243_v44 = vmul.f32 0.0078125, %v4239_v2  ;;  %v4250_v52 = vmul.f32 %v7339_v15, %v7339_v15 }
 0xbeb   : > { %v4264_v58 = vadd.f32 1e-06, %v4260_v42  ;;  %v7344_v22 = vsub.f32 %v7299_v43, %v4243_v44  ;;  %4256 = vadd.xlane.f32.xlu0 %v4250_v52 }
 0xbec   : > { %v4255_v45 = vpop.xlane.xlu1 %4254 }
 0xbed   : > { %6118 = vrsqrt.f32 %v4264_v58  ;;  %v4261_v3 = vmul.f32 0.0078125, %v4255_v45  ;;  %v4251_v7 = vmul.f32 %v7344_v22, %v7344_v22 }
 0xbef   : > { %v4265_v53 = vadd.f32 1e-06, %v4261_v3  ;;  %4258 = vadd.xlane.f32.xlu1 %v4251_v7 }
 0xbf1   : > { %6120 = vrsqrt.f32 %v4265_v53 }
 0xbfa   : > { %v6119_v8 = vpop.eup %6118 }
 0xbfb   : > { %v4272_v16 = vmul.f32 %v6119_v8, %v7290_v33 }
 0xbfd   : > { %v4280_v40 = vmul.f32 %v7351_v49, %v4272_v16 }
 0xbfe   : > { %v6121_v31 = vpop.eup %6120 }
 0xbff   : > { %v4273_v35 = vmul.f32 %v6121_v31, %v7297_v25  ;;  %v4288_v26 = vadd.f32 %v7357_v63, %v4280_v40  ;;  %v6014_v25 = vld [vmem:[%s6473_s11 + $0x78] sm:$0xff]   ;;  %v4328_v31 = vsub.s32 6, %v6570_v17 }
 0xc00   : > { %5566 = vmatprep.subr.bf16.mxu1 %v6014_v25 }
 0xc01   : > { %v4281_v33 = vmul.f32 %v7351_v49, %v4273_v35  ;;  %v7404_v35 = vrot.slane %v7181_v21, %v4328_v31 }
 0xc03   : > { %v4289_v30 = vadd.f32 %v7357_v63, %v4281_v33 }
 0xc05   : > { %v4292_v57 = vpack.c.bf16 %v4289_v30, %v4288_v26  ;;  %v6164_v30 = vld [vmem:[%s6494_s25 + $0x8] sm:$0xff] }
 0xc07   : > { %4535 = vmatmul.mubr.bf16.vlgmr.msra.gmra.mxu1 %v4292_v57  ;;  %4588 = vmatmul.mubr.bf16.vlgmr.msra.gmra.mxu0 %v4292_v57 }
 0xc08   : > { %4544 = vmatprep.mubr.bf16.mxu1 %v6312_v59  ;;  %4597 = vmatprep.mubr.bf16.mxu0 %v6312_v59  ;;  %v6022_v59 = vld [vmem:[%s6473_s11 + $0x68] sm:$0xff]  }
 0xc09   : > { %5567 = vmatpush3.bf16.msra.mxu1 %v6016_v62  ;;  %5595 = vmatpush3.bf16.msra.mxu0 %v6017_v41 }
 0xc0a   : > { %5568 = vmatprep.subr.bf16.mxu1 %v6018_v23  ;;  %5596 = vmatprep.subr.bf16.mxu0 %v6019_v60 }
 0xc0d   : > { %5569 = vmatpush3.bf16.msra.mxu1 %v6020_v4  ;;  %5597 = vmatpush3.bf16.msra.mxu0 %v6021_v54 }
 0xc0e   : > { %5570 = vmatprep.subr.bf16.mxu1 %v6022_v59  ;;  %5598 = vmatprep.subr.bf16.mxu0 %v6023_v51 }
 0xc11   : > { %5571 = vmatpush3.bf16.msra.mxu1 %v6024_v61  ;;  %5599 = vmatpush3.bf16.msra.mxu0 %v6025_v27 }
 0xc12   : > { %5572 = vmatprep.subr.bf16.mxu1 %v6026_v47  ;;  %5600 = vmatprep.subr.bf16.mxu0 %v6027_v34 }
 0xc15   : > { %5573 = vmatpush3.bf16.msra.mxu1 %v6028_v56  ;;  %5601 = vmatpush3.bf16.msra.mxu0 %v6029_v20 }
 0xc16   : > { %5574 = vmatprep.subr.bf16.mxu1 %v6030_v29  ;;  %5602 = vmatprep.subr.bf16.mxu0 %v6031_v24 }
 0xc19   : > { %5575 = vmatpush3.bf16.msra.mxu1 %v6032_v55  ;;  %5603 = vmatpush3.bf16.msra.mxu0 %v6033_v0 }
 0xc1a   : > { %5576 = vmatprep.subr.bf16.mxu1 %v6034_v14  ;;  %5604 = vmatprep.subr.bf16.mxu0 %v6035_v28 }
 0xc1d   : > { %5577 = vmatpush3.bf16.msra.mxu1 %v6036_v5  ;;  %5605 = vmatpush3.bf16.msra.mxu0 %v6037_v39 }
 0xc1e   : > { %5578 = vmatprep.subr.bf16.mxu1 %v6038_v1  ;;  %5606 = vmatprep.subr.bf16.mxu0 %v6039_v48 }
 0xc21   : > { %5579 = vmatpush3.bf16.msra.mxu1 %v6040_v36  ;;  %5607 = vmatpush3.bf16.msra.mxu0 %v6041_v12 }
 0xc22   : > { %5580 = vmatprep.subr.bf16.mxu1 %v6042_v6  ;;  %5608 = vmatprep.subr.bf16.mxu0 %v6043_v10 }
 0xc25   : > { %5581 = vmatpush3.bf16.msra.mxu1 %v6044_v13  ;;  %5609 = vmatpush3.bf16.msra.mxu0 %v6045_v46 }
 0xc74   : > { %v4257_v38 = vpop.xlane.xlu0 %4256 }
 0xc75   : > { %v4262_v19 = vmul.f32 0.0078125, %v4257_v38 }
 0xc77   : > { %v4266_v2 = vadd.f32 1e-06, %v4262_v19 }
 0xc78   : > { %v4259_v42 = vpop.xlane.xlu1 %4258 }
 0xc79   : > { %6122 = vrsqrt.f32 %v4266_v2  ;;  %v4263_v44 = vmul.f32 0.0078125, %v4259_v42 }
 0xc7b   : > { %v4267_v52 = vadd.f32 1e-06, %v4263_v44 }
 0xc7d   : > { %6124 = vrsqrt.f32 %v4267_v52 }
 0xc86   : > { %v6123_v58 = vpop.eup %6122 }
 0xc87   : > { %v4274_v45 = vmul.f32 %v6123_v58, %v7339_v15  ;;  %v6163_v15 = vld [vmem:[%s6494_s25 + $0x10] sm:$0xff] }
 0xc88   : > { %v7407_v40 = vrot.slane %v6163_v15, %v4328_v31 }
 0xc89   : > { %v4282_v53 = vmul.f32 %v7351_v49, %v4274_v45 }
 0xc8a   : > { %v6125_v3 = vpop.eup %6124 }
 0xc8b   : > { %v4275_v7 = vmul.f32 %v6125_v3, %v7344_v22  ;;  %v4290_v8 = vadd.f32 %v7357_v63, %v4282_v53  ;;  %v740_v22 = vld [vmem:[%s6494_s25 + $0x18] sm:$0xff] }
 0xc8c   : > { %v7413_v57 = vrot.slane %v740_v22, %v4328_v31 }
 0xc8d   : > { %v4283_v37 = vmul.f32 %v7351_v49, %v4275_v7  ;;  %v7411_v49 = vrot.slane %v6164_v30, %v4328_v31 }
 0xc8f   : > { %v4291_v16 = vadd.f32 %v7357_v63, %v4283_v37 }
 0xc91   : > { %v4293_v50 = vpack.c.bf16 %v4291_v16, %v4290_v8 }
 0xc93   : > { %4545 = vmatmul.mubr.bf16.gmra.mxu1 %v4293_v50  ;;  %4598 = vmatmul.mubr.bf16.gmra.mxu0 %v4293_v50 }
 0xcc7   : > { %v4536_v33 = vpop.f32.mrf.mxu1  ;;  %v4589_v26 = vpop.f32.mrf.mxu0 }
 0xcc8   : > { %v7416_v63 = vadd.f32 %v4536_v33, %v7404_v35  ;;  %v7419_v25 = vadd.f32 %v4589_v26, %v7407_v40 }
 0xcc9   : > { %v4538_v32 = vpop.f32.mrf.mxu1  ;;  %v4591_v21 = vpop.f32.mrf.mxu0 }
 0xcca   : > { %v4624_v62 = vmul.f32 0.044715, %v7416_v63  ;;  %v4626_v41 = vmul.f32 0.044715, %v7419_v25  ;;  %v7424_v23 = vadd.f32 %v4538_v32, %v7411_v49  ;;  %v7427_v60 = vadd.f32 %v4591_v21, %v7413_v57 }
 0xccb   : > { %v4540_v4 = vpop.f32.mrf.mxu1  ;;  %v4593_v54 = vpop.f32.mrf.mxu0 }
 0xccc   : > { %v4640_v59 = vmul.f32 %v4624_v62, %v7416_v63  ;;  %v4642_v51 = vmul.f32 %v4626_v41, %v7419_v25  ;;  %v4541_v61 = vadd.f32 %v4540_v4, %v7404_v35  ;;  %v7433_v27 = vadd.f32 %v4593_v54, %v7407_v40 }
 0xccd   : > { %v4625_v47 = vmul.f32 0.044715, %v7424_v23  ;;  %v4627_v34 = vmul.f32 0.044715, %v7427_v60  ;;  %v4542_v56 = vpop.f32.mrf.mxu1  ;;  %v4595_v55 = vpop.f32.mrf.mxu0 }
 0xcce   : > { %v4656_v20 = vmul.f32 %v4640_v59, %v7416_v63  ;;  %v4658_v29 = vmul.f32 %v4642_v51, %v7419_v25  ;;  %v4628_v24 = vmul.f32 0.044715, %v4541_v61  ;;  %v4630_v28 = vmul.f32 0.044715, %v7433_v27 }
 0xccf   : > { %v4641_v0 = vmul.f32 %v4625_v47, %v7424_v23  ;;  %v4643_v14 = vmul.f32 %v4627_v34, %v7427_v60  ;;  %v4543_v48 = vadd.f32 %v4542_v56, %v7411_v49  ;;  %v4596_v10 = vadd.f32 %v4595_v55, %v7413_v57 }
 0xcd0   : > { %v4672_v5 = vadd.f32 %v4656_v20, %v7416_v63  ;;  %v4674_v39 = vadd.f32 %v4658_v29, %v7419_v25  ;;  %v4644_v1 = vmul.f32 %v4628_v24, %v4541_v61  ;;  %v4646_v6 = vmul.f32 %v4630_v28, %v7433_v27 }
 0xcd1   : > { %v4657_v36 = vmul.f32 %v4641_v0, %v7424_v23  ;;  %v4659_v12 = vmul.f32 %v4643_v14, %v7427_v60  ;;  %v4629_v19 = vmul.f32 0.044715, %v4543_v48  ;;  %v4631_v42 = vmul.f32 0.044715, %v4596_v10 }
 0xcd2   : > { %v4688_v38 = vmul.f32 0.7978846, %v4672_v5  ;;  %v4690_v13 = vmul.f32 0.7978846, %v4674_v39  ;;  %v4660_v46 = vmul.f32 %v4644_v1, %v4541_v61  ;;  %v4662_v2 = vmul.f32 %v4646_v6, %v7433_v27 }
 0xcd3   : > { %v4673_v44 = vadd.f32 %v4657_v36, %v7424_v23  ;;  %v4645_v58 = vmul.f32 %v4629_v19, %v4543_v48  ;;  %v4647_v3 = vmul.f32 %v4631_v42, %v4596_v10  ;;  %v4675_v8 = vadd.f32 %v4659_v12, %v7427_v60 }
 0xcd4   : > { %v4676_v52 = vadd.f32 %v4660_v46, %v4541_v61  ;;  %6126 = vtanh.f32 %v4688_v38  ;;  %v4678_v45 = vadd.f32 %v4662_v2, %v7433_v27  ;;  %v4608_v59 = vmul.f32 0.5, %v7416_v63 }
 0xcd5   : > { %v4689_v7 = vmul.f32 0.7978846, %v4673_v44  ;;  %6128 = vtanh.f32 %v4690_v13  ;;  %v4661_v37 = vmul.f32 %v4645_v58, %v4543_v48  ;;  %v4663_v50 = vmul.f32 %v4647_v3, %v4596_v10 }
 0xcd6   : > { %v4692_v53 = vmul.f32 0.7978846, %v4676_v52  ;;  %v4694_v16 = vmul.f32 0.7978846, %v4678_v45  ;;  %v4691_v15 = vmul.f32 0.7978846, %v4675_v8 }
 0xcd7   : > { %6130 = vtanh.f32 %v4689_v7  ;;  %v4677_v31 = vadd.f32 %v4661_v37, %v4543_v48  ;;  %v4679_v22 = vadd.f32 %v4663_v50, %v4596_v10  ;;  %v4612_v56 = vmul.f32 0.5, %v4541_v61 }
 0xcd8   : > { %6132 = vtanh.f32 %v4692_v53  ;;  %v4609_v20 = vmul.f32 0.5, %v7424_v23  ;;  %v4614_v0 = vmul.f32 0.5, %v7433_v27  ;;  %v4613_v14 = vmul.f32 0.5, %v4543_v48 }
 0xcd9   : > { %6134 = vtanh.f32 %v4694_v16  ;;  %v4693_v33 = vmul.f32 0.7978846, %v4677_v31  ;;  %v4695_v26 = vmul.f32 0.7978846, %v4679_v22  ;;  %v4611_v39 = vmul.f32 0.5, %v7427_v60 }
 0xcda   : > { %6136 = vtanh.f32 %v4691_v15  ;;  %v4615_v1 = vmul.f32 0.5, %v4596_v10  ;;  %v4610_v63 = vmul.f32 0.5, %v7419_v25 }
 0xcdb   : > { %6138 = vtanh.f32 %v4693_v33 }
 0xcdc   : > { %6140 = vtanh.f32 %v4695_v26 }
 0xce1   : > { %v6127_v30 = vpop.eup %6126 }
 0xce2   : > { %v6129_v32 = vpop.eup %6128  ;;  %v4720_v24 = vadd.f32 1.0, %v6127_v30 }
 0xce3   : > { %v4722_v5 = vadd.f32 1.0, %v6129_v32 }
 0xce4   : > { %v6131_v21 = vpop.eup %6130  ;;  %v4736_v46 = vmul.f32 %v4720_v24, %v4608_v59 }
 0xce5   : > { %v6133_v62 = vpop.eup %6132  ;;  %v4721_v51 = vadd.f32 1.0, %v6131_v21  ;;  %v4738_v2 = vmul.f32 %v4722_v5, %v4610_v63 }
 0xce6   : > { %v6135_v41 = vpop.eup %6134  ;;  %v4724_v54 = vadd.f32 1.0, %v6133_v62 }
 0xce7   : > { %v6137_v4 = vpop.eup %6136  ;;  %v4726_v47 = vadd.f32 1.0, %v6135_v41  ;;  %v4737_v6 = vmul.f32 %v4721_v51, %v4609_v20 }
 0xce8   : > { %v6139_v34 = vpop.eup %6138  ;;  %v4723_v29 = vadd.f32 1.0, %v6137_v4  ;;  %v4740_v12 = vmul.f32 %v4724_v54, %v4612_v56 }
 0xce9   : > { %v6141_v55 = vpop.eup %6140  ;;  %v4725_v28 = vadd.f32 1.0, %v6139_v34  ;;  %v4742_v61 = vmul.f32 %v4726_v47, %v4614_v0 }
 0xcea   : > { %v4727_v36 = vadd.f32 1.0, %v6141_v55  ;;  %v4739_v13 = vmul.f32 %v4723_v29, %v4611_v39  ;;  %v4752_v27 = vpack.c.bf16 %v4740_v12, %v4736_v46 }
 0xceb   : > { %v4741_v38 = vmul.f32 %v4725_v28, %v4613_v14  ;;  %v4754_v48 = vpack.c.bf16 %v4742_v61, %v4738_v2 }
 0xcec   : > { %v4743_v23 = vmul.f32 %v4727_v36, %v4615_v1 }
 0xced   : > { %v4753_v19 = vpack.c.bf16 %v4741_v38, %v4737_v6 }
 0xcee   : > { %v4755_v42 = vpack.c.bf16 %v4743_v23, %v4739_v13 }
 0xcef   : > { %5052 = vmatprep.mubr.bf16.mxu1 %v4753_v19 }
 0xcf0   : > { %5101 = vmatprep.mubr.bf16.mxu0 %v4755_v42  ;;  %5053 = vmatmul.mubr.bf16.vlgmr.msra.gmra.mxu1 %v4752_v27 }
 0xcf1   : > { %5102 = vmatmul.mubr.bf16.vlgmr.msra.gmra.mxu0 %v4754_v48 }
 0xd53   : > { %v4546_v60 = vpop.f32.mrf.mxu1  ;;  %v4599_v10 = vpop.f32.mrf.mxu0 }
 0xd54   : > { %v7459_v44 = vadd.f32 %v4546_v60, %v7404_v35  ;;  %v7462_v25 = vadd.f32 %v4599_v10, %v7407_v40 }
 0xd55   : > { %v4548_v52 = vpop.f32.mrf.mxu1  ;;  %v4601_v58 = vpop.f32.mrf.mxu0 }
 0xd56   : > { %v4632_v45 = vmul.f32 0.044715, %v7459_v44  ;;  %v4634_v3 = vmul.f32 0.044715, %v7462_v25  ;;  %v7467_v7 = vadd.f32 %v4548_v52, %v7411_v49  ;;  %v7470_v53 = vadd.f32 %v4601_v58, %v7413_v57 }
 0xd57   : > { %v4550_v37 = vpop.f32.mrf.mxu1  ;;  %v4603_v8 = vpop.f32.mrf.mxu0  ;;  %v4616_v58 = vmul.f32 0.5, %v7459_v44 }
 0xd58   : > { %v4648_v16 = vmul.f32 %v4632_v45, %v7459_v44  ;;  %v4650_v50 = vmul.f32 %v4634_v3, %v7462_v25  ;;  %v4633_v31 = vmul.f32 0.044715, %v7467_v7  ;;  %v4635_v15 = vmul.f32 0.044715, %v7470_v53 }
 0xd59   : > { %v4551_v22 = vadd.f32 %v4550_v37, %v7404_v35  ;;  %v7478_v33 = vadd.f32 %v4603_v8, %v7407_v40  ;;  %v4552_v26 = vpop.f32.mrf.mxu1  ;;  %v4605_v30 = vpop.f32.mrf.mxu0 }
 0xd5a   : > { %v4664_v32 = vmul.f32 %v4648_v16, %v7459_v44  ;;  %v4649_v21 = vmul.f32 %v4633_v31, %v7467_v7  ;;  %v4651_v62 = vmul.f32 %v4635_v15, %v7470_v53  ;;  %v4553_v54 = vadd.f32 %v4552_v26, %v7411_v49 }
 0xd5b   : > { %v4636_v41 = vmul.f32 0.044715, %v4551_v22  ;;  %v4638_v4 = vmul.f32 0.044715, %v7478_v33  ;;  %v4606_v59 = vadd.f32 %v4605_v30, %v7413_v57  ;;  %v4666_v35 = vmul.f32 %v4650_v50, %v7462_v25 }
 0xd5c   : > { %v4665_v40 = vmul.f32 %v4649_v21, %v7467_v7  ;;  %v4667_v51 = vmul.f32 %v4651_v62, %v7470_v53  ;;  %v4680_v47 = vadd.f32 %v4664_v32, %v7459_v44  ;;  %v4637_v20 = vmul.f32 0.044715, %v4553_v54 }
 0xd5d   : > { %v4652_v34 = vmul.f32 %v4636_v41, %v4551_v22  ;;  %v4654_v56 = vmul.f32 %v4638_v4, %v7478_v33  ;;  %v4639_v29 = vmul.f32 0.044715, %v4606_v59  ;;  %v4682_v1 = vadd.f32 %v4666_v35, %v7462_v25 }
 0xd5e   : > { %v4681_v24 = vadd.f32 %v4665_v40, %v7467_v7  ;;  %v4683_v55 = vadd.f32 %v4667_v51, %v7470_v53  ;;  %v4653_v0 = vmul.f32 %v4637_v20, %v4553_v54  ;;  %v4696_v39 = vmul.f32 0.7978846, %v4680_v47 }
 0xd5f   : > { %v4668_v49 = vmul.f32 %v4652_v34, %v4551_v22  ;;  %v4670_v57 = vmul.f32 %v4654_v56, %v7478_v33  ;;  %v4655_v14 = vmul.f32 %v4639_v29, %v4606_v59  ;;  %v4698_v38 = vmul.f32 0.7978846, %v4682_v1 }
 0xd60   : > { %v4697_v28 = vmul.f32 0.7978846, %v4681_v24  ;;  %v4699_v5 = vmul.f32 0.7978846, %v4683_v55  ;;  %v4669_v36 = vmul.f32 %v4653_v0, %v4553_v54  ;;  %v4620_v8 = vmul.f32 0.5, %v4551_v22 }
 0xd61   : > { %v4671_v12 = vmul.f32 %v4655_v14, %v4606_v59  ;;  %v4684_v63 = vadd.f32 %v4668_v49, %v4551_v22  ;;  %v4686_v6 = vadd.f32 %v4670_v57, %v7478_v33  ;;  %v4618_v50 = vmul.f32 0.5, %v7462_v25 }
 0xd62   : > { %6142 = vtanh.f32 %v4697_v28  ;;  %v4685_v61 = vadd.f32 %v4669_v36, %v4553_v54  ;;  %v4617_v15 = vmul.f32 0.5, %v7467_v7  ;;  %v4621_v26 = vmul.f32 0.5, %v4553_v54 }
 0xd63   : > { %v4687_v13 = vadd.f32 %v4671_v12, %v4606_v59  ;;  %6144 = vtanh.f32 %v4699_v5  ;;  %v4700_v23 = vmul.f32 0.7978846, %v4684_v63  ;;  %v4702_v2 = vmul.f32 0.7978846, %v4686_v6 }
 0xd64   : > { %6146 = vtanh.f32 %v4696_v39  ;;  %v4701_v46 = vmul.f32 0.7978846, %v4685_v61  ;;  %v4619_v62 = vmul.f32 0.5, %v7470_v53  ;;  %v4623_v41 = vmul.f32 0.5, %v4606_v59 }
 0xd65   : > { %v4703_v19 = vmul.f32 0.7978846, %v4687_v13  ;;  %6148 = vtanh.f32 %v4700_v23  ;;  %v4622_v51 = vmul.f32 0.5, %v7478_v33  ;;  %v4826_v53 = vsub.s32 7, %v6570_v17  ;;  %v6165_v33 = vld [vmem:[%s6494_s25] sm:$0xff] }
 0xd66   : > { %6150 = vtanh.f32 %v4698_v38 }
 0xd67   : > { %6152 = vtanh.f32 %v4701_v46  ;;  %v4827_v49 = vrot.slane %v6165_v33, %v4826_v53 }
 0xd68   : > { %6154 = vtanh.f32 %v4703_v19 }
 0xd69   : > { %6156 = vtanh.f32 %v4702_v2 }
 0xd6f   : > { %v6143_v42 = vpop.eup %6142 }
 0xd70   : > { %v6145_v27 = vpop.eup %6144  ;;  %v4729_v52 = vadd.f32 1.0, %v6143_v42 }
 0xd71   : > { %v6147_v48 = vpop.eup %6146  ;;  %v4731_v37 = vadd.f32 1.0, %v6145_v27 }
 0xd72   : > { %v6149_v60 = vpop.eup %6148  ;;  %v4728_v16 = vadd.f32 1.0, %v6147_v48  ;;  %v4745_v44 = vmul.f32 %v4729_v52, %v4617_v15 }
 0xd73   : > { %v6151_v10 = vpop.eup %6150  ;;  %v4732_v45 = vadd.f32 1.0, %v6149_v60  ;;  %v4747_v47 = vmul.f32 %v4731_v37, %v4619_v62 }
 0xd74   : > { %v6153_v3 = vpop.eup %6152  ;;  %v4730_v32 = vadd.f32 1.0, %v6151_v10  ;;  %v4744_v34 = vmul.f32 %v4728_v16, %v4616_v58 }
 0xd75   : > { %v6155_v31 = vpop.eup %6154  ;;  %v4733_v30 = vadd.f32 1.0, %v6153_v3  ;;  %v4748_v35 = vmul.f32 %v4732_v45, %v4620_v8 }
 0xd76   : > { %v6157_v21 = vpop.eup %6156  ;;  %v4735_v4 = vadd.f32 1.0, %v6155_v31  ;;  %v4746_v7 = vmul.f32 %v4730_v32, %v4618_v50 }
 0xd77   : > { %v4749_v40 = vmul.f32 %v4733_v30, %v4621_v26  ;;  %v4734_v22 = vadd.f32 1.0, %v6157_v21  ;;  %v4756_v29 = vpack.c.bf16 %v4748_v35, %v4744_v34 }
 0xd78   : > { %v4751_v25 = vmul.f32 %v4735_v4, %v4623_v41 }
 0xd79   : > { %v4757_v56 = vpack.c.bf16 %v4749_v40, %v4745_v44  ;;  %v4750_v54 = vmul.f32 %v4734_v22, %v4622_v51 }
 0xd7a   : > { %v4759_v20 = vpack.c.bf16 %v4751_v25, %v4747_v47 }
 0xd7b   : > { %5060 = vmatprep.mubr.bf16.mxu1 %v4757_v56  ;;  %v4758_v24 = vpack.c.bf16 %v4750_v54, %v4746_v7 }
 0xd7c   : > { %5109 = vmatprep.mubr.bf16.mxu0 %v4759_v20  ;;  %5061 = vmatmul.mubr.bf16.gmra.mxu1 %v4756_v29 }
 0xd7d   : > { %5110 = vmatmul.mubr.bf16.gmra.mxu0 %v4758_v24 }
 0xdb0   : > { %v5582_v59 = vpop.f32.mrf.mxu1 }
 0xdb1   : > { %v5610_v55 = vpop.f32.mrf.mxu0 }
 0xdb2   : > { %v5583_v57 = vpop.f32.mrf.mxu1 }
 0xdb3   : > { %v5584_v0 = vadd.f32 %v5583_v57, %v5582_v59  ;;  %v5611_v14 = vpop.f32.mrf.mxu0 }
 0xdb4   : > { %v5585_v28 = vpop.f32.mrf.mxu1  ;;  %v5612_v39 = vadd.f32 %v5611_v14, %v5610_v55 }
 0xdb5   : > { %v5055_v5 = vadd.f32 %v5584_v0, %v4827_v49  ;;  %v5613_v1 = vpop.f32.mrf.mxu0 }
 0xdb6   : > { %v5586_v36 = vpop.f32.mrf.mxu1 }
 0xdb7   : > { %v5104_v12 = vadd.f32 %v5612_v39, %v5055_v5  ;;  %v5587_v63 = vadd.f32 %v5586_v36, %v5585_v28  ;;  %v5614_v6 = vpop.f32.mrf.mxu0 }
 0xdb8   : > { %v5615_v13 = vadd.f32 %v5614_v6, %v5613_v1 }
 0xdb9   : > { %v5118_v38 = vadd.f32 %v5104_v12, %v7198_v11  ;;  %v5058_v61 = vadd.f32 %v5587_v63, %v4827_v49 }
 0xdbb   : > { %5122 = vst [vmem:[#allocation2 + $0x10] sm:$0xff] %v5118_v38  ;;  %v5107_v17 = vadd.f32 %v5615_v13, %v5058_v61 }
 0xdbd   : > { %v5119_v23 = vadd.f32 %v5107_v17, %v7196_v9 }
 0xdbf   : > { %5123 = vst [vmem:[#allocation2] sm:$0xff] %v5119_v23 }
 0xe3c   : > { %v5588_v46 = vpop.f32.mrf.mxu1 }
 0xe3d   : > { %v5616_v19 = vpop.f32.mrf.mxu0 }
 0xe3e   : > { %v5589_v2 = vpop.f32.mrf.mxu1 }
 0xe3f   : > { %v5590_v42 = vadd.f32 %v5589_v2, %v5588_v46  ;;  %v5617_v27 = vpop.f32.mrf.mxu0 }
 0xe40   : > { %v5591_v48 = vpop.f32.mrf.mxu1  ;;  %v5618_v10 = vadd.f32 %v5617_v27, %v5616_v19 }
 0xe41   : > { %v5063_v60 = vadd.f32 %v5590_v42, %v4827_v49  ;;  %v5619_v52 = vpop.f32.mrf.mxu0 }
 0xe42   : > { %v5592_v58 = vpop.f32.mrf.mxu1 }
 0xe43   : > { %v5112_v45 = vadd.f32 %v5618_v10, %v5063_v60  ;;  %v5593_v3 = vadd.f32 %v5592_v58, %v5591_v48  ;;  %v5620_v11 = vpop.f32.mrf.mxu0 }
 0xe44   : > { %v5621_v16 = vadd.f32 %v5620_v11, %v5619_v52 }
 0xe45   : > { %v5120_v37 = vadd.f32 %v5112_v45, %v7292_v18  ;;  %v5066_v8 = vadd.f32 %v5593_v3, %v4827_v49 }
 0xe47   : > { %5124 = vst [vmem:[#allocation2 + $0x18] sm:$0xff] %v5120_v37  ;;  %v5115_v9 = vadd.f32 %v5621_v16, %v5066_v8  ;;  %5129 = sbr.rel (%p5477_p10) target bundleno = 3684 (0xe64), region = 76 }
 0xe49   : > { %v5121_v50 = vadd.f32 %v5115_v9, %v7299_v43 }
 0xe4b   : > { %5125 = vst [vmem:[#allocation2 + $0x8] sm:$0xff] %v5121_v50 }
 0xe4c   : > { %v5130_v31 = vld [vmem:[#allocation2 + $0x10] sm:$0xff]  ;;  %v5131_v15 = vld [vmem:[#allocation2] sm:$0xff] }
 0xe4d   : > { %v5134_v30 = vadd.f32 %v5131_v15, %v5130_v31 }
 0xe4e   : > { %v5132_v26 = vld [vmem:[#allocation2 + $0x18] sm:$0xff] }
 0xe4f   : > { %v5135_v62 = vrot.slane %v5134_v30, 4 }
 0xe51   : > { %v5136_v4 = vadd.f32 %v5135_v62, %v5134_v30 }
 0xe52   : > { %v5133_v32 = vld [vmem:[#allocation2 + $0x8] sm:$0xff] }
 0xe53   : > { %v5141_v21 = vadd.f32 %v5133_v32, %v5132_v26  ;;  %v5137_v35 = vrot.slane %v5136_v4, 2 }
 0xe55   : > { %v5142_v41 = vrot.slane %v5141_v21, 4  ;;  %v5138_v40 = vadd.f32 %v5137_v35, %v5136_v4 }
 0xe57   : > { %v5143_v18 = vadd.f32 %v5142_v41, %v5141_v21  ;;  %v5139_v22 = vrot.slane %v5138_v40, 1 }
 0xe59   : > { %v5144_v44 = vrot.slane %v5143_v18, 2  ;;  %v5140_v47 = vadd.f32 %v5139_v22, %v5138_v40 }
 0xe5b   : > { %v5145_v51 = vadd.f32 %v5144_v44, %v5143_v18  ;;  %v5149_v34 = vmul.f32 0.0625, %v5140_v47 }
 0xe5d   : > { %v5146_v43 = vrot.slane %v5145_v51, 1  ;;  %5151 = vst [vmem:[#allocation8] sm:$0x1] %v5149_v34 }
 0xe5f   : > { %v5147_v25 = vadd.f32 %v5146_v43, %v5145_v51 }
 0xe61   : > { %v5150_v56 = vmul.f32 0.0625, %v5147_v25 }
 0xe63   : > { %5152 = vst [vmem:[#allocation8 + $0x1] sm:$0x1] %v5150_v56 }
 0xe64 PF: > { %s7566_s16 = sadd.s32 4294967295, %s6304_s18   ;;  %s6320_s30 = smov [#allocation8]  }
 0xe65   : > { %p7510_p3 = scmp.eq.s32.totalorder %s7566_s16, 3  ;;  %s5162_s27 = sshll.u32 %s6320_s30, 4  ;;  %s5163_s27 = int_to_ptr.vmem [resolvable:$true] %s5162_s27 }
 0xe66   : > { %s6222_s25 = scalar_lea.vmem %s5163_s27, 32  ;;  %p6229_p8 = scmp.lt.s32.totalorder %s5163_s27, %s5163_s27 }
 0xe67   : > { %p6223_p4 = scmp.ne.s32.totalorder %s5163_s27, %s6222_s25  ;;  %p6230_p11 = scmp.lt.s32.totalorder %s6222_s25, %s6222_s25 }
 0xe69   : > { %p6224_p5 = pnand %p6223_p4, %p7510_p3  ;;  %p6231_p12 = por %p6230_p11, %p6229_p8 }
 0xe6b   : > { %p6225_p6 = pneg %p6224_p5 }
 0xe6d   : > { %p6232_p13 = pnand %p6231_p12, %p6225_p6 }
 0xe6f   : > { %6235 = shalt.err (!%p6232_p13)
}
 0xe70   : > { %s6321_s24 = smov 16   ;;  %s6322_s15 = smov 1  }
 0xe71   : > { %s7568_s13 = sld [smem:[#allocation16_spill]] }
 0xe77   : > { %5838 = dma.vmem_to_hbm [thread:$0]  (%p7510_p3), %s5163_s27, 32, %s7568_s13, [#allocation5], %s6321_s24, %s6321_s24, %s6322_s15  }
 0xe78   : > { %6279 = dma.done.wait (%p7510_p3), [#allocation5], 32  }
 0xe79   : > { %6281 = vsyncadd (%p7510_p3), [#allocation5], 4294967264 }
 0xe7a PF: > { %s27_s18 = sadd.s32 1, %s6304_s18   ;;  %s7569_s21 = sld [smem:[#allocation12_spill]] }
 0xe7b   : > { %p24_p0 = scmp.ge.s32.totalorder %s27_s18, 6   ;;  %s7570_s15 = sld [smem:[#allocation14_spill]] }
 0xe7c   : > { %s7571_s5 = sld [smem:[#allocation13_spill]]  ;;  %s7572_s13 = smov %s6288_s14 }
 0xe7d   : > { %s7574_s16 = smov %s6300_s17 }
 0xe7e   :  { %26 = sbr.rel (!%p24_p0) target bundleno = 10 (0xa), region = 131 }
 0xe80   : > { %s7573_s14 = smov %s7569_s21 }
 0xe82   : > { %s7575_s17 = smov %s7571_s5 }
 0xe83   :  { %5178 = vsyncpa [#allocation4], 1 }
 0xe84   :  { %5180 = vsyncpa [#allocation4 + $0x1], 1 }
 0xe85   :  { %5181 = vsyncpa [#allocation7], 1 }
 0xe86   :  { %5183 = vsyncpa [#allocation7 + $0x1], 1 }
 0xe87   :  { %5184 = vsyncpa [#allocation5], 1 }
 0xe88   :  { %5186 = vsyncpa [#allocation5 + $0x1], 1 }

</bundles_post_ra>
